<compile_context>
chip_gen: v7x
topology: tpu7x:2x2x1
jax: 0.10.0
libtpu: 0.0.40
codegen_flags: <defaults>
</compile_context>

<pallas_src>
import jax
import jax.numpy as jnp
import numpy as np
from jax.experimental import pallas as pl
from jax.experimental.pallas import tpu as pltpu

D = 8             # depth of each NeRF MLP
W = 256           # hidden width
INPUT_CH = 5
IN_PAD = 8        # input channels padded to a sublane multiple
OUTPUT_CH = 2
SKIP = 4          # skip after layer index 4 (feeds layer index 5)
OUT_PAD = 128     # lane-dense padded output width


# ----------------------------- Pallas kernel --------------------------------
def nerf_kernel(x_ref, w_in_ref, w_skip_ref, w_hid_ref, b_ref,
                w_out_ref, b_out_ref, o_ref):
    # Shapes seen inside the kernel (model dim squeezed away):
    #   x_ref:      (tm, IN_PAD)      f32
    #   w_in_ref:   (IN_PAD, W)       f32   layer-0 weight (rows >= INPUT_CH are 0)
    #   w_skip_ref: (IN_PAD, W)       f32   x-part of the skip (layer 5) weight
    #   w_hid_ref:  (D-1, W, W)       bf16  h-part weights for layers 1..7
    #   b_ref:      (D, W)            f32
    #   w_out_ref:  (W, OUT_PAD)      bf16  (only first OUTPUT_CH cols nonzero)
    #   b_out_ref:  (1, OUT_PAD)      f32
    #   o_ref:      (tm, OUT_PAD)     f32
    x = x_ref[...]                                   # f32, VPU path
    w_in = w_in_ref[...]
    w_skip = w_skip_ref[...]

    # Input layer pre-activation and skip contribution as rank-1 VPU updates:
    # keeps the K=5, N=512 matmul off the MXU critical path (kernel is
    # MXU-bound; this dot would cost ~2 hidden layers of MXU streaming for
    # <1% of the FLOPs). xw_skip has no consumer until layer 5, so the LLO
    # scheduler can hide it under the early-layer matmuls.
    xw_in = x[:, 0:1] * w_in[0:1, :]
    xw_skip = x[:, 0:1] * w_skip[0:1, :]
    for k in range(1, INPUT_CH):                     # statically unrolled (5)
        xw_in = xw_in + x[:, k:k + 1] * w_in[k:k + 1, :]
        xw_skip = xw_skip + x[:, k:k + 1] * w_skip[k:k + 1, :]

    h = jnp.maximum(xw_in + b_ref[0], 0.0)           # f32 elementwise

    for i in range(1, D):                            # statically unrolled
        z = jnp.dot(h.astype(jnp.bfloat16), w_hid_ref[i - 1],
                    preferred_element_type=jnp.float32) + b_ref[i]
        if i == SKIP + 1:                            # cat([input_pts, h]) layer
            z = z + xw_skip
        h = jnp.maximum(z, 0.0)

    o_ref[...] = (jnp.dot(h.astype(jnp.bfloat16), w_out_ref[...],
                          preferred_element_type=jnp.float32)
                  + b_out_ref[...])


# ------------------------------- wrapper -------------------------------------
def audionerf_forward(params, embedded_x, embedded_y, embedded_z, *, tm=1024):
    """Run all three NeRF sub-models in one fused pallas_call."""
    n = embedded_x.shape[0]
    x = jnp.stack([embedded_x, embedded_y, embedded_z], axis=0)  # (3, n, 5)
    x = x.astype(jnp.float32)

    # Clamp the row tile for small batches (keep it a multiple of 8).
    tm_eff = min(tm, max(8, ((n + 7) // 8) * 8))
    n_tiles = pl.cdiv(n, tm_eff)
    n_pad = n_tiles * tm_eff
    # Pad rows to the tile multiple and channels to IN_PAD for aligned DMA.
    x = jnp.pad(x, ((0, 0), (0, n_pad - n), (0, IN_PAD - INPUT_CH)))

    out = pl.pallas_call(
        nerf_kernel,
        out_shape=jax.ShapeDtypeStruct((3, n_pad, OUT_PAD), jnp.float32),
        grid_spec=pltpu.PrefetchScalarGridSpec(
            num_scalar_prefetch=0,
            grid=(3, n_tiles),
            in_specs=[
                pl.BlockSpec((None, tm_eff, IN_PAD),
                             lambda m, i: (m, i, 0)),              # x tile
                pl.BlockSpec((None, IN_PAD, W),
                             lambda m, i: (m, 0, 0)),              # w_in
                pl.BlockSpec((None, IN_PAD, W),
                             lambda m, i: (m, 0, 0)),              # w_skip
                pl.BlockSpec((None, D - 1, W, W),
                             lambda m, i: (m, 0, 0, 0)),           # w_hid
                pl.BlockSpec((None, D, W),
                             lambda m, i: (m, 0, 0)),              # biases
                pl.BlockSpec((None, W, OUT_PAD),
                             lambda m, i: (m, 0, 0)),              # w_out
                pl.BlockSpec((None, 1, OUT_PAD),
                             lambda m, i: (m, 0, 0)),              # b_out
            ],
            out_specs=pl.BlockSpec((None, tm_eff, OUT_PAD),
                                   lambda m, i: (m, i, 0)),
        ),
        compiler_params=pltpu.CompilerParams(
            # Model axis "arbitrary", row-tile axis "parallel": v7x megacore
            # shards the (balanced) row axis instead of the size-3 model axis.
            dimension_semantics=("arbitrary", "parallel"),
            # tm=1024 intermediates + double-buffered tiles exceed v5e's 16 MiB
            # default scoped VMEM; 32 MiB is safe on every generation.
            vmem_limit_bytes=32 * 1024 * 1024),
    )(x, params["w_in"], params["w_skip"], params["w_hid"], params["b"],
      params["w_out"], params["b_out"])

    out = out[:, :n, :OUTPUT_CH]
    return out[0], out[1], out[2]


# --------------------------- parameter init ---------------------------------
def _xavier_uniform(key, fan_in, fan_out, gain):
    bound = gain * np.sqrt(6.0 / (fan_in + fan_out))
    return jax.random.uniform(key, (fan_in, fan_out), jnp.float32,
                              -bound, bound)


def _init_single_nerf(key):
    """Matches DenseLayer.reset_parameters: xavier_uniform(gain), zero bias."""
    keys = jax.random.split(key, D + 1)
    gain_relu = float(np.sqrt(2.0))     # torch calculate_gain('relu')
    gain_sigmoid = 1.0                  # torch calculate_gain('sigmoid')

    w_in = _xavier_uniform(keys[0], INPUT_CH, W, gain_relu)

    w_hid, w_skip = [], None
    for i in range(1, D):
        if i == SKIP + 1:
            # real torch layer has fan_in = W + input_ch; init with that fan-in
            # then split into x-part (skip) and h-part — identical math to the
            # concat([input_pts, h]) formulation.
            w_full = _xavier_uniform(keys[i], W + INPUT_CH, W, gain_relu)
            w_skip = w_full[:INPUT_CH]
            w_hid.append(w_full[INPUT_CH:])
        else:
            w_hid.append(_xavier_uniform(keys[i], W, W, gain_relu))
    w_hid = jnp.stack(w_hid)                              # (D-1, W, W)

    # Pad the input-facing (VPU) weights to IN_PAD rows; padded rows are never
    # read by the kernel (it only loops over the real INPUT_CH channels).
    w_in_p = jnp.zeros((IN_PAD, W), jnp.float32).at[:INPUT_CH].set(w_in)
    w_skip_p = jnp.zeros((IN_PAD, W), jnp.float32).at[:INPUT_CH].set(w_skip)

    b = jnp.zeros((D, W), jnp.float32)

    w_out = _xavier_uniform(keys[D], W, OUTPUT_CH, gain_sigmoid)
    w_out_pad = jnp.zeros((W, OUT_PAD), jnp.float32).at[:, :OUTPUT_CH].set(w_out)
    b_out_pad = jnp.zeros((1, OUT_PAD), jnp.float32)

    return dict(w_in=w_in_p, w_skip=w_skip_p, w_hid=w_hid, b=b,
                w_out=w_out_pad, b_out=b_out_pad)


def init_audionerf_params(key):
    kx, ky, kz = jax.random.split(key, 3)
    per_model = [_init_single_nerf(k) for k in (kx, ky, kz)]
    stacked = {}
    for name in per_model[0]:
        arr = jnp.stack([p[name] for p in per_model], axis=0)
        if name in ("w_hid", "w_out"):
            arr = arr.astype(jnp.bfloat16)    # bf16 MXU operands
        stacked[name] = arr                   # w_in/w_skip/b stay f32 (VPU path)
    return stacked


# ----------------------------- pure-JAX reference ----------------------------
def nerf_ref(params, m, x):
    """Same math (f32 input layer, bf16 hidden dots, f32 accumulate) in plain JAX."""
    x = x.astype(jnp.float32)
    xw_in = x @ params["w_in"][m, :INPUT_CH]
    xw_skip = x @ params["w_skip"][m, :INPUT_CH]
    h = jax.nn.relu(xw_in + params["b"][m, 0])
    for i in range(1, D):
        z = jnp.dot(h.astype(jnp.bfloat16), params["w_hid"][m, i - 1],
                    preferred_element_type=jnp.float32) + params["b"][m, i]
        if i == SKIP + 1:
            z = z + xw_skip
        h = jax.nn.relu(z)
    out = jnp.dot(h.astype(jnp.bfloat16), params["w_out"][m],
                  preferred_element_type=jnp.float32) + params["b_out"][m]
    return out[:, :OUTPUT_CH]


# --------------------------------- main --------------------------------------
if __name__ == "__main__":
    key = jax.random.PRNGKey(0)
    k_params, kx, ky, kz = jax.random.split(key, 4)

    params = init_audionerf_params(k_params)

    N = 128
    embedded_x = jax.random.normal(kx, (N, INPUT_CH), jnp.float32)
    embedded_y = jax.random.normal(ky, (N, INPUT_CH), jnp.float32)
    embedded_z = jax.random.normal(kz, (N, INPUT_CH), jnp.float32)

    rx, ry, rz = audionerf_forward(params, embedded_x, embedded_y, embedded_z)
    jax.block_until_ready((rx, ry, rz))

    # sanity-check against a plain-JAX reference of the same-precision math
    ref_x = nerf_ref(params, 0, embedded_x)
    ref_y = nerf_ref(params, 1, embedded_y)
    ref_z = nerf_ref(params, 2, embedded_z)
    np.testing.assert_allclose(np.asarray(rx), np.asarray(ref_x),
                               rtol=2e-2, atol=2e-2)
    np.testing.assert_allclose(np.asarray(ry), np.asarray(ref_y),
                               rtol=2e-2, atol=2e-2)
    np.testing.assert_allclose(np.asarray(rz), np.asarray(ref_z),
                               rtol=2e-2, atol=2e-2)

    assert rx.shape == (N, OUTPUT_CH) and ry.shape == (N, OUTPUT_CH) \
        and rz.shape == (N, OUTPUT_CH)
    print("KERNEL_OK")
</pallas_src>

<mosaic_0001>
module attributes {stable_mosaic.version = 11 : i64} {
  func.func @nerf_kernel(%arg0: i32, %arg1: i32, %arg2: memref<1x128x8xf32, #tpu.memory_space<vmem>>, %arg3: memref<1x8x256xf32, #tpu.memory_space<vmem>>, %arg4: memref<1x8x256xf32, #tpu.memory_space<vmem>>, %arg5: memref<1x7x256x256xbf16, #tpu.memory_space<vmem>>, %arg6: memref<1x8x256xf32, #tpu.memory_space<vmem>>, %arg7: memref<1x256x128xbf16, #tpu.memory_space<vmem>>, %arg8: memref<1x1x128xf32, #tpu.memory_space<vmem>>, %arg9: memref<1x128x128xf32, #tpu.memory_space<vmem>>) attributes {dimension_semantics = [#tpu.dimension_semantics<arbitrary>, #tpu.dimension_semantics<parallel>], iteration_bounds = array<i64: 3, 1>, scalar_prefetch = 0 : i64, scratch_operands = 0 : i64, tpu.core_type = #tpu.core_type<tc>, window_params = [{transform_indices = @transform_0, window_bounds = array<i64: 1, 128, 8>}, {transform_indices = @transform_1, window_bounds = array<i64: 1, 8, 256>}, {transform_indices = @transform_2, window_bounds = array<i64: 1, 8, 256>}, {transform_indices = @transform_3, window_bounds = array<i64: 1, 7, 256, 256>}, {transform_indices = @transform_4, window_bounds = array<i64: 1, 8, 256>}, {transform_indices = @transform_5, window_bounds = array<i64: 1, 256, 128>}, {transform_indices = @transform_6, window_bounds = array<i64: 1, 1, 128>}, {transform_indices = @transform_7, window_bounds = array<i64: 1, 128, 128>}]} {
    %c0 = arith.constant 0 : index
    %c0_0 = arith.constant 0 : index
    %c0_1 = arith.constant 0 : index
    %0 = vector.load %arg2[%c0, %c0_0, %c0_1] : memref<1x128x8xf32, #tpu.memory_space<vmem>>, vector<1x128x8xf32>
    %1 = vector.shape_cast %0 : vector<1x128x8xf32> to vector<128x8xf32>
    %c0_2 = arith.constant 0 : index
    %c0_3 = arith.constant 0 : index
    %c0_4 = arith.constant 0 : index
    %2 = vector.load %arg3[%c0_2, %c0_3, %c0_4] : memref<1x8x256xf32, #tpu.memory_space<vmem>>, vector<1x8x256xf32>
    %3 = vector.shape_cast %2 : vector<1x8x256xf32> to vector<8x256xf32>
    %c0_5 = arith.constant 0 : index
    %c0_6 = arith.constant 0 : index
    %c0_7 = arith.constant 0 : index
    %4 = vector.load %arg4[%c0_5, %c0_6, %c0_7] : memref<1x8x256xf32, #tpu.memory_space<vmem>>, vector<1x8x256xf32>
    %5 = vector.shape_cast %4 : vector<1x8x256xf32> to vector<8x256xf32>
    %6 = vector.extract_strided_slice %1 {offsets = [0, 0], sizes = [128, 1], strides = [1, 1]} : vector<128x8xf32> to vector<128x1xf32>
    %7 = vector.extract_strided_slice %3 {offsets = [0, 0], sizes = [1, 256], strides = [1, 1]} : vector<8x256xf32> to vector<1x256xf32>
    %8 = vector.broadcast %6 : vector<128x1xf32> to vector<128x256xf32>
    %9 = vector.broadcast %7 : vector<1x256xf32> to vector<128x256xf32>
    %10 = arith.mulf %8, %9 : vector<128x256xf32>
    %11 = vector.extract_strided_slice %1 {offsets = [0, 0], sizes = [128, 1], strides = [1, 1]} : vector<128x8xf32> to vector<128x1xf32>
    %12 = vector.extract_strided_slice %5 {offsets = [0, 0], sizes = [1, 256], strides = [1, 1]} : vector<8x256xf32> to vector<1x256xf32>
    %13 = vector.broadcast %11 : vector<128x1xf32> to vector<128x256xf32>
    %14 = vector.broadcast %12 : vector<1x256xf32> to vector<128x256xf32>
    %15 = arith.mulf %13, %14 : vector<128x256xf32>
    %16 = vector.extract_strided_slice %1 {offsets = [0, 1], sizes = [128, 1], strides = [1, 1]} : vector<128x8xf32> to vector<128x1xf32>
    %17 = vector.extract_strided_slice %3 {offsets = [1, 0], sizes = [1, 256], strides = [1, 1]} : vector<8x256xf32> to vector<1x256xf32>
    %18 = vector.broadcast %16 : vector<128x1xf32> to vector<128x256xf32>
    %19 = vector.broadcast %17 : vector<1x256xf32> to vector<128x256xf32>
    %20 = arith.mulf %18, %19 : vector<128x256xf32>
    %21 = arith.addf %10, %20 : vector<128x256xf32>
    %22 = vector.extract_strided_slice %1 {offsets = [0, 1], sizes = [128, 1], strides = [1, 1]} : vector<128x8xf32> to vector<128x1xf32>
    %23 = vector.extract_strided_slice %5 {offsets = [1, 0], sizes = [1, 256], strides = [1, 1]} : vector<8x256xf32> to vector<1x256xf32>
    %24 = vector.broadcast %22 : vector<128x1xf32> to vector<128x256xf32>
    %25 = vector.broadcast %23 : vector<1x256xf32> to vector<128x256xf32>
    %26 = arith.mulf %24, %25 : vector<128x256xf32>
    %27 = arith.addf %15, %26 : vector<128x256xf32>
    %28 = vector.extract_strided_slice %1 {offsets = [0, 2], sizes = [128, 1], strides = [1, 1]} : vector<128x8xf32> to vector<128x1xf32>
    %29 = vector.extract_strided_slice %3 {offsets = [2, 0], sizes = [1, 256], strides = [1, 1]} : vector<8x256xf32> to vector<1x256xf32>
    %30 = vector.broadcast %28 : vector<128x1xf32> to vector<128x256xf32>
    %31 = vector.broadcast %29 : vector<1x256xf32> to vector<128x256xf32>
    %32 = arith.mulf %30, %31 : vector<128x256xf32>
    %33 = arith.addf %21, %32 : vector<128x256xf32>
    %34 = vector.extract_strided_slice %1 {offsets = [0, 2], sizes = [128, 1], strides = [1, 1]} : vector<128x8xf32> to vector<128x1xf32>
    %35 = vector.extract_strided_slice %5 {offsets = [2, 0], sizes = [1, 256], strides = [1, 1]} : vector<8x256xf32> to vector<1x256xf32>
    %36 = vector.broadcast %34 : vector<128x1xf32> to vector<128x256xf32>
    %37 = vector.broadcast %35 : vector<1x256xf32> to vector<128x256xf32>
    %38 = arith.mulf %36, %37 : vector<128x256xf32>
    %39 = arith.addf %27, %38 : vector<128x256xf32>
    %40 = vector.extract_strided_slice %1 {offsets = [0, 3], sizes = [128, 1], strides = [1, 1]} : vector<128x8xf32> to vector<128x1xf32>
    %41 = vector.extract_strided_slice %3 {offsets = [3, 0], sizes = [1, 256], strides = [1, 1]} : vector<8x256xf32> to vector<1x256xf32>
    %42 = vector.broadcast %40 : vector<128x1xf32> to vector<128x256xf32>
    %43 = vector.broadcast %41 : vector<1x256xf32> to vector<128x256xf32>
    %44 = arith.mulf %42, %43 : vector<128x256xf32>
    %45 = arith.addf %33, %44 : vector<128x256xf32>
    %46 = vector.extract_strided_slice %1 {offsets = [0, 3], sizes = [128, 1], strides = [1, 1]} : vector<128x8xf32> to vector<128x1xf32>
    %47 = vector.extract_strided_slice %5 {offsets = [3, 0], sizes = [1, 256], strides = [1, 1]} : vector<8x256xf32> to vector<1x256xf32>
    %48 = vector.broadcast %46 : vector<128x1xf32> to vector<128x256xf32>
    %49 = vector.broadcast %47 : vector<1x256xf32> to vector<128x256xf32>
    %50 = arith.mulf %48, %49 : vector<128x256xf32>
    %51 = arith.addf %39, %50 : vector<128x256xf32>
    %52 = vector.extract_strided_slice %1 {offsets = [0, 4], sizes = [128, 1], strides = [1, 1]} : vector<128x8xf32> to vector<128x1xf32>
    %53 = vector.extract_strided_slice %3 {offsets = [4, 0], sizes = [1, 256], strides = [1, 1]} : vector<8x256xf32> to vector<1x256xf32>
    %54 = vector.broadcast %52 : vector<128x1xf32> to vector<128x256xf32>
    %55 = vector.broadcast %53 : vector<1x256xf32> to vector<128x256xf32>
    %56 = arith.mulf %54, %55 : vector<128x256xf32>
    %57 = arith.addf %45, %56 : vector<128x256xf32>
    %58 = vector.extract_strided_slice %1 {offsets = [0, 4], sizes = [128, 1], strides = [1, 1]} : vector<128x8xf32> to vector<128x1xf32>
    %59 = vector.extract_strided_slice %5 {offsets = [4, 0], sizes = [1, 256], strides = [1, 1]} : vector<8x256xf32> to vector<1x256xf32>
    %60 = vector.broadcast %58 : vector<128x1xf32> to vector<128x256xf32>
    %61 = vector.broadcast %59 : vector<1x256xf32> to vector<128x256xf32>
    %62 = arith.mulf %60, %61 : vector<128x256xf32>
    %63 = arith.addf %51, %62 : vector<128x256xf32>
    %c0_8 = arith.constant 0 : index
    %c0_9 = arith.constant 0 : index
    %c0_10 = arith.constant 0 : index
    %64 = vector.load %arg6[%c0_8, %c0_9, %c0_10] : memref<1x8x256xf32, #tpu.memory_space<vmem>>, vector<1x1x256xf32>
    %65 = vector.shape_cast %64 : vector<1x1x256xf32> to vector<256xf32>
    %66 = vector.shape_cast %65 : vector<256xf32> to vector<1x256xf32>
    %67 = vector.broadcast %66 : vector<1x256xf32> to vector<128x256xf32>
    %68 = arith.addf %57, %67 : vector<128x256xf32>
    %cst = arith.constant 0.000000e+00 : f32
    %69 = vector.broadcast %cst : f32 to vector<128x256xf32>
    %70 = arith.maximumf %68, %69 : vector<128x256xf32>
    %71 = arith.truncf %70 : vector<128x256xf32> to vector<128x256xbf16>
    %c0_11 = arith.constant 0 : index
    %c0_12 = arith.constant 0 : index
    %c0_13 = arith.constant 0 : index
    %c0_14 = arith.constant 0 : index
    %72 = vector.load %arg5[%c0_11, %c0_12, %c0_13, %c0_14] : memref<1x7x256x256xbf16, #tpu.memory_space<vmem>>, vector<1x1x256x256xbf16>
    %73 = vector.shape_cast %72 : vector<1x1x256x256xbf16> to vector<256x256xbf16>
    %cst_15 = arith.constant dense<0.000000e+00> : vector<128x256xf32>
    %74 = tpu.matmul %71, %73, %cst_15 {dimension_numbers = #tpu.dot_dimension_numbers<[1], [0], [0], [1], [0, 0, 1, 1], [], []>} : vector<128x256xbf16>, vector<256x256xbf16>, vector<128x256xf32> -> vector<128x256xf32>
    %c0_16 = arith.constant 0 : index
    %c1 = arith.constant 1 : index
    %c0_17 = arith.constant 0 : index
    %75 = vector.load %arg6[%c0_16, %c1, %c0_17] : memref<1x8x256xf32, #tpu.memory_space<vmem>>, vector<1x1x256xf32>
    %76 = vector.shape_cast %75 : vector<1x1x256xf32> to vector<256xf32>
    %77 = vector.shape_cast %76 : vector<256xf32> to vector<1x256xf32>
    %78 = vector.broadcast %77 : vector<1x256xf32> to vector<128x256xf32>
    %79 = arith.addf %74, %78 : vector<128x256xf32>
    %cst_18 = arith.constant 0.000000e+00 : f32
    %80 = vector.broadcast %cst_18 : f32 to vector<128x256xf32>
    %81 = arith.maximumf %79, %80 : vector<128x256xf32>
    %82 = arith.truncf %81 : vector<128x256xf32> to vector<128x256xbf16>
    %c0_19 = arith.constant 0 : index
    %c1_20 = arith.constant 1 : index
    %c0_21 = arith.constant 0 : index
    %c0_22 = arith.constant 0 : index
    %83 = vector.load %arg5[%c0_19, %c1_20, %c0_21, %c0_22] : memref<1x7x256x256xbf16, #tpu.memory_space<vmem>>, vector<1x1x256x256xbf16>
    %84 = vector.shape_cast %83 : vector<1x1x256x256xbf16> to vector<256x256xbf16>
    %cst_23 = arith.constant dense<0.000000e+00> : vector<128x256xf32>
    %85 = tpu.matmul %82, %84, %cst_23 {dimension_numbers = #tpu.dot_dimension_numbers<[1], [0], [0], [1], [0, 0, 1, 1], [], []>} : vector<128x256xbf16>, vector<256x256xbf16>, vector<128x256xf32> -> vector<128x256xf32>
    %c0_24 = arith.constant 0 : index
    %c2 = arith.constant 2 : index
    %c0_25 = arith.constant 0 : index
    %86 = vector.load %arg6[%c0_24, %c2, %c0_25] : memref<1x8x256xf32, #tpu.memory_space<vmem>>, vector<1x1x256xf32>
    %87 = vector.shape_cast %86 : vector<1x1x256xf32> to vector<256xf32>
    %88 = vector.shape_cast %87 : vector<256xf32> to vector<1x256xf32>
    %89 = vector.broadcast %88 : vector<1x256xf32> to vector<128x256xf32>
    %90 = arith.addf %85, %89 : vector<128x256xf32>
    %cst_26 = arith.constant 0.000000e+00 : f32
    %91 = vector.broadcast %cst_26 : f32 to vector<128x256xf32>
    %92 = arith.maximumf %90, %91 : vector<128x256xf32>
    %93 = arith.truncf %92 : vector<128x256xf32> to vector<128x256xbf16>
    %c0_27 = arith.constant 0 : index
    %c2_28 = arith.constant 2 : index
    %c0_29 = arith.constant 0 : index
    %c0_30 = arith.constant 0 : index
    %94 = vector.load %arg5[%c0_27, %c2_28, %c0_29, %c0_30] : memref<1x7x256x256xbf16, #tpu.memory_space<vmem>>, vector<1x1x256x256xbf16>
    %95 = vector.shape_cast %94 : vector<1x1x256x256xbf16> to vector<256x256xbf16>
    %cst_31 = arith.constant dense<0.000000e+00> : vector<128x256xf32>
    %96 = tpu.matmul %93, %95, %cst_31 {dimension_numbers = #tpu.dot_dimension_numbers<[1], [0], [0], [1], [0, 0, 1, 1], [], []>} : vector<128x256xbf16>, vector<256x256xbf16>, vector<128x256xf32> -> vector<128x256xf32>
    %c0_32 = arith.constant 0 : index
    %c3 = arith.constant 3 : index
    %c0_33 = arith.constant 0 : index
    %97 = vector.load %arg6[%c0_32, %c3, %c0_33] : memref<1x8x256xf32, #tpu.memory_space<vmem>>, vector<1x1x256xf32>
    %98 = vector.shape_cast %97 : vector<1x1x256xf32> to vector<256xf32>
    %99 = vector.shape_cast %98 : vector<256xf32> to vector<1x256xf32>
    %100 = vector.broadcast %99 : vector<1x256xf32> to vector<128x256xf32>
    %101 = arith.addf %96, %100 : vector<128x256xf32>
    %cst_34 = arith.constant 0.000000e+00 : f32
    %102 = vector.broadcast %cst_34 : f32 to vector<128x256xf32>
    %103 = arith.maximumf %101, %102 : vector<128x256xf32>
    %104 = arith.truncf %103 : vector<128x256xf32> to vector<128x256xbf16>
    %c0_35 = arith.constant 0 : index
    %c3_36 = arith.constant 3 : index
    %c0_37 = arith.constant 0 : index
    %c0_38 = arith.constant 0 : index
    %105 = vector.load %arg5[%c0_35, %c3_36, %c0_37, %c0_38] : memref<1x7x256x256xbf16, #tpu.memory_space<vmem>>, vector<1x1x256x256xbf16>
    %106 = vector.shape_cast %105 : vector<1x1x256x256xbf16> to vector<256x256xbf16>
    %cst_39 = arith.constant dense<0.000000e+00> : vector<128x256xf32>
    %107 = tpu.matmul %104, %106, %cst_39 {dimension_numbers = #tpu.dot_dimension_numbers<[1], [0], [0], [1], [0, 0, 1, 1], [], []>} : vector<128x256xbf16>, vector<256x256xbf16>, vector<128x256xf32> -> vector<128x256xf32>
    %c0_40 = arith.constant 0 : index
    %c4 = arith.constant 4 : index
    %c0_41 = arith.constant 0 : index
    %108 = vector.load %arg6[%c0_40, %c4, %c0_41] : memref<1x8x256xf32, #tpu.memory_space<vmem>>, vector<1x1x256xf32>
    %109 = vector.shape_cast %108 : vector<1x1x256xf32> to vector<256xf32>
    %110 = vector.shape_cast %109 : vector<256xf32> to vector<1x256xf32>
    %111 = vector.broadcast %110 : vector<1x256xf32> to vector<128x256xf32>
    %112 = arith.addf %107, %111 : vector<128x256xf32>
    %cst_42 = arith.constant 0.000000e+00 : f32
    %113 = vector.broadcast %cst_42 : f32 to vector<128x256xf32>
    %114 = arith.maximumf %112, %113 : vector<128x256xf32>
    %115 = arith.truncf %114 : vector<128x256xf32> to vector<128x256xbf16>
    %c0_43 = arith.constant 0 : index
    %c4_44 = arith.constant 4 : index
    %c0_45 = arith.constant 0 : index
    %c0_46 = arith.constant 0 : index
    %116 = vector.load %arg5[%c0_43, %c4_44, %c0_45, %c0_46] : memref<1x7x256x256xbf16, #tpu.memory_space<vmem>>, vector<1x1x256x256xbf16>
    %117 = vector.shape_cast %116 : vector<1x1x256x256xbf16> to vector<256x256xbf16>
    %cst_47 = arith.constant dense<0.000000e+00> : vector<128x256xf32>
    %118 = tpu.matmul %115, %117, %cst_47 {dimension_numbers = #tpu.dot_dimension_numbers<[1], [0], [0], [1], [0, 0, 1, 1], [], []>} : vector<128x256xbf16>, vector<256x256xbf16>, vector<128x256xf32> -> vector<128x256xf32>
    %c0_48 = arith.constant 0 : index
    %c5 = arith.constant 5 : index
    %c0_49 = arith.constant 0 : index
    %119 = vector.load %arg6[%c0_48, %c5, %c0_49] : memref<1x8x256xf32, #tpu.memory_space<vmem>>, vector<1x1x256xf32>
    %120 = vector.shape_cast %119 : vector<1x1x256xf32> to vector<256xf32>
    %121 = vector.shape_cast %120 : vector<256xf32> to vector<1x256xf32>
    %122 = vector.broadcast %121 : vector<1x256xf32> to vector<128x256xf32>
    %123 = arith.addf %118, %122 : vector<128x256xf32>
    %124 = arith.addf %123, %63 : vector<128x256xf32>
    %cst_50 = arith.constant 0.000000e+00 : f32
    %125 = vector.broadcast %cst_50 : f32 to vector<128x256xf32>
    %126 = arith.maximumf %124, %125 : vector<128x256xf32>
    %127 = arith.truncf %126 : vector<128x256xf32> to vector<128x256xbf16>
    %c0_51 = arith.constant 0 : index
    %c5_52 = arith.constant 5 : index
    %c0_53 = arith.constant 0 : index
    %c0_54 = arith.constant 0 : index
    %128 = vector.load %arg5[%c0_51, %c5_52, %c0_53, %c0_54] : memref<1x7x256x256xbf16, #tpu.memory_space<vmem>>, vector<1x1x256x256xbf16>
    %129 = vector.shape_cast %128 : vector<1x1x256x256xbf16> to vector<256x256xbf16>
    %cst_55 = arith.constant dense<0.000000e+00> : vector<128x256xf32>
    %130 = tpu.matmul %127, %129, %cst_55 {dimension_numbers = #tpu.dot_dimension_numbers<[1], [0], [0], [1], [0, 0, 1, 1], [], []>} : vector<128x256xbf16>, vector<256x256xbf16>, vector<128x256xf32> -> vector<128x256xf32>
    %c0_56 = arith.constant 0 : index
    %c6 = arith.constant 6 : index
    %c0_57 = arith.constant 0 : index
    %131 = vector.load %arg6[%c0_56, %c6, %c0_57] : memref<1x8x256xf32, #tpu.memory_space<vmem>>, vector<1x1x256xf32>
    %132 = vector.shape_cast %131 : vector<1x1x256xf32> to vector<256xf32>
    %133 = vector.shape_cast %132 : vector<256xf32> to vector<1x256xf32>
    %134 = vector.broadcast %133 : vector<1x256xf32> to vector<128x256xf32>
    %135 = arith.addf %130, %134 : vector<128x256xf32>
    %cst_58 = arith.constant 0.000000e+00 : f32
    %136 = vector.broadcast %cst_58 : f32 to vector<128x256xf32>
    %137 = arith.maximumf %135, %136 : vector<128x256xf32>
    %138 = arith.truncf %137 : vector<128x256xf32> to vector<128x256xbf16>
    %c0_59 = arith.constant 0 : index
    %c6_60 = arith.constant 6 : index
    %c0_61 = arith.constant 0 : index
    %c0_62 = arith.constant 0 : index
    %139 = vector.load %arg5[%c0_59, %c6_60, %c0_61, %c0_62] : memref<1x7x256x256xbf16, #tpu.memory_space<vmem>>, vector<1x1x256x256xbf16>
    %140 = vector.shape_cast %139 : vector<1x1x256x256xbf16> to vector<256x256xbf16>
    %cst_63 = arith.constant dense<0.000000e+00> : vector<128x256xf32>
    %141 = tpu.matmul %138, %140, %cst_63 {dimension_numbers = #tpu.dot_dimension_numbers<[1], [0], [0], [1], [0, 0, 1, 1], [], []>} : vector<128x256xbf16>, vector<256x256xbf16>, vector<128x256xf32> -> vector<128x256xf32>
    %c0_64 = arith.constant 0 : index
    %c7 = arith.constant 7 : index
    %c0_65 = arith.constant 0 : index
    %142 = vector.load %arg6[%c0_64, %c7, %c0_65] : memref<1x8x256xf32, #tpu.memory_space<vmem>>, vector<1x1x256xf32>
    %143 = vector.shape_cast %142 : vector<1x1x256xf32> to vector<256xf32>
    %144 = vector.shape_cast %143 : vector<256xf32> to vector<1x256xf32>
    %145 = vector.broadcast %144 : vector<1x256xf32> to vector<128x256xf32>
    %146 = arith.addf %141, %145 : vector<128x256xf32>
    %cst_66 = arith.constant 0.000000e+00 : f32
    %147 = vector.broadcast %cst_66 : f32 to vector<128x256xf32>
    %148 = arith.maximumf %146, %147 : vector<128x256xf32>
    %149 = arith.truncf %148 : vector<128x256xf32> to vector<128x256xbf16>
    %c0_67 = arith.constant 0 : index
    %c0_68 = arith.constant 0 : index
    %c0_69 = arith.constant 0 : index
    %150 = vector.load %arg7[%c0_67, %c0_68, %c0_69] : memref<1x256x128xbf16, #tpu.memory_space<vmem>>, vector<1x256x128xbf16>
    %151 = vector.shape_cast %150 : vector<1x256x128xbf16> to vector<256x128xbf16>
    %cst_70 = arith.constant dense<0.000000e+00> : vector<128x128xf32>
    %152 = tpu.matmul %149, %151, %cst_70 {dimension_numbers = #tpu.dot_dimension_numbers<[1], [0], [0], [1], [0, 0, 1, 1], [], []>} : vector<128x256xbf16>, vector<256x128xbf16>, vector<128x128xf32> -> vector<128x128xf32>
    %c0_71 = arith.constant 0 : index
    %c0_72 = arith.constant 0 : index
    %c0_73 = arith.constant 0 : index
    %153 = vector.load %arg8[%c0_71, %c0_72, %c0_73] : memref<1x1x128xf32, #tpu.memory_space<vmem>>, vector<1x1x128xf32>
    %154 = vector.shape_cast %153 : vector<1x1x128xf32> to vector<1x128xf32>
    %155 = vector.broadcast %154 : vector<1x128xf32> to vector<128x128xf32>
    %156 = arith.addf %152, %155 : vector<128x128xf32>
    %c0_74 = arith.constant 0 : index
    %c0_75 = arith.constant 0 : index
    %c0_76 = arith.constant 0 : index
    %157 = vector.load %arg9[%c0_74, %c0_75, %c0_76] : memref<1x128x128xf32, #tpu.memory_space<vmem>>, vector<1x128x128xf32>
    %158 = vector.shape_cast %157 : vector<1x128x128xf32> to vector<128x128xf32>
    %159 = vector.shape_cast %156 : vector<128x128xf32> to vector<1x128x128xf32>
    tpu.vector_store %arg9[%c0_74, %c0_75, %c0_76], %159 {strides = array<i32>} : memref<1x128x128xf32, #tpu.memory_space<vmem>>, vector<1x128x128xf32>,
    return
  }
  func.func @transform_0(%arg0: i32, %arg1: i32) -> (i32, i32, i32) {
    %c0_i32 = arith.constant 0 : i32
    %c0_i32_0 = arith.constant 0 : i32
    return %arg0, %arg1, %c0_i32 : i32, i32, i32
  }
  func.func @transform_1(%arg0: i32, %arg1: i32) -> (i32, i32, i32) {
    %c0_i32 = arith.constant 0 : i32
    %c0_i32_0 = arith.constant 0 : i32
    %c0_i32_1 = arith.constant 0 : i32
    return %arg0, %c0_i32, %c0_i32_0 : i32, i32, i32
  }
  func.func @transform_2(%arg0: i32, %arg1: i32) -> (i32, i32, i32) {
    %c0_i32 = arith.constant 0 : i32
    %c0_i32_0 = arith.constant 0 : i32
    %c0_i32_1 = arith.constant 0 : i32
    return %arg0, %c0_i32, %c0_i32_0 : i32, i32, i32
  }
  func.func @transform_3(%arg0: i32, %arg1: i32) -> (i32, i32, i32, i32) {
    %c0_i32 = arith.constant 0 : i32
    %c0_i32_0 = arith.constant 0 : i32
    %c0_i32_1 = arith.constant 0 : i32
    %c0_i32_2 = arith.constant 0 : i32
    return %arg0, %c0_i32, %c0_i32_0, %c0_i32_1 : i32, i32, i32, i32
  }
  func.func @transform_4(%arg0: i32, %arg1: i32) -> (i32, i32, i32) {
    %c0_i32 = arith.constant 0 : i32
    %c0_i32_0 = arith.constant 0 : i32
    %c0_i32_1 = arith.constant 0 : i32
    return %arg0, %c0_i32, %c0_i32_0 : i32, i32, i32
  }
  func.func @transform_5(%arg0: i32, %arg1: i32) -> (i32, i32, i32) {
    %c0_i32 = arith.constant 0 : i32
    %c0_i32_0 = arith.constant 0 : i32
    %c0_i32_1 = arith.constant 0 : i32
    return %arg0, %c0_i32, %c0_i32_0 : i32, i32, i32
  }
  func.func @transform_6(%arg0: i32, %arg1: i32) -> (i32, i32, i32) {
    %c0_i32 = arith.constant 0 : i32
    %c0_i32_0 = arith.constant 0 : i32
    %c0_i32_1 = arith.constant 0 : i32
    return %arg0, %c0_i32, %c0_i32_0 : i32, i32, i32
  }
  func.func @transform_7(%arg0: i32, %arg1: i32) -> (i32, i32, i32) {
    %c0_i32 = arith.constant 0 : i32
    %c0_i32_0 = arith.constant 0 : i32
    return %arg0, %arg1, %c0_i32 : i32, i32, i32
  }
}

</mosaic_0001>

<bundles_post_ra>
// kernel: tpu_custom_call.1
= control target key start
LH: loop header
LB: loop body
LE: loop exit
PB: predicated region body
PF: predicated region fallthrough
CT: control target
= control target key end

     0   :  { %s7987_s0 = inlined_call_operand.vmem [shape: f32[3,128,8], index: 0, kind: input, shape index: {}]   ;;  %s7988_s1 = inlined_call_operand.hbm [shape: f32[3,8,256], index: 1, kind: input, shape index: {}]   ;;  %s7989_s2 = inlined_call_operand.hbm [shape: f32[3,8,256], index: 2, kind: input, shape index: {}]   ;;  %s7990_s3 = inlined_call_operand.hbm [shape: bf16[3,7,256,256], index: 3, kind: input, shape index: {}]   ;;  %s7991_s4 = inlined_call_operand.hbm [shape: f32[3,8,256], index: 4, kind: input, shape index: {}]   ;;  %s7992_s5 = inlined_call_operand.hbm [shape: bf16[3,256,128], index: 5, kind: input, shape index: {}]   ;;  %s7993_s6 = inlined_call_operand.hbm [shape: f32[3,1,128], index: 6, kind: input, shape index: {}]   ;;  %s7994_s7 = inlined_call_operand.hbm [shape: f32[3,128,128], index: 7, kind: output, shape index: {}]  }
   0x1   :  { %8053 = sst [smem:[#allocation54_spill]] %s7989_s2 }
   0x2   :  { %8054 = sst [smem:[#allocation55_spill]] %s7994_s7 }
   0x3   :  { %12 = vsyncpa [#allocation3], 0 }
   0x4   :  { %14 = vsyncpa [#allocation3 + $0x1], 0 }
   0x5   :  { %15 = vsyncpa [#allocation6], 0 }
   0x6   :  { %17 = vsyncpa [#allocation6 + $0x1], 0 }
   0x7   :  { %18 = vsyncpa [#allocation9], 0 }
   0x8   :  { %20 = vsyncpa [#allocation9 + $0x1], 0 }
   0x9   :  { %21 = vsyncpa [#allocation12], 0 }
   0xa   :  { %23 = vsyncpa [#allocation12 + $0x1], 0 }
   0xb   :  { %24 = vsyncpa [#allocation4], 0 }
   0xc   :  { %26 = vsyncpa [#allocation4 + $0x1], 0  ;;  %s6083_s24 = smov 0   ;;  %s6085_s25 = smov 0  }
   0xd   :  { %s6087_s26 = smov 0   ;;  %s6089_s27 = smov 0  }
   0xe   :  { %s6091_s28 = smov 0   ;;  %s6093_s29 = smov 0  }
   0xf LB: > { %8055 = sst [smem:[#allocation19_spill]] %s6003_s24  ;;  %s6114_s30 = sadd.s32 4294967295, %s6023_s29   ;;  %s6023_s29 = sphi %s6093_s29, %s32_s29   ;;  %s6019_s28 = sphi %s6091_s28, %s8183_s28   ;;  %s6015_s27 = sphi %s6089_s27, %s8182_s27   ;;  %s6011_s26 = sphi %s6087_s26, %s8178_s26   ;;  %s6007_s25 = sphi %s6085_s25, %s8181_s25   ;;  %s6003_s24 = sphi %s6083_s24, %s8180_s24  }
  0x10   : > { %8056 = sst [smem:[#allocation20_spill]] %s6011_s26  ;;  %s4708_s8 = sadd.s32 4294967294, %s6023_s29  }
  0x11   : > { %8057 = sst [smem:[#allocation21_spill]] %s6023_s29  ;;  %s44_s9 = sadd.s32 1, %s6019_s28 }
  0x12   : > { %s79_s10 = sadd.s32 1, %s6011_s26  ;;  %p46_p0 = scmp.ge.s32.totalorder %s44_s9, 3 }
  0x13   : > { %p86_p1 = scmp.ne.s32.totalorder %s6011_s26, %s6007_s25  ;;  %p87_p2 = scmp.eq.s32.totalorder %s6023_s29, 0 }
  0x14   : > { %p92_p3 = scmp.ne.s32.totalorder %s6007_s25, %s6003_s24  ;;  %s8185_s9 = smov (%p46_p0, %s44_s9), 0 }
  0x15   : > { %8058 = sst [smem:[#allocation22_spill]] %s8185_s9  ;;  %p6126_p4 = por %p87_p2, %p86_p1 }
  0x16   : > { %p93_p5 = scmp.eq.s32.totalorder %s6114_s30, 0  ;;  %s76_s12 = ssub.s32 %s6019_s28, %s8185_s9 }
  0x17   : > { %p248_p6 = scmp.eq.s32.totalorder %s6114_s30, 2  ;;  %p77_p7 = scmp.eq.s32.totalorder %s76_s12, 0 }
  0x18   : > { %p6134_p8 = por %p93_p5, %p92_p3  ;;  %p254_p10 = scmp.eq.s32.totalorder %s4708_s8, 2 }
  0x19   : > { %p6138_p9 = por %p248_p6, %p86_p1  ;;  %p5288_p12 = scmp.lt.s32.totalorder %s6023_s29, 3 }
  0x1a   : > { %s8060_s13 = scalar_select %p6134_p8, 1, 0 }
  0x1b   : > { %s8061_s14 = scalar_select %p6138_p9, 1, 0 }
  0x1c   : > { %s6143_s15 = scalar_select %p77_p7, %s6011_s26, %s79_s10  }
  0x1d   : > { %p6145_p11 = por %p254_p10, %p92_p3  ;;  %s6151_s17 = sand.u32 1, %s6011_s26  }
  0x1e   : > { %8062 = sst [smem:[#allocation23_spill]] %s6143_s15  ;;  %s6154_s18 = sshll.u32 %s6151_s17, 4 }
  0x1f   : > { %s8063_s16 = scalar_select %p6145_p11, 1, 0 }
  0x20   : > { %s6157_s19 = sshll.u32 %s6019_s28, 8  ;;  %p6161_p13 = pnand %p5288_p12, %p6126_p4 }
  0x21   : > { %8064 = sst [smem:[#allocation24_spill]] %s8063_s16  ;;  %s7998_s21 = sand.u32 1, %s6023_s29  }
  0x22   : > { %s8065_s20 = scalar_select %p6161_p13, 1, 0 }
  0x23   : > { %s8066_s2 = sld [smem:[#allocation54_spill]]  ;;  %s310_s10 = scalar_lea.vmem [#allocation5], %s6154_s18 }
  0x24   : > { %s318_s12 = sshll.u32 %s310_s10, 4  ;;  %s6179_s11 = scalar_lea.sflag [#allocation6], %s7998_s21  ;;  %s6174_s12 = int_to_ptr.vmem [resolvable:$true] %s318_s12 }
  0x25   : > { %p6185_p3 = pneg %p6161_p13 }
  0x29   : > { %s6170_s8 = scalar_lea.hbm %s8066_s2, %s6157_s19  ;;  %s5754_s15 = scalar_lea.hbm %s8066_s2, 768 }
  0x2a   : > { %s5749_s9 = scalar_lea.hbm %s6170_s8, 256  ;;  %p5755_p6 = scmp.lt.u32.totalorder %s6170_s8, %s8066_s2 }
  0x2b   : > { %p5750_p2 = scmp.ne.s32.totalorder %s6170_s8, %s5749_s9  ;;  %p5756_p7 = scmp.lt.u32.totalorder %s5754_s15, %s5749_s9 }
  0x2c   : > { %p5758_p12 = scmp.lt.u32.totalorder %s5749_s9, %s6170_s8 }
  0x2d   : > { %p5752_p4 = pnand %p6185_p3, %p5750_p2  ;;  %p5757_p10 = por %p5756_p7, %p5755_p6 }
  0x2f   : > { %p5753_p5 = pneg %p5752_p4  ;;  %p5759_p0 = por %p5758_p12, %p5757_p10 }
  0x31   : > { %p5760_p1 = pnand %p5759_p0, %p5753_p5 }
  0x33   : > { %5763 = shalt.err (!%p5760_p1)
}
  0x34   : > { %s5764_s21 = scalar_lea.vmem %s6174_s12, 256  ;;  %s6025_s23 = smov [#allocation5]  }
  0x35   : > { %p5765_p2 = scmp.ne.s32.totalorder %s6174_s12, %s5764_s21  ;;  %s5769_s10 = sshll.u32 %s6025_s23, 4  ;;  %s5770_s10 = int_to_ptr.vmem [resolvable:$false] %s5769_s10 }
  0x36   : > { %s5771_s26 = scalar_lea.vmem %s5770_s10, 512  ;;  %p5772_p9 = scmp.lt.s32.totalorder %s6174_s12, %s5770_s10 }
  0x37   : > { %p5767_p4 = pnand %p5765_p2, %p6185_p3  ;;  %p5773_p8 = scmp.lt.s32.totalorder %s5771_s26, %s5764_s21 }
  0x39   : > { %p5768_p11 = pneg %p5767_p4  ;;  %p5774_p6 = por %p5773_p8, %p5772_p9 }
  0x3b   : > { %p5775_p7 = pnand %p5774_p6, %p5768_p11 }
  0x3d   : > { %5778 = shalt.err (!%p5775_p7)
}
  0x3e   : > { %5271 = dma.hbm_to_vmem [thread:$0]  (!%p6161_p13), %s6170_s8, 256, %s6174_s12, %s6179_s11  }
  0x3f   : > { %p8068_p0 = scmp.lt.s32.totalorder %s6023_s29, 4  ;;  %p8069_p1 = scmp.ge.s32.totalorder %s6023_s29, 1 }
  0x40   : > { %s6221_s21 = scalar_lea.hbm %s7991_s4, %s6157_s19  ;;  %s350_s23 = scalar_lea.vmem [#allocation8], %s6154_s18 }
  0x41   : > { %p6213_p5 = pnand %p8069_p1, %p8068_p0  ;;  %s358_s10 = sshll.u32 %s350_s23, 4  ;;  %s359_s10 = int_to_ptr.vmem [resolvable:$true] %s358_s10 }
  0x42   : > { %s8071_s26 = sand.u32 1, %s6023_s29   ;;  %s5779_s12 = scalar_lea.hbm %s6221_s21, 256 }
  0x43   : > { %s8070_s9 = scalar_select %p6213_p5, 1, 0 }
  0x44   : > { %s6226_s8 = scalar_lea.sflag [#allocation9], %s8071_s26  ;;  %p5780_p8 = scmp.ne.s32.totalorder %s6221_s21, %s5779_s12 }
  0x45   : > { %s5784_s15 = scalar_lea.hbm %s7991_s4, 768  ;;  %p5785_p10 = scmp.lt.u32.totalorder %s6221_s21, %s7991_s4 }
  0x46   : > { %p5782_p9 = pnand %p5780_p8, %p6185_p3  ;;  %p5786_p12 = scmp.lt.u32.totalorder %s5784_s15, %s5779_s12 }
  0x47   : > { %p5788_p4 = scmp.lt.u32.totalorder %s5779_s12, %s6221_s21 }
  0x48   : > { %p5783_p11 = pneg %p5782_p9  ;;  %p5787_p2 = por %p5786_p12, %p5785_p10 }
  0x4a   : > { %p5789_p6 = por %p5788_p4, %p5787_p2 }
  0x4c   : > { %p5790_p7 = pnand %p5789_p6, %p5783_p11 }
  0x4e   : > { %5793 = shalt.err (!%p5790_p7)
}
  0x4f   : > { %s5794_s23 = scalar_lea.vmem %s359_s10, 256  ;;  %s6026_s26 = smov [#allocation8]  }
  0x50   : > { %p5795_p0 = scmp.ne.s32.totalorder %s359_s10, %s5794_s23  ;;  %s5799_s29 = sshll.u32 %s6026_s26, 4  ;;  %s5800_s29 = int_to_ptr.vmem [resolvable:$false] %s5799_s29 }
  0x51   : > { %s5801_s2 = scalar_lea.vmem %s5800_s29, 512  ;;  %p5802_p9 = scmp.lt.s32.totalorder %s359_s10, %s5800_s29 }
  0x52   : > { %p5797_p1 = pnand %p5795_p0, %p6185_p3  ;;  %p5803_p5 = scmp.lt.s32.totalorder %s5801_s2, %s5794_s23 }
  0x54   : > { %p5798_p8 = pneg %p5797_p1  ;;  %p5804_p13 = por %p5803_p5, %p5802_p9 }
  0x56   : > { %p5805_p10 = pnand %p5804_p13, %p5798_p8 }
  0x58   : > { %5808 = shalt.err (!%p5805_p10)
}
  0x59   : > { %p8072_p12 = scmp.ne.s32.totalorder %s8065_s20, 0  ;;  %s6250_s12 = scalar_lea.hbm %s7988_s1, %s6157_s19 }
  0x5a   : > { %s291_s29 = scalar_lea.vmem [#allocation2], %s6154_s18  ;;  %s5248_s16 = smul.u32 1792, %s6151_s17 }
  0x5b   : > { %5277 = dma.hbm_to_vmem [thread:$0]  (!%p8072_p12), %s6221_s21, 256, %s359_s10, %s6226_s8  }
  0x5c   : > { %s299_s15 = sshll.u32 %s291_s29, 4  ;;  %s288_s23 = scalar_lea.sflag [#allocation3], %s6151_s17  ;;  %s6253_s15 = int_to_ptr.vmem [resolvable:$true] %s299_s15 }
  0x5d   : > { %s5809_s26 = scalar_lea.hbm %s6250_s12, 256  ;;  %s5814_s19 = scalar_lea.hbm %s7988_s1, 768 }
  0x5e   : > { %p5810_p13 = scmp.ne.s32.totalorder %s6250_s12, %s5809_s26  ;;  %p5815_p2 = scmp.lt.u32.totalorder %s6250_s12, %s7988_s1 }
  0x5f   : > { %p5816_p4 = scmp.lt.u32.totalorder %s5814_s19, %s5809_s26  ;;  %p5818_p7 = scmp.lt.u32.totalorder %s5809_s26, %s6250_s12 }
  0x60   : > { %p5812_p5 = pnand %p5810_p13, %p6185_p3 }
  0x61   : > { %p5817_p6 = por %p5816_p4, %p5815_p2 }
  0x62   : > { %p5813_p11 = pneg %p5812_p5 }
  0x63   : > { %p5819_p0 = por %p5818_p7, %p5817_p6 }
  0x65   : > { %p5820_p1 = pnand %p5819_p0, %p5813_p11 }
  0x67   : > { %5823 = shalt.err (!%p5820_p1)
}
  0x68   : > { %s5824_s18 = scalar_lea.vmem %s6253_s15, 256  ;;  %s6027_s24 = smov [#allocation2]  }
  0x69   : > { %p5825_p8 = scmp.ne.s32.totalorder %s6253_s15, %s5824_s18  ;;  %s5829_s29 = sshll.u32 %s6027_s24, 4  ;;  %s5830_s29 = int_to_ptr.vmem [resolvable:$false] %s5829_s29 }
  0x6a   : > { %s5831_s21 = scalar_lea.vmem %s5830_s29, 512  ;;  %p5832_p13 = scmp.lt.s32.totalorder %s6253_s15, %s5830_s29 }
  0x6b   : > { %p5827_p9 = pnand %p5825_p8, %p6185_p3  ;;  %p5833_p5 = scmp.lt.s32.totalorder %s5831_s21, %s5824_s18 }
  0x6d   : > { %p5828_p10 = pneg %p5827_p9  ;;  %p5834_p2 = por %p5833_p5, %p5832_p13 }
  0x6f   : > { %p5835_p4 = pnand %p5834_p2, %p5828_p10 }
  0x71   : > { %5838 = shalt.err (!%p5835_p4)
}
  0x72   : > { %5268 = dma.hbm_to_vmem [thread:$0]  (!%p8072_p12), %s6250_s12, 256, %s6253_s15, %s288_s23  }
  0x73   : > { %s5249_s26 = smul.u32 28672, %s6019_s28  ;;  %s329_s10 = scalar_lea.vmem [#allocation7], %s5248_s16 }
  0x74   : > { %s336_s19 = sshll.u32 %s329_s10, 4  ;;  %s4721_s24 = sshll.u32 %s6151_s17, 7  ;;  %s6286_s19 = int_to_ptr.vmem [resolvable:$true] %s336_s19 }
  0x75   : > { %s6284_s18 = scalar_lea.hbm %s7990_s3, %s5249_s26  ;;  %s5844_s16 = scalar_lea.hbm %s7990_s3, 86016 }
  0x76   : > { %s5839_s29 = scalar_lea.hbm %s6284_s18, 28672  ;;  %p5845_p0 = scmp.lt.u32.totalorder %s6284_s18, %s7990_s3 }
  0x77   : > { %p5840_p11 = scmp.ne.s32.totalorder %s6284_s18, %s5839_s29  ;;  %p5846_p1 = scmp.lt.u32.totalorder %s5844_s16, %s5839_s29 }
  0x78   : > { %p5848_p9 = scmp.lt.u32.totalorder %s5839_s29, %s6284_s18 }
  0x79   : > { %p5842_p6 = pnand %p5840_p11, %p6185_p3  ;;  %p5847_p8 = por %p5846_p1, %p5845_p0 }
  0x7b   : > { %p5843_p7 = pneg %p5842_p6  ;;  %p5849_p10 = por %p5848_p9, %p5847_p8 }
  0x7d   : > { %p5850_p13 = pnand %p5849_p10, %p5843_p7 }
  0x7f   : > { %5853 = shalt.err (!%p5850_p13)
}
  0x80   : > { %s5854_s26 = scalar_lea.vmem %s6286_s19, 28672  ;;  %s6028_s10 = smov [#allocation7]  }
  0x81   : > { %p5855_p5 = scmp.ne.s32.totalorder %s6286_s19, %s5854_s26  ;;  %s5859_s2 = sshll.u32 %s6028_s10, 4  ;;  %s5860_s2 = int_to_ptr.vmem [resolvable:$false] %s5859_s2 }
  0x82   : > { %s5861_s7 = scalar_lea.vmem %s5860_s2, 57344  ;;  %p5862_p11 = scmp.lt.s32.totalorder %s6286_s19, %s5860_s2 }
  0x83   : > { %p5857_p2 = pnand %p5855_p5, %p6185_p3  ;;  %p5863_p6 = scmp.lt.s32.totalorder %s5861_s7, %s5854_s26 }
  0x85   : > { %p5858_p4 = pneg %p5857_p2  ;;  %p5864_p0 = por %p5863_p6, %p5862_p11 }
  0x87   : > { %p5865_p1 = pnand %p5864_p0, %p5858_p4 }
  0x89   : > { %5868 = shalt.err (!%p5865_p1)
}
  0x8a   : > { %s6029_s29 = smov 128   ;;  %s6030_s12 = smov 8  }
  0x8b   : > { %5274 = dma.hbm_to_vmem [thread:$0]  (!%p8072_p12), %s6284_s18, 28672, %s6286_s19, %s6179_s11, %s6029_s29, %s6029_s29, %s6030_s12  }
  0x8c   : > { %s5181_s15 = sshll.u32 %s6019_s28, 11  ;;  %s369_s26 = scalar_lea.vmem [#allocation10], %s4721_s24 }
  0x8d   : > { %s6315_s21 = scalar_lea.hbm %s7992_s5, %s5181_s15  ;;  %s376_s10 = sshll.u32 %s369_s26, 4  ;;  %s6319_s10 = int_to_ptr.vmem [resolvable:$true] %s376_s10 }
  0x8e   : > { %s5869_s2 = scalar_lea.hbm %s6315_s21, 2048  ;;  %s5874_s18 = scalar_lea.hbm %s7992_s5, 6144 }
  0x8f   : > { %p5870_p7 = scmp.ne.s32.totalorder %s6315_s21, %s5869_s2  ;;  %p5875_p10 = scmp.lt.u32.totalorder %s6315_s21, %s7992_s5 }
  0x90   : > { %p5876_p13 = scmp.lt.u32.totalorder %s5874_s18, %s5869_s2  ;;  %p5878_p2 = scmp.lt.u32.totalorder %s5869_s2, %s6315_s21 }
  0x91   : > { %p5872_p8 = pnand %p5870_p7, %p6185_p3 }
  0x92   : > { %p5877_p5 = por %p5876_p13, %p5875_p10 }
  0x93   : > { %p5873_p9 = pneg %p5872_p8 }
  0x94   : > { %p5879_p4 = por %p5878_p2, %p5877_p5 }
  0x96   : > { %p5880_p11 = pnand %p5879_p4, %p5873_p9 }
  0x98   : > { %5883 = shalt.err (!%p5880_p11)
}
  0x99   : > { %s5884_s24 = scalar_lea.vmem %s6319_s10, 2048  ;;  %s6031_s12 = smov [#allocation10]  }
  0x9a   : > { %p5885_p6 = scmp.ne.s32.totalorder %s6319_s10, %s5884_s24  ;;  %s5889_s15 = sshll.u32 %s6031_s12, 4  ;;  %s5890_s15 = int_to_ptr.vmem [resolvable:$false] %s5889_s15 }
  0x9b   : > { %s5891_s16 = scalar_lea.vmem %s5890_s15, 4096  ;;  %p5892_p7 = scmp.lt.s32.totalorder %s6319_s10, %s5890_s15 }
  0x9c   : > { %p5887_p0 = pnand %p5885_p6, %p6185_p3  ;;  %p5893_p8 = scmp.lt.s32.totalorder %s5891_s16, %s5884_s24 }
  0x9e   : > { %p5888_p1 = pneg %p5887_p0  ;;  %p5894_p10 = por %p5893_p8, %p5892_p7 }
  0xa0   : > { %p5895_p13 = pnand %p5894_p10, %p5888_p1 }
  0xa2   : > { %5898 = shalt.err (!%p5895_p13)
}
  0xa3   : > { %s6032_s23 = smov 64   ;;  %s6033_s26 = smov 4  }
  0xa4   : > { %5280 = dma.hbm_to_vmem [thread:$0]  (!%p8072_p12), %s6315_s21, 2048, %s6319_s10, %s6226_s8, %s6032_s23, %s6032_s23, %s6033_s26  }
  0xa5   : > { %s4724_s2 = sshll.u32 %s6019_s28, 4  ;;  %s389_s7 = scalar_lea.vmem [#allocation11], %s6151_s17 }
  0xa6   : > { %s6347_s18 = scalar_lea.hbm %s7993_s6, %s4724_s2  ;;  %s396_s29 = sshll.u32 %s389_s7, 4  ;;  %s397_s29 = int_to_ptr.vmem [resolvable:$true] %s396_s29 }
  0xa7   : > { %s387_s24 = scalar_lea.sflag [#allocation12], %s6151_s17  ;;  %s5899_s12 = scalar_lea.hbm %s6347_s18, 16 }
  0xa8   : > { %p5900_p9 = scmp.ne.s32.totalorder %s6347_s18, %s5899_s12  ;;  %s5904_s10 = scalar_lea.hbm %s7993_s6, 48 }
  0xa9   : > { %p5905_p4 = scmp.lt.u32.totalorder %s6347_s18, %s7993_s6  ;;  %p5906_p11 = scmp.lt.u32.totalorder %s5904_s10, %s5899_s12 }
  0xaa   : > { %p5902_p5 = pnand %p5900_p9, %p6185_p3  ;;  %p5908_p0 = scmp.lt.u32.totalorder %s5899_s12, %s6347_s18 }
  0xab   : > { %p5907_p6 = por %p5906_p11, %p5905_p4 }
  0xac   : > { %p5903_p2 = pneg %p5902_p5 }
  0xad   : > { %p5909_p1 = por %p5908_p0, %p5907_p6 }
  0xaf   : > { %p5910_p7 = pnand %p5909_p1, %p5903_p2 }
  0xb1   : > { %5913 = shalt.err (!%p5910_p7)
}
  0xb2   : > { %s5914_s17 = scalar_lea.vmem %s397_s29, 16  ;;  %s6034_s23 = smov [#allocation11]  }
  0xb3   : > { %p5915_p8 = scmp.ne.s32.totalorder %s397_s29, %s5914_s17  ;;  %s5919_s26 = sshll.u32 %s6034_s23, 4  ;;  %s5920_s26 = int_to_ptr.vmem [resolvable:$false] %s5919_s26 }
  0xb4   : > { %s5921_s2 = scalar_lea.vmem %s5920_s26, 32  ;;  %p5922_p9 = scmp.lt.s32.totalorder %s397_s29, %s5920_s26 }
  0xb5   : > { %p5917_p10 = pnand %p5915_p8, %p6185_p3  ;;  %p5923_p5 = scmp.lt.s32.totalorder %s5921_s2, %s5914_s17 }
  0xb7   : > { %p5918_p13 = pneg %p5917_p10  ;;  %p5924_p12 = por %p5923_p5, %p5922_p9 }
  0xb9   : > { %p5925_p4 = pnand %p5924_p12, %p5918_p13 }
  0xbb   : > { %5928 = shalt.err (!%p5925_p4)
}
  0xbc   : > { %p8073_p11 = scmp.ne.s32.totalorder %s8065_s20, 0  ;;  %p8074_p2 = scmp.ne.s32.totalorder %s8070_s9, 0 }
  0xbe   : > { %5283 = dma.hbm_to_vmem [thread:$0]  (!%p8073_p11), %s6347_s18, 16, %s397_s29, %s387_s24  }
  0xbf   : > { %405 = sbr.rel (%p8074_p2) target bundleno = 2391 (0x957), region = 48 }
  0xc6   : > { %s6371_s22 = sand.u32 1, %s6007_s25   ;;  %p8075_p3 = scmp.ne.s32.totalorder %s8060_s13, 0 }
  0xc7   : > { %s6374_s11 = sshll.u32 %s6371_s22, 4  ;;  %s408_s19 = scalar_lea.sflag [#allocation3], %s6371_s22 }
  0xc8   : > { %s411_s7 = scalar_lea.vmem [#allocation2], %s6374_s11 }
  0xc9   : > { %5982 = dma.done.wait (%p8075_p3), %s408_s19, 256  }
  0xca   : > { %5984 = vsyncadd (%p8075_p3), %s408_s19, 4294967040  ;;  %s416_s20 = sand.u32 1, %s6114_s30   ;;  %s420_s18 = scalar_lea.vmem [#allocation5], %s6374_s11 }
  0xcb   : > { %s417_s9 = scalar_lea.sflag [#allocation6], %s416_s20 }
  0xcc   : > { %5986 = dma.done.wait (%p8075_p3), %s417_s9, 28928  }
  0xcd   : > { %5988 = vsyncadd (%p8075_p3), %s417_s9, 4294938368  ;;  %s5250_s29 = smul.u32 1792, %s6371_s22  ;;  %s435_s12 = scalar_lea.sflag [#allocation9], %s416_s20 }
  0xce   : > { %s6392_s8 = scalar_lea.vmem [#allocation8], %s6374_s11 }
  0xcf   : > { %s6389_s24 = scalar_lea.vmem [#allocation7], %s5250_s29 }
  0xd0   : > { %5990 = dma.done.wait (%p8075_p3), %s435_s12, 2304  }
  0xd1   : > { %5992 = vsyncadd (%p8075_p3), %s435_s12, 4294964992  ;;  %s4729_s30 = sshll.u32 %s6371_s22, 7  ;;  %s453_s10 = scalar_lea.sflag [#allocation12], %s6371_s22 }
  0xd2   : > { %s6401_s21 = scalar_lea.vmem [#allocation10], %s4729_s30  ;;  %s455_s15 = scalar_lea.vmem [#allocation11], %s6371_s22 }
  0xd3   : > { %5994 = dma.done.wait (%p8075_p3), %s453_s10, 16  }
  0xd4   : > { %5996 = vsyncadd (%p8075_p3), %s453_s10, 4294967280  ;;  %p520_p12 = scmp.lt.s32.totalorder %s6015_s27, 2  ;;  %v8014_v0 = vmov 1   ;;  %v8008_v1 = vmov 0   ;;  %v8016_v5 = vmov 2   ;;  %v8012_v9 = vmov 3  }
  0xd5   : > { %5350 = vset.pattern.permute.xlu1 %v8014_v0  ;;  %5349 = vset.pattern.permute.xlu0 %v8008_v1  ;;  %v5397_v7 = vld [vmem:[%s6389_s24 + $0x4] ss:$8 sps:$4 sm:$0xff]   ;;  %v5399_v8 = vld [vmem:[%s6389_s24] ss:$8 sps:$4 sm:$0xff]   ;;  %v5400_v11 = vld [vmem:[%s6389_s24 + $0x14] ss:$8 sps:$4 sm:$0xff]   ;;  %v631_v57 = vlaneseq }
  0xd6   : > { %s521_s16 = scalar_select %p520_p12, %s6015_s27, 2  ;;  %1840 = vmatprep.subr.bf16.mxu0 %v5397_v7  ;;  %v5402_v12 = vld [vmem:[%s6389_s24 + $0x10] ss:$8 sps:$4 sm:$0xff]   ;;  %v8010_v14 = vmov 4   ;;  %v5403_v15 = vld [vmem:[%s6389_s24 + $0x24] ss:$8 sps:$4 sm:$0xff]  }
  0xd7   : > { %1841 = vmatpush1.bf16.msra.mxu0 %v5399_v8  ;;  %v5405_v16 = vld [vmem:[%s6389_s24 + $0x20] ss:$8 sps:$4 sm:$0xff]   ;;  %v5406_v17 = vld [vmem:[%s6389_s24 + $0x34] ss:$8 sps:$4 sm:$0xff]   ;;  %v5408_v18 = vld [vmem:[%s6389_s24 + $0x30] ss:$8 sps:$4 sm:$0xff]  }
  0xd8   : > { %s5182_s17 = sshll.u32 %s521_s16, 7  ;;  %1842 = vmatprep.subr.bf16.mxu0 %v5400_v11  ;;  %v5409_v19 = vld [vmem:[%s6389_s24 + $0x44] ss:$8 sps:$4 sm:$0xff]   ;;  %v5411_v20 = vld [vmem:[%s6389_s24 + $0x40] ss:$8 sps:$4 sm:$0xff]   ;;  %v632_v60 = vshrl.u32 %v631_v57, 7 }
  0xd9   : > { %s6416_s2 = scalar_lea.vmem %s7987_s0, %s5182_s17  ;;  %v5412_v22 = vld [vmem:[%s6389_s24 + $0x54] ss:$8 sps:$4 sm:$0xff]   ;;  %v5414_v23 = vld [vmem:[%s6389_s24 + $0x50] ss:$8 sps:$4 sm:$0xff]   ;;  %v5415_v25 = vld [vmem:[%s6389_s24 + $0x64] ss:$8 sps:$4 sm:$0xff]  }
  0xda   : > { %v6419_v2 = vld [vmem:[%s6416_s2] sm:$0xff]  ;;  %v532_v3 = vld [vmem:[%s6416_s2 + $0x8] sm:$0xff]  ;;  %v6425_v4 = vld [vmem:[%s6416_s2 + $0x10] sm:$0xff]  ;;  %v6581_v63 = vsub.s32 1, %v632_v60  ;;  %s7899_s13 = scalar_lea.vmem [#allocation13], %s4729_s30  ;;  %s5183_s11 = sshll.u32 %s6015_s27, 11 }
  0xdb   : > { %712 = vperm.xlu1 %5350, %v6419_v2   ;;  %553 = vperm.xlu0 %5349, %v6419_v2   ;;  %v6430_v6 = vld [vmem:[%s6416_s2 + $0x18] sm:$0xff]  ;;  %v6439_v10 = vld [vmem:[%s6416_s2 + $0x20] sm:$0xff]  ;;  %v6444_v13 = vld [vmem:[%s6416_s2 + $0x48] sm:$0xff]  ;;  %s4499_s19 = sshll.u32 %s7899_s13, 4  ;;  %s8171_s9 = sld [smem:[#allocation55_spill]]  ;;  %s7936_s19 = int_to_ptr.vmem [resolvable:$true] %s4499_s19 }
  0xdc   : > { %1843 = vmatpush1.bf16.msra.mxu0 %v5402_v12  ;;  %v6460_v21 = vld [vmem:[%s6416_s2 + $0x38] sm:$0xff]  ;;  %v6468_v24 = vld [vmem:[%s6416_s2 + $0x40] sm:$0xff]  ;;  %v6490_v34 = vld [vmem:[%s6416_s2 + $0x50] sm:$0xff]  ;;  %8080 = vst [vmem:[#allocation29_spill] sm:$0xff] %v6581_v63  ;;  %s4484_s27 = scalar_lea.sflag [#allocation4], %s6371_s22  ;;  %s5929_s29 = scalar_lea.vmem %s7936_s19, 2048 }
  0xdd   : > { %1844 = vmatprep.subr.bf16.mxu0 %v5403_v15  ;;  %v5417_v26 = vld [vmem:[%s6389_s24 + $0x60] ss:$8 sps:$4 sm:$0xff]   ;;  %v5418_v27 = vld [vmem:[%s6389_s24 + $0x74] ss:$8 sps:$4 sm:$0xff]   ;;  %v5420_v28 = vld [vmem:[%s6389_s24 + $0x70] ss:$8 sps:$4 sm:$0xff]   ;;  %p5930_p6 = scmp.ne.s32.totalorder %s7936_s19, %s5929_s29 }
  0xde   : > { %v5421_v29 = vld [vmem:[%s6389_s24 + $0x84] ss:$8 sps:$4 sm:$0xff]   ;;  %v5423_v30 = vld [vmem:[%s6389_s24 + $0x80] ss:$8 sps:$4 sm:$0xff]   ;;  %v5424_v31 = vld [vmem:[%s6389_s24 + $0x94] ss:$8 sps:$4 sm:$0xff]  }
  0xdf   : > { %716 = vperm.xlu1 %5350, %v532_v3   ;;  %558 = vperm.xlu0 %5349, %v532_v3   ;;  %v5426_v32 = vld [vmem:[%s6389_s24 + $0x90] ss:$8 sps:$4 sm:$0xff]   ;;  %v5427_v33 = vld [vmem:[%s6389_s24 + $0xa4] ss:$8 sps:$4 sm:$0xff]   ;;  %v5429_v35 = vld [vmem:[%s6389_s24 + $0xa0] ss:$8 sps:$4 sm:$0xff]  }
  0xe0   : > { %1845 = vmatpush1.bf16.msra.mxu0 %v5405_v16  ;;  %v5430_v36 = vld [vmem:[%s6389_s24 + $0xb4] ss:$8 sps:$4 sm:$0xff]   ;;  %v5432_v37 = vld [vmem:[%s6389_s24 + $0xb0] ss:$8 sps:$4 sm:$0xff]   ;;  %v536_v38 = vld [vmem:[%s6416_s2 + $0x28] sm:$0xff]  ;;  %p8172_p0 = scmp.ne.s32.totalorder %s8061_s14, 0 }
  0xe1   : > { %1846 = vmatprep.subr.bf16.mxu0 %v5406_v17  ;;  %v5433_v39 = vld [vmem:[%s6389_s24 + $0xc4] ss:$8 sps:$4 sm:$0xff]   ;;  %v5435_v40 = vld [vmem:[%s6389_s24 + $0xc0] ss:$8 sps:$4 sm:$0xff]   ;;  %v537_v41 = vld [vmem:[%s6416_s2 + $0x30] sm:$0xff]  ;;  %v6612_v17 = vsub.s32 3, %v632_v60 }
  0xe2   : > { %v5436_v42 = vld [vmem:[%s6389_s24 + $0xd4] ss:$8 sps:$4 sm:$0xff]   ;;  %v5438_v43 = vld [vmem:[%s6389_s24 + $0xd0] ss:$8 sps:$4 sm:$0xff]   ;;  %v5439_v45 = vld [vmem:[%s6389_s24 + $0xe4] ss:$8 sps:$4 sm:$0xff]   ;;  %p5931_p1 = pnand %p5930_p6, %p8172_p0 }
  0xe3   : > { %5351 = vset.pattern.permute.xlu1 %v8016_v5  ;;  %563 = vperm.xlu0 %5349, %v6425_v4   ;;  %v6511_v44 = vld [vmem:[%s6416_s2 + $0x58] sm:$0xff]  ;;  %v5441_v46 = vld [vmem:[%s6389_s24 + $0xe0] ss:$8 sps:$4 sm:$0xff]   ;;  %v6534_v51 = vld [vmem:[%s6416_s2 + $0x70] sm:$0xff] }
  0xe4   : > { %924 = vperm.xlu1 %5351, %v532_v3   ;;  %1847 = vmatpush1.bf16.msra.mxu0 %v5408_v18  ;;  %v6518_v47 = vld [vmem:[%s6416_s2 + $0x60] sm:$0xff]  ;;  %v5442_v48 = vld [vmem:[%s6389_s24 + $0xf4] ss:$8 sps:$4 sm:$0xff]   ;;  %v5444_v49 = vld [vmem:[%s6389_s24 + $0xf0] ss:$8 sps:$4 sm:$0xff]   ;;  %8078 = vst [vmem:[#allocation27_spill] sm:$0xff] %v6534_v51  ;;  %p5932_p7 = pneg %p5931_p1 }
  0xe5   : > { %1848 = vmatprep.subr.bf16.mxu0 %v5409_v19  ;;  %8076 = vst [vmem:[#allocation25_spill] sm:$0xff] %v6518_v47  ;;  %v6530_v50 = vld [vmem:[%s6416_s2 + $0x68] sm:$0xff]  ;;  %v6542_v52 = vld [vmem:[%s6416_s2 + $0x78] sm:$0xff]  ;;  %v6618_v19 = vld [vmem:[%s411_s7] sm:$0xff] }
  0xe6   : > { %8077 = vst [vmem:[#allocation26_spill] sm:$0xff] %v6530_v50  ;;  %8079 = vst [vmem:[#allocation28_spill] sm:$0xff] %v6542_v52 }
  0xe7   : > { %5356 = vset.pattern.permute.xlu0 %v8014_v0 }
  0xe8   : > { %5352 = vset.pattern.permute.xlu1 %v8012_v9  ;;  %724 = vperm.xlu0 %5356, %v6430_v6  }
  0xe9   : > { %1128 = vperm.xlu1 %5352, %v6419_v2   ;;  %1849 = vmatpush1.bf16.msra.mxu0 %v5411_v20 }
  0xea   : > { %1850 = vmatprep.subr.bf16.mxu0 %v5412_v22 }
  0xec   : > { %728 = vperm.xlu0 %5356, %v6439_v10  }
  0xed   : > { %5353 = vset.pattern.permute.xlu1 %v8010_v14  ;;  %1851 = vmatpush1.bf16.msra.mxu0 %v5414_v23 }
  0xee   : > { %1336 = vperm.xlu1 %5353, %v6419_v2   ;;  %1852 = vmatprep.subr.bf16.mxu0 %v5415_v25 }
  0xf0   : > { %748 = vperm.xlu0 %5356, %v6444_v13  }
  0xf1   : > { %1853 = vmatpush1.bf16.msra.mxu0 %v5417_v26 }
  0xf2   : > { %1340 = vperm.xlu1 %5353, %v532_v3   ;;  %1854 = vmatprep.subr.bf16.mxu0 %v5418_v27 }
  0xf4   : > { %5372 = vset.pattern.permute.xlu0 %v8012_v9 }
  0xf5   : > { %1132 = vperm.xlu0 %5372, %v532_v3   ;;  %1855 = vmatpush1.bf16.msra.mxu0 %v5420_v28  ;;  %v550_v3 = vld [vmem:[%s420_s18 + $0x8] sm:$0xff]  ;;  %v6641_v28 = vrot.slane %v6618_v19, %v6581_v63 }
  0xf6   : > { %5354 = vset.pattern.permute.xlu1 %v8008_v1  ;;  %1856 = vmatprep.subr.bf16.mxu0 %v5421_v29 }
  0xf7   : > { %568 = vperm.xlu1 %5354, %v6430_v6  }
  0xf9   : > { %1136 = vperm.xlu0 %5372, %v6425_v4   ;;  %1857 = vmatpush1.bf16.msra.mxu0 %v5423_v30  ;;  %v6647_v30 = vrot.slane %v550_v3, %v6612_v17 }
  0xfa   : > { %1858 = vmatprep.subr.bf16.mxu0 %v5424_v31  ;;  %v1401_v31 = vsub.s32 4, %v632_v60 }
  0xfb   : > { %5355 = vset.pattern.permute.xlu1 %v8014_v0  ;;  %8086 = vst [vmem:[#allocation35_spill] sm:$0xff] %v6647_v30 }
  0xfc   : > { %720 = vperm.xlu1 %5355, %v6425_v4  }
  0xfd   : > { %1156 = vperm.xlu0 %5372, %v6460_v21   ;;  %1859 = vmatpush1.bf16.msra.mxu0 %v5426_v32 }
  0xfe   : > { %1860 = vmatprep.subr.bf16.mxu0 %v5427_v33 }
 0x100   : > { %5357 = vset.pattern.permute.xlu1 %v8016_v5 }
 0x101   : > { %928 = vperm.xlu1 %5357, %v6425_v4   ;;  %1160 = vperm.xlu0 %5372, %v6468_v24  }
 0x102   : > { %1861 = vmatpush1.bf16.msra.mxu0 %v5429_v35 }
 0x103   : > { %1862 = vmatprep.subr.bf16.mxu0 %v5430_v36 }
 0x105   : > { %932 = vperm.xlu1 %5357, %v6430_v6   ;;  %5374 = vset.pattern.permute.xlu0 %v8010_v14 }
 0x106   : > { %1348 = vperm.xlu0 %5374, %v6430_v6   ;;  %1863 = vmatpush1.bf16.msra.mxu0 %v5432_v37 }
 0x107   : > { %1864 = vmatprep.subr.bf16.mxu0 %v5433_v39 }
 0x109   : > { %5358 = vset.pattern.permute.xlu1 %v8012_v9 }
 0x10a   : > { %1140 = vperm.xlu1 %5358, %v6430_v6   ;;  %1352 = vperm.xlu0 %5374, %v6439_v10   ;;  %v985_v6 = vsub.s32 2, %v632_v60 }
 0x10b   : > { %1865 = vmatpush1.bf16.msra.mxu0 %v5435_v40 }
 0x10c   : > { %1866 = vmatprep.subr.bf16.mxu0 %v5436_v42  ;;  %v6609_v16 = vrot.slane %v550_v3, %v985_v6  ;;  %v6671_v42 = vrot.slane %v6618_v19, %v985_v6 }
 0x10e   : > { %5359 = vset.pattern.permute.xlu1 %v8010_v14  ;;  %1372 = vperm.xlu0 %5374, %v6444_v13   ;;  %8090 = vst [vmem:[#allocation39_spill] sm:$0xff] %v6671_v42 }
 0x10f   : > { %1344 = vperm.xlu1 %5359, %v6425_v4   ;;  %1867 = vmatpush1.bf16.msra.mxu0 %v5438_v43  ;;  %v6588_v4 = vsub.s32 0, %v632_v60  ;;  %v6682_v60 = vrot.slane %v550_v3, %v1401_v31 }
 0x110   : > { %1868 = vmatprep.subr.bf16.mxu0 %v5439_v45 }
 0x111   : > { %8081 = vst [vmem:[#allocation30_spill] sm:$0xff] %v6588_v4  ;;  %v6656_v33 = vrot.slane %v6618_v19, %v6588_v4 }
 0x112   : > { %1376 = vperm.xlu0 %5374, %v6490_v34  }
 0x113   : > { %5360 = vset.pattern.permute.xlu1 %v8008_v1  ;;  %1869 = vmatpush1.bf16.msra.mxu0 %v5441_v46  ;;  %8088 = vst [vmem:[#allocation37_spill] sm:$0xff] %v6656_v33 }
 0x114   : > { %573 = vperm.xlu1 %5360, %v6439_v10   ;;  %1870 = vmatprep.subr.bf16.mxu0 %v5442_v48 }
 0x116   : > { %5381 = vset.pattern.permute.xlu0 %v8016_v5 }
 0x117   : > { %920 = vperm.xlu0 %5381, %v6419_v2   ;;  %1871 = vmatpush1.bf16.msra.mxu0 %v5444_v49  ;;  %v549_v2 = vld [vmem:[%s420_s18] sm:$0xff]  ;;  %s7934_s18 = scalar_lea.hbm %s8171_s9, %s5183_s11 }
 0x118   : > { %578 = vperm.xlu1 %5360, %v536_v38   ;;  %v6593_v8 = vrot.slane %v549_v2, %v6581_v63  ;;  %v6602_v12 = vrot.slane %v549_v2, %v6588_v4  ;;  %v6607_v15 = vrot.slane %v549_v2, %v985_v6  ;;  %v6644_v29 = vrot.slane %v549_v2, %v6612_v17 }
 0x119   : > { %v6680_v57 = vrot.slane %v549_v2, %v1401_v31 }
 0x11a   : > { %8082 = vst [vmem:[#allocation31_spill] sm:$0xff] %v6593_v8  ;;  %8085 = vst [vmem:[#allocation34_spill] sm:$0xff] %v6644_v29 }
 0x11b   : > { %940 = vperm.xlu0 %5381, %v536_v38  }
 0x11c   : > { %5361 = vset.pattern.permute.xlu1 %v8014_v0 }
 0x11d   : > { %732 = vperm.xlu1 %5361, %v536_v38  }
 0x11f   : > { %944 = vperm.xlu0 %5381, %v537_v41  }
 0x121   : > { %5362 = vset.pattern.permute.xlu1 %v8016_v5 }
 0x122   : > { %936 = vperm.xlu1 %5362, %v6439_v10  }
 0x123   : > { %964 = vperm.xlu0 %5381, %v6511_v44  }
 0x126   : > { %5363 = vset.pattern.permute.xlu1 %v8012_v9 }
 0x127   : > { %1144 = vperm.xlu1 %5363, %v6439_v10   ;;  %968 = vperm.xlu0 %5381, %v6518_v47   ;;  %v6596_v10 = vrot.slane %v550_v3, %v6581_v63 }
 0x129   : > { %8083 = vst [vmem:[#allocation32_spill] sm:$0xff] %v6596_v10 }
 0x12b   : > { %1148 = vperm.xlu1 %5363, %v536_v38   ;;  %5385 = vset.pattern.permute.xlu0 %v8008_v1 }
 0x12c   : > { %588 = vperm.xlu0 %5385, %v6460_v21  }
 0x12f   : > { %5364 = vset.pattern.permute.xlu1 %v8010_v14 }
 0x130   : > { %1356 = vperm.xlu1 %5364, %v536_v38   ;;  %593 = vperm.xlu0 %5385, %v6468_v24  }
 0x134   : > { %5365 = vset.pattern.permute.xlu1 %v8008_v1  ;;  %618 = vperm.xlu0 %5385, %v6530_v50  }
 0x135   : > { %583 = vperm.xlu1 %5365, %v537_v41  }
 0x138   : > { %623 = vperm.xlu0 %5385, %v6534_v51  }
 0x139   : > { %5366 = vset.pattern.permute.xlu1 %v8014_v0 }
 0x13a   : > { %736 = vperm.xlu1 %5366, %v537_v41  }
 0x13c   : > { %5389 = vset.pattern.permute.xlu0 %v8014_v0 }
 0x13d   : > { %752 = vperm.xlu0 %5389, %v6490_v34  }
 0x13e   : > { %740 = vperm.xlu1 %5366, %v6460_v21  }
 0x141   : > { %772 = vperm.xlu0 %5389, %v6542_v52  }
 0x142   : > { %5367 = vset.pattern.permute.xlu1 %v8016_v5 }
 0x143   : > { %948 = vperm.xlu1 %5367, %v6460_v21  }
 0x145   : > { %5392 = vset.pattern.permute.xlu0 %v8012_v9 }
 0x146   : > { %1180 = vperm.xlu0 %5392, %v6530_v50  }
 0x147   : > { %5368 = vset.pattern.permute.xlu1 %v8012_v9 }
 0x148   : > { %1152 = vperm.xlu1 %5368, %v537_v41  }
 0x14a   : > { %1184 = vperm.xlu0 %5392, %v6534_v51  }
 0x14c   : > { %5369 = vset.pattern.permute.xlu1 %v8010_v14 }
 0x14d   : > { %1360 = vperm.xlu1 %5369, %v537_v41  }
 0x14e   : > { %5396 = vset.pattern.permute.xlu0 %v8010_v14 }
 0x14f   : > { %1396 = vperm.xlu0 %5396, %v6542_v52   ;;  %v6753_v52 = vrot.slane %v6618_v19, %v1401_v31 }
 0x151   : > { %1364 = vperm.xlu1 %5369, %v6460_v21  }
 0x155   : > { %5370 = vset.pattern.permute.xlu1 %v8008_v1 }
 0x156   : > { %598 = vperm.xlu1 %5370, %v6444_v13  }
 0x15a   : > { %5371 = vset.pattern.permute.xlu1 %v8014_v0  ;;  %v6560_v53 = vpop.permute.xlu1 %712  ;;  %v6562_v54 = vpop.permute.xlu0 %553 }
 0x15b   : > { %744 = vperm.xlu1 %5371, %v6468_v24   ;;  %v783_v2 = vmul.f32 %v6641_v28, %v6560_v53 }
 0x15e   : > { %v6565_v55 = vpop.permute.xlu1 %716  ;;  %v6567_v56 = vpop.permute.xlu0 %558 }
 0x15f   : > { %5373 = vset.pattern.permute.xlu1 %v8016_v5  ;;  %v857_v20 = vmul.f32 %v6593_v8, %v6565_v55  ;;  %v858_v21 = vmul.f32 %v6596_v10, %v6565_v55  ;;  %v681_v22 = vmul.f32 %v6602_v12, %v6567_v56  ;;  %v1543_v5 = vld [vmem:[%s6392_s8] ss:$8 sm:$0x3] }
 0x160   : > { %952 = vperm.xlu1 %5373, %v6468_v24  }
 0x161   : > { %v889_v35 = vadd.f32 %v857_v20, %v681_v22 }
 0x162   : > { %v6571_v58 = vpop.permute.xlu0 %563 }
 0x163   : > { %v6573_v59 = vpop.permute.xlu1 %924 }
 0x164   : > { %956 = vperm.xlu1 %5373, %v6444_v13   ;;  %v1065_v26 = vmul.f32 %v6607_v15, %v6573_v59  ;;  %v1066_v27 = vmul.f32 %v6609_v16, %v6573_v59  ;;  %v993_v51 = vmul.f32 %v6671_v42, %v6573_v59 }
 0x166   : > { %v1097_v46 = vadd.f32 %v1065_v26, %v889_v35 }
 0x167   : > { %v6576_v61 = vpop.permute.xlu0 %724 }
 0x168   : > { %5375 = vset.pattern.permute.xlu1 %v8012_v9  ;;  %v6579_v62 = vpop.permute.xlu1 %1128  ;;  %v861_v39 = vmul.f32 %v6593_v8, %v6576_v61  ;;  %v862_v43 = vmul.f32 %v6596_v10, %v6576_v61  ;;  %v639_v9 = vmul.f32 %v6656_v33, %v6562_v54 }
 0x169   : > { %1164 = vperm.xlu1 %5375, %v6444_v13   ;;  %v6605_v13 = vrot.slane %v550_v3, %v6588_v4 }
 0x16a   : > { %v6758_v47 = vadd.f32 %v783_v2, %v639_v9 }
 0x16b   : > { %v6590_v7 = vpop.permute.xlu0 %728  ;;  %v682_v23 = vmul.f32 %v6605_v13, %v6567_v56 }
 0x16d   : > { %5376 = vset.pattern.permute.xlu1 %v8010_v14  ;;  %v6599_v11 = vpop.permute.xlu1 %1336  ;;  %v890_v36 = vadd.f32 %v858_v21, %v682_v23  ;;  %v6689_v21 = vrot.slane %v6618_v19, %v6612_v17  ;;  %v6771_v19 = vrot.slane %v1543_v5, %v6581_v63 }
 0x16e   : > { %1368 = vperm.xlu1 %5376, %v6468_v24   ;;  %v6630_v24 = vld [vmem:[%s411_s7 + $0x8] sm:$0xff] }
 0x16f   : > { %v6614_v18 = vpop.permute.xlu0 %748  ;;  %v6652_v32 = vrot.slane %v6630_v24, %v6581_v63  ;;  %v6662_v38 = vrot.slane %v6630_v24, %v6588_v4  ;;  %v1098_v48 = vadd.f32 %v1066_v27, %v890_v36  ;;  %v6678_v49 = vrot.slane %v6630_v24, %v985_v6 }
 0x170   : > { %8084 = vst [vmem:[#allocation33_spill] sm:$0xff] %v6614_v18  ;;  %v6756_v50 = vrot.slane %v6630_v24, %v1401_v31  ;;  %v789_v63 = vmul.f32 %v6641_v28, %v6576_v61 }
 0x171   : > { %v6632_v25 = vpop.permute.xlu1 %1340  ;;  %8087 = vst [vmem:[#allocation36_spill] sm:$0xff] %v6652_v32  ;;  %8089 = vst [vmem:[#allocation38_spill] sm:$0xff] %v6662_v38  ;;  %v784_v36 = vmul.f32 %v6652_v32, %v6560_v53 }
 0x172   : > { %5377 = vset.pattern.permute.xlu1 %v8008_v1  ;;  %v1481_v3 = vmul.f32 %v6680_v57, %v6632_v25  ;;  %v1482_v27 = vmul.f32 %v6682_v60, %v6632_v25  ;;  %v683_v1 = vmul.f32 %v6602_v12, %v6571_v58 }
 0x173   : > { %603 = vperm.xlu1 %5377, %v6490_v34  }
 0x174   : > { %v6658_v37 = vpop.permute.xlu0 %1132 }
 0x175   : > { %v1273_v40 = vmul.f32 %v6644_v29, %v6658_v37  ;;  %v1274_v41 = vmul.f32 %v6647_v30, %v6658_v37 }
 0x176   : > { %v6675_v45 = vpop.permute.xlu1 %568 }
 0x177   : > { %v685_v20 = vmul.f32 %v6602_v12, %v6675_v45  ;;  %608 = vperm.xlu1 %5377, %v6511_v44   ;;  %v686_v22 = vmul.f32 %v6605_v13, %v6675_v45  ;;  %v1305_v6 = vadd.f32 %v1273_v40, %v1097_v46  ;;  %v1306_v26 = vadd.f32 %v1274_v41, %v1098_v48 }
 0x178   : > { %v6693_v23 = vpop.permute.xlu0 %1136  ;;  %v684_v40 = vmul.f32 %v6605_v13, %v6571_v58  ;;  %v855_v46 = vmul.f32 %v6593_v8, %v6560_v53  ;;  %v856_v48 = vmul.f32 %v6596_v10, %v6560_v53 }
 0x179   : > { %v6701_v35 = vadd.f32 %v861_v39, %v685_v20  ;;  %v6709_v41 = vadd.f32 %v862_v43, %v686_v22  ;;  %v6718_v20 = vadd.f32 %v1481_v3, %v1305_v6  ;;  %v6720_v14 = vadd.f32 %v1482_v27, %v1306_v26 }
 0x17a   : > { %v640_v43 = vmul.f32 %v6662_v38, %v6562_v54  ;;  %v679_v6 = vmul.f32 %v6602_v12, %v6562_v54  ;;  %v680_v26 = vmul.f32 %v6605_v13, %v6562_v54  ;;  %v785_v3 = vmul.f32 %v6641_v28, %v6565_v55 }
 0x17b   : > { %5378 = vset.pattern.permute.xlu1 %v8014_v0  ;;  %v6716_v39 = vpop.permute.xlu1 %720  ;;  %8091 = vst [vmem:[#allocation40_spill] sm:$0xff] %v6718_v20  ;;  %8092 = vst [vmem:[#allocation41_spill] sm:$0xff] %v6720_v14  ;;  %v641_v27 = vmul.f32 %v6656_v33, %v6567_v56  ;;  %v786_v14 = vmul.f32 %v6652_v32, %v6565_v55  ;;  %v642_v20 = vmul.f32 %v6662_v38, %v6567_v56 }
 0x17c   : > { %v859_v22 = vmul.f32 %v6593_v8, %v6716_v39  ;;  %v860_v53 = vmul.f32 %v6596_v10, %v6716_v39  ;;  %756 = vperm.xlu1 %5378, %v6511_v44   ;;  %v6731_v0 = vpop.permute.xlu0 %1156  ;;  %v6750_v54 = vrot.slane %v6630_v24, %v6612_v17  ;;  %v994_v55 = vmul.f32 %v6678_v49, %v6573_v59 }
 0x17d   : > { %8093 = vst [vmem:[#allocation42_spill] sm:$0xff] %v6731_v0  ;;  %v6768_v17 = vrot.slane %v1543_v5, %v6588_v4  ;;  %v817_v24 = vadd.f32 %v785_v3, %v641_v27  ;;  %v6780_v31 = vadd.f32 %v855_v46, %v679_v6  ;;  %v6782_v2 = vadd.f32 %v856_v48, %v680_v26 }
 0x17e   : > { %v891_v18 = vadd.f32 %v859_v22, %v683_v1  ;;  %v892_v0 = vadd.f32 %v860_v53, %v684_v40  ;;  %v8094_v1 = vmov 2   ;;  %v6773_v22 = vadd.f32 %v784_v36, %v640_v43 }
 0x17f   : > { %v818_v53 = vadd.f32 %v786_v14, %v642_v20  ;;  %v6786_v5 = vmul.f32 %v6656_v33, %v6571_v58  ;;  %v644_v36 = vmul.f32 %v6662_v38, %v6571_v58  ;;  %v1025_v43 = vadd.f32 %v993_v51, %v817_v24 }
 0x180   : > { %5379 = vset.pattern.permute.xlu1 %v8094_v1  ;;  %v6763_v56 = vpop.permute.xlu1 %928  ;;  %v6765_v40 = vpop.permute.xlu0 %1160  ;;  %v1275_v46 = vmul.f32 %v6644_v29, %v6693_v23  ;;  %v1276_v48 = vmul.f32 %v6647_v30, %v6693_v23  ;;  %v790_v6 = vmul.f32 %v6652_v32, %v6576_v61  ;;  %v1201_v58 = vmul.f32 %v6689_v21, %v6658_v37 }
 0x181   : > { %8095 = vst [vmem:[#allocation43_spill] sm:$0xff] %v6765_v40  ;;  %v1067_v9 = vmul.f32 %v6607_v15, %v6763_v56  ;;  %v1068_v59 = vmul.f32 %v6609_v16, %v6763_v56  ;;  %960 = vperm.xlu1 %5379, %v6490_v34   ;;  %v1026_v20 = vadd.f32 %v994_v55, %v818_v53 }
 0x182   : > { %v6807_v24 = vmul.f32 %v6689_v21, %v6579_v62  ;;  %v6811_v55 = vmul.f32 %v6750_v54, %v6579_v62  ;;  %v6815_v61 = vmul.f32 %v6644_v29, %v6579_v62  ;;  %v6826_v53 = vmul.f32 %v6641_v28, %v6590_v7 }
 0x183   : > { %v1099_v3 = vadd.f32 %v1067_v9, %v891_v18  ;;  %v1100_v27 = vadd.f32 %v1068_v59, %v892_v0  ;;  %v8096_v18 = vmov 3   ;;  %v1202_v9 = vmul.f32 %v6750_v54, %v6658_v37 }
 0x184   : > { %v933_v14 = vpop.permute.xlu1 %932  ;;  %v6822_v59 = vmul.f32 %v6647_v30, %v6579_v62  ;;  %8098 = vst [vmem:[#allocation45_spill] sm:$0xff] %v6826_v53  ;;  %v6836_v37 = vmul.f32 %v6593_v8, %v6590_v7  ;;  %v6840_v62 = vmul.f32 %v6596_v10, %v6590_v7  ;;  %v8102_v10 = vmov 4  }
 0x185   : > { %v1069_v51 = vmul.f32 %v6607_v15, %v933_v14  ;;  %v1070_v0 = vmul.f32 %v6609_v16, %v933_v14  ;;  %5380 = vset.pattern.permute.xlu1 %v8096_v18  ;;  %v6803_v26 = vpop.permute.xlu0 %1348  ;;  %v6832_v18 = vmul.f32 %v6652_v32, %v6590_v7  ;;  %v1308_v1 = vadd.f32 %v1276_v48, %v1100_v27 }
 0x186   : > { %1168 = vperm.xlu1 %5380, %v6490_v34   ;;  %8097 = vst [vmem:[#allocation44_spill] sm:$0xff] %v6822_v59  ;;  %v1307_v34 = vadd.f32 %v1275_v46, %v1099_v3  ;;  %v1233_v59 = vadd.f32 %v1201_v58, %v1025_v43  ;;  %v1234_v7 = vadd.f32 %v1202_v9, %v1026_v20 }
 0x187   : > { %v1101_v4 = vadd.f32 %v1069_v51, %v6701_v35  ;;  %v1102_v40 = vadd.f32 %v1070_v0, %v6709_v41  ;;  %8099 = vst [vmem:[#allocation46_spill] sm:$0xff] %v6832_v18  ;;  %v645_v35 = vmul.f32 %v6656_v33, %v6675_v45  ;;  %v646_v41 = vmul.f32 %v6662_v38, %v6675_v45 }
 0x188   : > { %v788_v18 = vmul.f32 %v6652_v32, %v6716_v39  ;;  %v6855_v43 = vmul.f32 %v6753_v52, %v6599_v11  ;;  %v1409_v45 = vmul.f32 %v6753_v52, %v6632_v25  ;;  %v1410_v46 = vmul.f32 %v6756_v50, %v6632_v25 }
 0x189   : > { %v1141_v51 = vpop.permute.xlu1 %1140  ;;  %v6846_v0 = vpop.permute.xlu0 %1352  ;;  %v996_v48 = vmul.f32 %v6678_v49, %v6763_v56  ;;  %v1485_v58 = vmul.f32 %v6680_v57, %v6803_v26  ;;  %v821_v32 = vadd.f32 %v789_v63, %v645_v35  ;;  %v822_v53 = vadd.f32 %v790_v6, %v646_v41 }
 0x18a   : > { %v1277_v3 = vmul.f32 %v6644_v29, %v1141_v51  ;;  %v1278_v27 = vmul.f32 %v6647_v30, %v1141_v51  ;;  %1172 = vperm.xlu1 %5380, %v6511_v44   ;;  %8100 = vst [vmem:[#allocation47_spill] sm:$0xff] %v6855_v43  ;;  %v1486_v30 = vmul.f32 %v6682_v60, %v6803_v26 }
 0x18b   : > { %v6869_v29 = vmul.f32 %v6756_v50, %v6599_v11  ;;  %v1204_v25 = vmul.f32 %v6750_v54, %v6693_v23  ;;  %v787_v33 = vmul.f32 %v6641_v28, %v6716_v39  ;;  %v820_v43 = vadd.f32 %v788_v18, %v644_v36 }
 0x18c   : > { %v1309_v20 = vadd.f32 %v1277_v3, %v1101_v4  ;;  %v1310_v9 = vadd.f32 %v1278_v27, %v1102_v40  ;;  %v1442_v4 = vadd.f32 %v1410_v46, %v1234_v7  ;;  %v1441_v40 = vadd.f32 %v1409_v45, %v1233_v59 }
 0x18d   : > { %v6873_v38 = vpop.permute.xlu0 %1372  ;;  %v997_v3 = vmul.f32 %v6671_v42, %v933_v14  ;;  %v998_v27 = vmul.f32 %v6678_v49, %v933_v14  ;;  %v995_v35 = vmul.f32 %v6671_v42, %v6763_v56  ;;  %v1028_v39 = vadd.f32 %v996_v48, %v820_v43 }
 0x18e   : > { %8101 = vst [vmem:[#allocation48_spill] sm:$0xff] %v6873_v38  ;;  %5382 = vset.pattern.permute.xlu1 %v8102_v10  ;;  %v1345_v8 = vpop.permute.xlu1 %1344  ;;  %v6885_v36 = vadd.f32 %v1485_v58, %v1309_v20  ;;  %v6887_v18 = vadd.f32 %v1486_v30, %v1310_v9  ;;  %v1205_v59 = vmul.f32 %v6689_v21, %v1141_v51  ;;  %v8108_v58 = vmov 0  }
 0x18f   : > { %v1483_v63 = vmul.f32 %v6680_v57, %v1345_v8  ;;  %v1484_v6 = vmul.f32 %v6682_v60, %v1345_v8  ;;  %1380 = vperm.xlu1 %5382, %v6511_v44   ;;  %v1206_v41 = vmul.f32 %v6750_v54, %v1141_v51  ;;  %v1479_v44 = vmul.f32 %v6680_v57, %v6599_v11 }
 0x190   : > { %8103 = vst [vmem:[#allocation49_spill] sm:$0xff] %v6885_v36  ;;  %8104 = vst [vmem:[#allocation50_spill] sm:$0xff] %v6887_v18  ;;  %v1203_v56 = vmul.f32 %v6689_v21, %v6693_v23  ;;  %v819_v43 = vadd.f32 %v787_v33, %v6786_v5  ;;  %v1412_v30 = vmul.f32 %v6756_v50, %v1345_v8 }
 0x191   : > { %v6891_v7 = vpop.permute.xlu0 %1376  ;;  %v6893_v14 = vadd.f32 %v1483_v63, %v1307_v34  ;;  %v6895_v45 = vadd.f32 %v1484_v6, %v1308_v1  ;;  %v1029_v46 = vadd.f32 %v997_v3, %v821_v32  ;;  %v1030_v48 = vadd.f32 %v998_v27, %v822_v53  ;;  %v8109_v32 = vld [vmem:[#allocation25_spill] sm:$0xff] }
 0x192   : > { %8105 = vst [vmem:[#allocation51_spill] sm:$0xff] %v6891_v7  ;;  %v6907_v34 = vadd.f32 %v6771_v19, %v1442_v4  ;;  %v6910_v1 = vadd.f32 %v6768_v17, %v1441_v40  ;;  %v1027_v20 = vadd.f32 %v995_v35, %v819_v43  ;;  %v1236_v9 = vadd.f32 %v1204_v25, %v1028_v39 }
 0x193   : > { %8106 = vst [vmem:[#allocation52_spill] sm:$0xff] %v6893_v14  ;;  %8107 = vst [vmem:[#allocation53_spill] sm:$0xff] %v6895_v45  ;;  %5383 = vset.pattern.permute.xlu1 %v8108_v58  ;;  %v6904_v51 = vpop.permute.xlu1 %573  ;;  %v1413_v5 = vmul.f32 %v6753_v52, %v6803_v26  ;;  %v1414_v53 = vmul.f32 %v6756_v50, %v6803_v26  ;;  %v1237_v4 = vadd.f32 %v1205_v59, %v1029_v46 }
 0x194   : > { %v687_v23 = vmul.f32 %v6602_v12, %v6904_v51  ;;  %v688_v33 = vmul.f32 %v6605_v13, %v6904_v51  ;;  %613 = vperm.xlu1 %5383, %v8109_v32   ;;  %v1238_v3 = vadd.f32 %v1206_v41, %v1030_v48  ;;  %v1411_v40 = vmul.f32 %v6753_v52, %v1345_v8 }
 0x195   : > { %v1444_v27 = vadd.f32 %v1412_v30, %v1236_v9  ;;  %v1480_v8 = vmul.f32 %v6682_v60, %v6599_v11  ;;  %v1235_v41 = vadd.f32 %v1203_v56, %v1027_v20  ;;  %v1589_v30 = vmax.f32 %v6910_v1, 0.0 }
 0x196   : > { %v6923_v25 = vadd.f32 %v6836_v37, %v687_v23  ;;  %v6926_v63 = vadd.f32 %v6840_v62, %v688_v33  ;;  %v921_v6 = vpop.permute.xlu0 %920  ;;  %v8110_v37 = vmov 1   ;;  %v1590_v62 = vmax.f32 %v6907_v34, 0.0 }
 0x197   : > { %v991_v35 = vmul.f32 %v6671_v42, %v921_v6  ;;  %v992_v39 = vmul.f32 %v6678_v49, %v921_v6  ;;  %v1063_v43 = vmul.f32 %v6607_v15, %v921_v6  ;;  %v1064_v26 = vmul.f32 %v6609_v16, %v921_v6  ;;  %v6932_v59 = vpop.permute.xlu1 %578 }
 0x198   : > { %5384 = vset.pattern.permute.xlu1 %v8110_v37  ;;  %v6946_v11 = vmul.f32 %v6753_v52, %v6846_v0  ;;  %v6950_v56 = vmul.f32 %v6756_v50, %v6846_v0  ;;  %v1446_v1 = vadd.f32 %v1414_v53, %v1238_v3  ;;  %v1443_v20 = vadd.f32 %v1411_v40, %v1235_v41  ;;  %v8112_v53 = vld [vmem:[#allocation31_spill] sm:$0xff] }
 0x199   : > { %v1023_v46 = vadd.f32 %v991_v35, %v6758_v47  ;;  %v1024_v48 = vadd.f32 %v992_v39, %v6773_v22  ;;  %v1095_v9 = vadd.f32 %v1063_v43, %v6780_v31  ;;  %v1096_v23 = vadd.f32 %v1064_v26, %v6782_v2  ;;  %760 = vperm.xlu1 %5384, %v8109_v32   ;;  %v8111_v43 = vld [vmem:[#allocation44_spill] sm:$0xff] }
 0x19a   : > { %v6952_v34 = vpop.permute.xlu0 %940  ;;  %v1445_v47 = vadd.f32 %v1413_v5, %v1237_v4  ;;  %v689_v31 = vmul.f32 %v6602_v12, %v6932_v59  ;;  %v1560_v2 = vadd.f32 %v6771_v19, %v1444_v27  ;;  %v690_v33 = vmul.f32 %v6605_v13, %v6932_v59  ;;  %v8113_v4 = vld [vmem:[#allocation32_spill] sm:$0xff] }
 0x19b   : > { %v1231_v22 = vadd.f32 %v6807_v24, %v1023_v46  ;;  %v1232_v35 = vadd.f32 %v6811_v55, %v1024_v48  ;;  %v1303_v39 = vadd.f32 %v6815_v61, %v1095_v9  ;;  %v1304_v26 = vadd.f32 %v8111_v43, %v1096_v23  ;;  %v8114_v24 = vld [vmem:[#allocation26_spill] sm:$0xff]  ;;  %v8115_v46 = vld [vmem:[#allocation47_spill] sm:$0xff]  ;;  %v8118_v9 = vld [vmem:[#allocation37_spill] sm:$0xff] }
 0x19c   : > { %v733_v6 = vpop.permute.xlu1 %732  ;;  %v1073_v40 = vmul.f32 %v6607_v15, %v6952_v34  ;;  %v1074_v27 = vmul.f32 %v6609_v16, %v6952_v34  ;;  %v647_v23 = vmul.f32 %v8118_v9, %v6904_v51  ;;  %v1562_v36 = vadd.f32 %v6771_v19, %v1446_v1 }
 0x19d   : > { %v865_v5 = vmul.f32 %v8112_v53, %v733_v6  ;;  %v866_v3 = vmul.f32 %v8113_v4, %v733_v6  ;;  %764 = vperm.xlu1 %5384, %v8114_v24   ;;  %v1440_v41 = vadd.f32 %v6869_v29, %v1232_v35  ;;  %v1439_v55 = vadd.f32 %v8115_v46, %v1231_v22 }
 0x19e   : > { %v6972_v48 = vadd.f32 %v1479_v44, %v1303_v39  ;;  %v6974_v61 = vadd.f32 %v1480_v8, %v1304_v26  ;;  %v6981_v45 = vmul.f32 %v6680_v57, %v6846_v0  ;;  %v6985_v29 = vmul.f32 %v6682_v60, %v6846_v0  ;;  %v8120_v26 = vld [vmem:[#allocation38_spill] sm:$0xff] }
 0x19f   : > { %v897_v43 = vadd.f32 %v865_v5, %v689_v31  ;;  %v898_v18 = vadd.f32 %v866_v3, %v690_v33  ;;  %v1556_v44 = vadd.f32 %v6771_v19, %v1440_v41  ;;  %v1555_v8 = vadd.f32 %v6768_v17, %v1439_v55  ;;  %v8121_v41 = vld [vmem:[#allocation45_spill] sm:$0xff] }
 0x1a0   : > { %8116 = vst [vmem:[#allocation25_spill] sm:$0xff] %v6972_v48  ;;  %8117 = vst [vmem:[#allocation44_spill] sm:$0xff] %v6974_v61  ;;  %v8119_v31 = vmov 2   ;;  %v1559_v1 = vadd.f32 %v6768_v17, %v1443_v20  ;;  %v1561_v39 = vadd.f32 %v6768_v17, %v1445_v47  ;;  %v648_v5 = vmul.f32 %v8120_v26, %v6904_v51  ;;  %v8122_v61 = vld [vmem:[#allocation36_spill] sm:$0xff] }
 0x1a1   : > { %v6989_v22 = vadd.f32 %v1073_v40, %v897_v43  ;;  %v6991_v35 = vadd.f32 %v1074_v27, %v898_v18  ;;  %5386 = vset.pattern.permute.xlu1 %v8119_v31  ;;  %v937_v33 = vpop.permute.xlu1 %936  ;;  %v1592_v40 = vmax.f32 %v1560_v2, 0.0  ;;  %v823_v18 = vadd.f32 %v8121_v41, %v647_v23  ;;  %v8123_v2 = vld [vmem:[#allocation46_spill] sm:$0xff] }
 0x1a2   : > { %v1071_v0 = vmul.f32 %v6607_v15, %v937_v33  ;;  %v1072_v3 = vmul.f32 %v6609_v16, %v937_v33  ;;  %972 = vperm.xlu1 %5386, %v8114_v24   ;;  %v1588_v27 = vmax.f32 %v1556_v44, 0.0  ;;  %v1587_v46 = vmax.f32 %v1555_v8, 0.0 }
 0x1a3   : > { %v1594_v55 = vmax.f32 %v1562_v36, 0.0  ;;  %v999_v43 = vmul.f32 %v6671_v42, %v937_v33  ;;  %v1000_v20 = vmul.f32 %v6678_v49, %v937_v33  ;;  %v793_v14 = vmul.f32 %v6641_v28, %v733_v6 }
 0x1a4   : > { %v1103_v47 = vadd.f32 %v1071_v0, %v6923_v25  ;;  %v1104_v51 = vadd.f32 %v1072_v3, %v6926_v63  ;;  %v794_v48 = vmul.f32 %v8122_v61, %v733_v6  ;;  %v1620_v7 = vpack.c.bf16 %v1590_v62, %v1588_v27  ;;  %v8125_v6 = vld [vmem:[#allocation34_spill] sm:$0xff] }
 0x1a5   : > { %v1619_v38 = vpack.c.bf16 %v1589_v30, %v1587_v46  ;;  %v824_v31 = vadd.f32 %v8123_v2, %v648_v5  ;;  %v649_v23 = vmul.f32 %v8118_v9, %v6932_v59  ;;  %v650_v36 = vmul.f32 %v8120_v26, %v6932_v59  ;;  %v8126_v30 = vld [vmem:[#allocation35_spill] sm:$0xff]  ;;  %v7018_v5 = vpop.permute.xlu0 %944 }
 0x1a6   : > { %v8124_v44 = vmov 3   ;;  %v1145_v8 = vpop.permute.xlu1 %1144  ;;  %v1622_v25 = vpack.c.bf16 %v1594_v55, %v1592_v40  ;;  %1872 = vmatprep.mubr.bf16.mxu0 %v1620_v7  ;;  %v1001_v3 = vmul.f32 %v6671_v42, %v6952_v34  ;;  %v1031_v41 = vadd.f32 %v999_v43, %v823_v18 }
 0x1a7   : > { %5387 = vset.pattern.permute.xlu1 %v8124_v44  ;;  %v1207_v63 = vmul.f32 %v6689_v21, %v1145_v8  ;;  %v1208_v33 = vmul.f32 %v6750_v54, %v1145_v8  ;;  %v1279_v62 = vmul.f32 %v8125_v6, %v1145_v8  ;;  %v1280_v0 = vmul.f32 %v8126_v30, %v1145_v8 }
 0x1a8   : > { %v1032_v59 = vadd.f32 %v1000_v20, %v824_v31  ;;  %1873 = vmatmul.mubr.bf16.vlgmr.msra.gmra.mrb[0].mxu0 %v1619_v38  ;;  %1176 = vperm.xlu1 %5387, %v8109_v32   ;;  %v1591_v40 = vmax.f32 %v1559_v1, 0.0  ;;  %v825_v7 = vadd.f32 %v793_v14, %v649_v23  ;;  %v826_v27 = vadd.f32 %v794_v48, %v650_v36 }
 0x1a9   : > { %v1002_v46 = vmul.f32 %v6678_v49, %v6952_v34  ;;  %1882 = vmatprep.mubr.bf16.mxu0 %v1622_v25  ;;  %v1311_v55 = vadd.f32 %v1279_v62, %v1103_v47  ;;  %v1239_v2 = vadd.f32 %v1207_v63, %v1031_v41  ;;  %v1593_v26 = vmax.f32 %v1561_v39, 0.0  ;;  %v7031_v18 = vpop.permute.xlu0 %964 }
 0x1aa   : > { %v1240_v8 = vadd.f32 %v1208_v33, %v1032_v59  ;;  %v1149_v44 = vpop.permute.xlu1 %1148  ;;  %v1312_v9 = vadd.f32 %v1280_v0, %v1104_v51  ;;  %v1033_v14 = vadd.f32 %v1001_v3, %v825_v7 }
 0x1ab   : > { %v1209_v42 = vmul.f32 %v6689_v21, %v1149_v44  ;;  %v1210_v31 = vmul.f32 %v6750_v54, %v1149_v44  ;;  %v1281_v38 = vmul.f32 %v8125_v6, %v1149_v44  ;;  %v1282_v1 = vmul.f32 %v8126_v30, %v1149_v44 }
 0x1ac   : > { %5388 = vset.pattern.permute.xlu1 %v8102_v10  ;;  %v1034_v48 = vadd.f32 %v1002_v46, %v826_v27  ;;  %v1621_v34 = vpack.c.bf16 %v1593_v26, %v1591_v40  ;;  %v1448_v39 = vadd.f32 %v6950_v56, %v1240_v8  ;;  %v1447_v43 = vadd.f32 %v6946_v11, %v1239_v2 }
 0x1ad   : > { %1384 = vperm.xlu1 %5388, %v8109_v32   ;;  %v7036_v20 = vadd.f32 %v6981_v45, %v1311_v55  ;;  %v7039_v47 = vadd.f32 %v6985_v29, %v1312_v9  ;;  %v1241_v51 = vadd.f32 %v1209_v42, %v1033_v14  ;;  %v1313_v44 = vadd.f32 %v1281_v38, %v6989_v22  ;;  %v7050_v22 = vpop.permute.xlu0 %968  ;;  %v8130_v14 = vld [vmem:[#allocation27_spill] sm:$0xff] }
 0x1ae   : > { %v1242_v23 = vadd.f32 %v1210_v31, %v1034_v48  ;;  %v1314_v32 = vadd.f32 %v1282_v1, %v6991_v35  ;;  %v1564_v42 = vadd.f32 %v6771_v19, %v1448_v39  ;;  %v1563_v25 = vadd.f32 %v6768_v17, %v1447_v43 }
 0x1af   : > { %v1357_v36 = vpop.permute.xlu1 %1356  ;;  %v1075_v38 = vmul.f32 %v6607_v15, %v7018_v5  ;;  %v1076_v1 = vmul.f32 %v6609_v16, %v7018_v5 }
 0x1b0   : > { %1883 = vmatmul.mubr.bf16.gmra.mrb[4].mxu0 %v1621_v34  ;;  %v1417_v26 = vmul.f32 %v6753_v52, %v1357_v36  ;;  %v1418_v56 = vmul.f32 %v6756_v50, %v1357_v36  ;;  %v1489_v11 = vmul.f32 %v6680_v57, %v1357_v36  ;;  %v1490_v45 = vmul.f32 %v6682_v60, %v1357_v36 }
 0x1b1   : > { %1388 = vperm.xlu1 %5388, %v8114_v24   ;;  %v8129_v24 = vld [vmem:[#allocation28_spill] sm:$0xff]  ;;  %v1596_v3 = vmax.f32 %v1564_v42, 0.0  ;;  %v1595_v59 = vmax.f32 %v1563_v25, 0.0  ;;  %v589_v55 = vpop.permute.xlu0 %588  ;;  %v8131_v36 = vmov 2  }
 0x1b2   : > { %v1449_v9 = vadd.f32 %v1417_v26, %v1241_v51  ;;  %v1450_v29 = vadd.f32 %v1418_v56, %v1242_v23  ;;  %v7052_v35 = vadd.f32 %v1489_v11, %v1313_v44  ;;  %v7054_v63 = vadd.f32 %v1490_v45, %v1314_v32 }
 0x1b3   : > { %v693_v39 = vmul.f32 %v6602_v12, %v589_v55 }
 0x1b4   : > { %8127 = vst [vmem:[#allocation31_spill] sm:$0xff] %v7052_v35  ;;  %8128 = vst [vmem:[#allocation32_spill] sm:$0xff] %v7054_v63  ;;  %v584_v33 = vpop.permute.xlu1 %583  ;;  %v1566_v62 = vadd.f32 %v6771_v19, %v1450_v29  ;;  %v1565_v0 = vadd.f32 %v6768_v17, %v1449_v9  ;;  %v8132_v29 = vld [vmem:[#allocation42_spill] sm:$0xff] }
 0x1b5   : > { %5390 = vset.pattern.permute.xlu1 %v8108_v58  ;;  %v691_v2 = vmul.f32 %v6602_v12, %v584_v33  ;;  %v692_v8 = vmul.f32 %v6605_v13, %v584_v33  ;;  %v1285_v42 = vmul.f32 %v8125_v6, %v8132_v29  ;;  %v1286_v25 = vmul.f32 %v8126_v30, %v8132_v29 }
 0x1b6   : > { %628 = vperm.xlu1 %5390, %v8129_v24   ;;  %v1598_v41 = vmax.f32 %v1566_v62, 0.0  ;;  %v1597_v40 = vmax.f32 %v1565_v0, 0.0 }
 0x1b8   : > { %v1624_v7 = vpack.c.bf16 %v1598_v41, %v1596_v3  ;;  %v1623_v27 = vpack.c.bf16 %v1597_v40, %v1595_v59  ;;  %v8133_v3 = vld [vmem:[#allocation39_spill] sm:$0xff]  ;;  %v1004_v59 = vmul.f32 %v6678_v49, %v7018_v5  ;;  %v8134_v40 = vld [vmem:[#allocation37_spill] sm:$0xff] }
 0x1b9   : > { %v737_v46 = vpop.permute.xlu1 %736  ;;  %v1003_v41 = vmul.f32 %v8133_v3, %v7018_v5  ;;  %v5445_v5 = vld [vmem:[%s6389_s24 + $0x104] ss:$8 sps:$4 sm:$0xff]  }
 0x1ba   : > { %5391 = vset.pattern.permute.xlu1 %v8110_v37  ;;  %v867_v31 = vmul.f32 %v8112_v53, %v737_v46  ;;  %v868_v58 = vmul.f32 %v8113_v4, %v737_v46  ;;  %1892 = vmatprep.mubr.bf16.mxu0 %v1624_v7  ;;  %v694_v37 = vmul.f32 %v6605_v13, %v589_v55 }
 0x1bb   : > { %768 = vperm.xlu1 %5391, %v8130_v14   ;;  %1893 = vmatmul.mubr.bf16.gmra.mrb[8].mxu0 %v1623_v27  ;;  %v795_v11 = vmul.f32 %v6641_v28, %v737_v46  ;;  %v796_v45 = vmul.f32 %v8122_v61, %v737_v46  ;;  %v651_v7 = vmul.f32 %v8134_v40, %v584_v33  ;;  %v8135_v27 = vld [vmem:[#allocation38_spill] sm:$0xff] }
 0x1bc   : > { %v899_v48 = vadd.f32 %v867_v31, %v691_v2  ;;  %v900_v34 = vadd.f32 %v868_v58, %v692_v8  ;;  %v652_v46 = vmul.f32 %v8135_v27, %v584_v33  ;;  %v653_v2 = vmul.f32 %v8134_v40, %v589_v55  ;;  %2207 = vmatprep.subr.bf16.mxu1 %v5445_v5 }
 0x1bd   : > { %v741_v43 = vpop.permute.xlu1 %740  ;;  %v654_v8 = vmul.f32 %v8135_v27, %v589_v55  ;;  %v8136_v55 = vmov 3  }
 0x1be   : > { %v869_v51 = vmul.f32 %v8112_v53, %v741_v43  ;;  %v870_v23 = vmul.f32 %v8113_v4, %v741_v43  ;;  %v1107_v44 = vadd.f32 %v1075_v38, %v899_v48  ;;  %v1108_v32 = vadd.f32 %v1076_v1, %v900_v34 }
 0x1bf   : > { %5393 = vset.pattern.permute.xlu1 %v8131_v36  ;;  %v827_v38 = vadd.f32 %v795_v11, %v651_v7  ;;  %v828_v1 = vadd.f32 %v796_v45, %v652_v46  ;;  %v797_v48 = vmul.f32 %v6641_v28, %v741_v43  ;;  %v798_v34 = vmul.f32 %v8122_v61, %v741_v43  ;;  %v5448_v45 = vld [vmem:[%s6389_s24 + $0x114] ss:$8 sps:$4 sm:$0xff]  }
 0x1c0   : > { %v901_v26 = vadd.f32 %v869_v51, %v693_v39  ;;  %v902_v56 = vadd.f32 %v870_v23, %v694_v37  ;;  %976 = vperm.xlu1 %5393, %v8130_v14   ;;  %v5447_v39 = vld [vmem:[%s6389_s24 + $0x100] ss:$8 sps:$4 sm:$0xff]   ;;  %v1214_v46 = vmul.f32 %v6750_v54, %v8132_v29 }
 0x1c1   : > { %v1036_v7 = vadd.f32 %v1004_v59, %v828_v1  ;;  %2208 = vmatpush1.bf16.msra.mxu1 %v5447_v39  ;;  %v5454_v39 = vld [vmem:[%s6389_s24 + $0x134] ss:$8 sps:$4 sm:$0xff]  }
 0x1c2   : > { %v949_v9 = vpop.permute.xlu1 %948  ;;  %2209 = vmatprep.subr.bf16.mxu1 %v5448_v45 }
 0x1c3   : > { %v1077_v62 = vmul.f32 %v6607_v15, %v949_v9  ;;  %v1078_v0 = vmul.f32 %v6609_v16, %v949_v9  ;;  %v1005_v37 = vmul.f32 %v8133_v3, %v949_v9  ;;  %v1006_v33 = vmul.f32 %v6678_v49, %v949_v9 }
 0x1c4   : > { %980 = vperm.xlu1 %5393, %v8129_v24   ;;  %v830_v9 = vadd.f32 %v798_v34, %v654_v8 }
 0x1c5   : > { %v1109_v31 = vadd.f32 %v1077_v62, %v901_v26  ;;  %v1110_v58 = vadd.f32 %v1078_v0, %v902_v56  ;;  %v829_v62 = vadd.f32 %v797_v48, %v653_v2  ;;  %v1035_v0 = vadd.f32 %v1003_v41, %v827_v38  ;;  %v5451_v38 = vld [vmem:[%s6389_s24 + $0x124] ss:$8 sps:$4 sm:$0xff]  }
 0x1c7   : > { %v1153_v51 = vpop.permute.xlu1 %1152  ;;  %v1317_v23 = vadd.f32 %v1285_v42, %v1109_v31  ;;  %v1318_v36 = vadd.f32 %v1286_v25, %v1110_v58  ;;  %v5450_v42 = vld [vmem:[%s6389_s24 + $0x110] ss:$8 sps:$4 sm:$0xff]   ;;  %v1213_v25 = vmul.f32 %v6689_v21, %v8132_v29 }
 0x1c8   : > { %5394 = vset.pattern.permute.xlu1 %v8136_v55  ;;  %v1211_v26 = vmul.f32 %v6689_v21, %v1153_v51  ;;  %v1212_v56 = vmul.f32 %v6750_v54, %v1153_v51  ;;  %v1283_v11 = vmul.f32 %v8125_v6, %v1153_v51  ;;  %v1284_v43 = vmul.f32 %v8126_v30, %v1153_v51 }
 0x1c9   : > { %1188 = vperm.xlu1 %5394, %v8129_v24   ;;  %v1037_v51 = vadd.f32 %v1005_v37, %v829_v62  ;;  %v1038_v24 = vadd.f32 %v1006_v33, %v830_v9  ;;  %2210 = vmatpush1.bf16.msra.mxu1 %v5450_v42  ;;  %v5456_v62 = vld [vmem:[%s6389_s24 + $0x130] ss:$8 sps:$4 sm:$0xff]  }
 0x1ca   : > { %v1315_v31 = vadd.f32 %v1283_v11, %v1107_v44  ;;  %v1316_v58 = vadd.f32 %v1284_v43, %v1108_v32  ;;  %v1243_v5 = vadd.f32 %v1211_v26, %v1035_v0  ;;  %v1244_v55 = vadd.f32 %v1212_v56, %v1036_v7  ;;  %2211 = vmatprep.subr.bf16.mxu1 %v5451_v38  ;;  %v5457_v7 = vld [vmem:[%s6389_s24 + $0x144] ss:$8 sps:$4 sm:$0xff]  }
 0x1cb   : > { %v1245_v48 = vadd.f32 %v1213_v25, %v1037_v51  ;;  %v1246_v34 = vadd.f32 %v1214_v46, %v1038_v24  ;;  %v8141_v46 = vld [vmem:[#allocation33_spill] sm:$0xff] }
 0x1cc   : > { %v1361_v2 = vpop.permute.xlu1 %1360 }
 0x1cd   : > { %5395 = vset.pattern.permute.xlu1 %v8102_v10  ;;  %v1419_v41 = vmul.f32 %v6753_v52, %v1361_v2  ;;  %v1420_v59 = vmul.f32 %v6756_v50, %v1361_v2  ;;  %v1491_v8 = vmul.f32 %v6680_v57, %v1361_v2  ;;  %v1492_v29 = vmul.f32 %v6682_v60, %v1361_v2  ;;  %v5453_v10 = vld [vmem:[%s6389_s24 + $0x120] ss:$8 sps:$4 sm:$0xff]  }
 0x1ce   : > { %1392 = vperm.xlu1 %5395, %v8130_v14   ;;  %2212 = vmatpush1.bf16.msra.mxu1 %v5453_v10  ;;  %v5460_v10 = vld [vmem:[%s6389_s24 + $0x154] ss:$8 sps:$4 sm:$0xff]  }
 0x1cf   : > { %v1451_v44 = vadd.f32 %v1419_v41, %v1243_v5  ;;  %v1452_v32 = vadd.f32 %v1420_v59, %v1244_v55  ;;  %v7120_v37 = vadd.f32 %v1491_v8, %v1315_v31  ;;  %v7122_v33 = vadd.f32 %v1492_v29, %v1316_v58  ;;  %2213 = vmatprep.subr.bf16.mxu1 %v5454_v39 }
 0x1d0   : > { %v1365_v1 = vpop.permute.xlu1 %1364  ;;  %v873_v31 = vmul.f32 %v8112_v53, %v8141_v46  ;;  %v874_v58 = vmul.f32 %v8113_v4, %v8141_v46 }
 0x1d1   : > { %8137 = vst [vmem:[#allocation26_spill] sm:$0xff] %v7120_v37  ;;  %8138 = vst [vmem:[#allocation47_spill] sm:$0xff] %v7122_v33  ;;  %v1421_v26 = vmul.f32 %v6753_v52, %v1365_v1  ;;  %v1422_v56 = vmul.f32 %v6756_v50, %v1365_v1  ;;  %v1493_v14 = vmul.f32 %v6680_v57, %v1365_v1  ;;  %v8143_v37 = vld [vmem:[#allocation48_spill] sm:$0xff] }
 0x1d2   : > { %v1494_v11 = vmul.f32 %v6682_v60, %v1365_v1  ;;  %v1568_v43 = vadd.f32 %v6771_v19, %v1452_v32  ;;  %v1567_v45 = vadd.f32 %v6768_v17, %v1451_v44  ;;  %2214 = vmatpush1.bf16.msra.mxu1 %v5456_v62  ;;  %v5465_v62 = vld [vmem:[%s6389_s24 + $0x160] ss:$8 sps:$4 sm:$0xff]   ;;  %v1425_v63 = vmul.f32 %v6753_v52, %v8143_v37 }
 0x1d3   : > { %v1453_v9 = vadd.f32 %v1421_v26, %v1245_v48  ;;  %v1454_v0 = vadd.f32 %v1422_v56, %v1246_v34  ;;  %v7132_v42 = vadd.f32 %v1493_v14, %v1317_v23  ;;  %v594_v23 = vpop.permute.xlu0 %593  ;;  %2215 = vmatprep.subr.bf16.mxu1 %v5457_v7  ;;  %v5462_v26 = vld [vmem:[%s6389_s24 + $0x150] ss:$8 sps:$4 sm:$0xff]   ;;  %v1426_v35 = vmul.f32 %v6756_v50, %v8143_v37 }
 0x1d4   : > { %v7134_v25 = vadd.f32 %v1494_v11, %v1318_v36  ;;  %v5459_v36 = vld [vmem:[%s6389_s24 + $0x140] ss:$8 sps:$4 sm:$0xff]   ;;  %v1600_v41 = vmax.f32 %v1568_v43, 0.0  ;;  %v1599_v8 = vmax.f32 %v1567_v45, 0.0  ;;  %v695_v32 = vmul.f32 %v6602_v12, %v594_v23  ;;  %v5463_v11 = vld [vmem:[%s6389_s24 + $0x164] ss:$8 sps:$4 sm:$0xff]  }
 0x1d5   : > { %8139 = vst [vmem:[#allocation45_spill] sm:$0xff] %v7132_v42  ;;  %v599_v51 = vpop.permute.xlu1 %598  ;;  %v1570_v24 = vadd.f32 %v6771_v19, %v1454_v0  ;;  %v1569_v5 = vadd.f32 %v6768_v17, %v1453_v9  ;;  %v696_v1 = vmul.f32 %v6605_v13, %v594_v23  ;;  %v801_v9 = vmul.f32 %v6641_v28, %v8141_v46 }
 0x1d6   : > { %8140 = vst [vmem:[#allocation36_spill] sm:$0xff] %v7134_v25  ;;  %v697_v55 = vmul.f32 %v6602_v12, %v599_v51  ;;  %v698_v2 = vmul.f32 %v6605_v13, %v599_v51  ;;  %2216 = vmatpush1.bf16.msra.mxu1 %v5459_v36  ;;  %v802_v0 = vmul.f32 %v8122_v61, %v8141_v46 }
 0x1d7   : > { %v1602_v59 = vmax.f32 %v1570_v24, 0.0  ;;  %v1601_v29 = vmax.f32 %v1569_v5, 0.0  ;;  %2217 = vmatprep.subr.bf16.mxu1 %v5460_v10  ;;  %v657_v36 = vmul.f32 %v8134_v40, %v599_v51  ;;  %v655_v46 = vmul.f32 %v8134_v40, %v594_v23 }
 0x1d8   : > { %v905_v38 = vadd.f32 %v873_v31, %v697_v55  ;;  %v906_v44 = vadd.f32 %v874_v58, %v698_v2  ;;  %v5466_v31 = vld [vmem:[%s6389_s24 + $0x174] ss:$8 sps:$4 sm:$0xff]  }
 0x1d9   : > { %v1626_v48 = vpack.c.bf16 %v1602_v59, %v1600_v41  ;;  %v1625_v34 = vpack.c.bf16 %v1601_v29, %v1599_v8  ;;  %v8142_v58 = vld [vmem:[#allocation43_spill] sm:$0xff]  ;;  %v658_v41 = vmul.f32 %v8135_v27, %v599_v51  ;;  %v656_v59 = vmul.f32 %v8135_v27, %v594_v23 }
 0x1da   : > { %v745_v39 = vpop.permute.xlu1 %744  ;;  %2218 = vmatpush1.bf16.msra.mxu1 %v5462_v26  ;;  %v1287_v24 = vmul.f32 %v8125_v6, %v8142_v58  ;;  %v1288_v5 = vmul.f32 %v8126_v30, %v8142_v58  ;;  %v1215_v10 = vmul.f32 %v6689_v21, %v8142_v58  ;;  %v1216_v51 = vmul.f32 %v6750_v54, %v8142_v58 }
 0x1db   : > { %v871_v56 = vmul.f32 %v8112_v53, %v745_v39  ;;  %v872_v14 = vmul.f32 %v8113_v4, %v745_v39  ;;  %1902 = vmatprep.mubr.bf16.mxu0 %v1626_v48  ;;  %2219 = vmatprep.subr.bf16.mxu1 %v5463_v11  ;;  %v799_v8 = vmul.f32 %v6641_v28, %v745_v39  ;;  %v7170_v48 = vpop.permute.xlu0 %618 }
 0x1dc   : > { %1903 = vmatmul.mubr.bf16.gmra.mrb[12].mxu0 %v1625_v34  ;;  %v800_v29 = vmul.f32 %v8122_v61, %v745_v39  ;;  %v5468_v34 = vld [vmem:[%s6389_s24 + $0x170] ss:$8 sps:$4 sm:$0xff]   ;;  %v5469_v39 = vld [vmem:[%s6389_s24 + $0x184] ss:$8 sps:$4 sm:$0xff]  }
 0x1dd   : > { %v903_v43 = vadd.f32 %v871_v56, %v695_v32  ;;  %v904_v45 = vadd.f32 %v872_v14, %v696_v1  ;;  %v831_v25 = vadd.f32 %v799_v8, %v655_v46 }
 0x1de   : > { %2220 = vmatpush1.bf16.msra.mxu1 %v5465_v62  ;;  %v833_v62 = vadd.f32 %v801_v9, %v657_v36  ;;  %v832_v42 = vadd.f32 %v800_v29, %v656_v59  ;;  %v1498_v9 = vmul.f32 %v6682_v60, %v8143_v37 }
 0x1df   : > { %v953_v7 = vpop.permute.xlu1 %952  ;;  %2221 = vmatprep.subr.bf16.mxu1 %v5466_v31  ;;  %v5471_v31 = vld [vmem:[%s6389_s24 + $0x180] ss:$8 sps:$4 sm:$0xff]  }
 0x1e0   : > { %v1079_v55 = vmul.f32 %v6607_v15, %v953_v7  ;;  %v1080_v2 = vmul.f32 %v6609_v16, %v953_v7  ;;  %v1007_v26 = vmul.f32 %v8133_v3, %v953_v7  ;;  %v1008_v23 = vmul.f32 %v6678_v49, %v953_v7 }
 0x1e2   : > { %v1111_v32 = vadd.f32 %v1079_v55, %v903_v43  ;;  %v1112_v1 = vadd.f32 %v1080_v2, %v904_v45  ;;  %v834_v55 = vadd.f32 %v802_v0, %v658_v41  ;;  %2222 = vmatpush1.bf16.msra.mxu1 %v5468_v34  ;;  %v5472_v0 = vld [vmem:[%s6389_s24 + $0x194] ss:$8 sps:$4 sm:$0xff]   ;;  %v7194_v41 = vpop.permute.xlu0 %623 }
 0x1e3   : > { %v957_v56 = vpop.permute.xlu1 %956  ;;  %2223 = vmatprep.subr.bf16.mxu1 %v5469_v39 }
 0x1e4   : > { %v1009_v14 = vmul.f32 %v8133_v3, %v957_v56  ;;  %v1010_v11 = vmul.f32 %v6678_v49, %v957_v56  ;;  %v1081_v43 = vmul.f32 %v6607_v15, %v957_v56  ;;  %v1082_v45 = vmul.f32 %v6609_v16, %v957_v56 }
 0x1e5   : > { %v1319_v58 = vadd.f32 %v1287_v24, %v1111_v32  ;;  %v1320_v2 = vadd.f32 %v1288_v5, %v1112_v1  ;;  %v1497_v56 = vmul.f32 %v6680_v57, %v8143_v37  ;;  %v5474_v37 = vld [vmem:[%s6389_s24 + $0x190] ss:$8 sps:$4 sm:$0xff]  }
 0x1e6   : > { %v1113_v7 = vadd.f32 %v1081_v43, %v905_v38  ;;  %v1114_v33 = vadd.f32 %v1082_v45, %v906_v44  ;;  %v1039_v38 = vadd.f32 %v1007_v26, %v831_v25  ;;  %v1040_v44 = vadd.f32 %v1008_v23, %v832_v42  ;;  %2224 = vmatpush1.bf16.msra.mxu1 %v5471_v31  ;;  %v5475_v25 = vld [vmem:[%s6389_s24 + $0x1a4] ss:$8 sps:$4 sm:$0xff]  }
 0x1e7   : > { %v1041_v24 = vadd.f32 %v1009_v14, %v833_v62  ;;  %v1042_v5 = vadd.f32 %v1010_v11, %v834_v55  ;;  %2225 = vmatprep.subr.bf16.mxu1 %v5472_v0 }
 0x1e8   : > { %v1165_v36 = vpop.permute.xlu1 %1164  ;;  %v1247_v26 = vadd.f32 %v1215_v10, %v1039_v38  ;;  %v1248_v23 = vadd.f32 %v1216_v51, %v1040_v44 }
 0x1e9   : > { %v1217_v46 = vmul.f32 %v6689_v21, %v1165_v36  ;;  %v1218_v59 = vmul.f32 %v6750_v54, %v1165_v36  ;;  %v1289_v8 = vmul.f32 %v8125_v6, %v1165_v36  ;;  %v1290_v29 = vmul.f32 %v8126_v30, %v1165_v36 }
 0x1ea   : > { %2226 = vmatpush1.bf16.msra.mxu1 %v5474_v37 }
 0x1eb   : > { %v1249_v32 = vadd.f32 %v1217_v46, %v1041_v24  ;;  %v1250_v1 = vadd.f32 %v1218_v59, %v1042_v5  ;;  %v1321_v42 = vadd.f32 %v1289_v8, %v1113_v7  ;;  %v1322_v34 = vadd.f32 %v1290_v29, %v1114_v33  ;;  %v753_v7 = vpop.permute.xlu0 %752  ;;  %v5477_v33 = vld [vmem:[%s6389_s24 + $0x1a0] ss:$8 sps:$4 sm:$0xff]   ;;  %2227 = vmatprep.subr.bf16.mxu1 %v5475_v25  ;;  %v5480_v59 = vld [vmem:[%s6389_s24 + $0x1b0] ss:$8 sps:$4 sm:$0xff]  }
 0x1ec   : > { %v875_v44 = vmul.f32 %v8112_v53, %v753_v7  ;;  %v876_v24 = vmul.f32 %v8113_v4, %v753_v7 }
 0x1ed   : > { %v1369_v39 = vpop.permute.xlu1 %1368  ;;  %v1458_v14 = vadd.f32 %v1426_v35, %v1250_v1  ;;  %v1457_v11 = vadd.f32 %v1425_v63, %v1249_v32  ;;  %v7202_v43 = vadd.f32 %v1497_v56, %v1321_v42  ;;  %v7204_v45 = vadd.f32 %v1498_v9, %v1322_v34  ;;  %v5478_v63 = vld [vmem:[%s6389_s24 + $0x1b4] ss:$8 sps:$4 sm:$0xff]  }
 0x1ee   : > { %v1423_v62 = vmul.f32 %v6753_v52, %v1369_v39  ;;  %v1424_v55 = vmul.f32 %v6756_v50, %v1369_v39  ;;  %v1495_v31 = vmul.f32 %v6680_v57, %v1369_v39  ;;  %v1496_v0 = vmul.f32 %v6682_v60, %v1369_v39  ;;  %2228 = vmatpush1.bf16.msra.mxu1 %v5477_v33  ;;  %v5483_v39 = vld [vmem:[%s6389_s24 + $0x1c0] ss:$8 sps:$4 sm:$0xff]  }
 0x1ef   : > { %8144 = vst [vmem:[#allocation46_spill] sm:$0xff] %v7204_v45  ;;  %v1574_v10 = vadd.f32 %v6771_v19, %v1458_v14  ;;  %v1573_v35 = vadd.f32 %v6768_v17, %v1457_v11  ;;  %2229 = vmatprep.subr.bf16.mxu1 %v5478_v63  ;;  %v5484_v14 = vld [vmem:[%s6389_s24 + $0x1d4] ss:$8 sps:$4 sm:$0xff]   ;;  %v1085_v11 = vmul.f32 %v6607_v15, %v7031_v18 }
 0x1f0   : > { %v1455_v51 = vadd.f32 %v1423_v62, %v1247_v26  ;;  %v1456_v56 = vadd.f32 %v1424_v55, %v1248_v23  ;;  %v7214_v9 = vadd.f32 %v1495_v31, %v1319_v58  ;;  %v7216_v38 = vadd.f32 %v1496_v0, %v1320_v2  ;;  %v5481_v2 = vld [vmem:[%s6389_s24 + $0x1c4] ss:$8 sps:$4 sm:$0xff]  }
 0x1f1   : > { %v1606_v37 = vmax.f32 %v1574_v10, 0.0  ;;  %v1605_v1 = vmax.f32 %v1573_v35, 0.0  ;;  %v1086_v62 = vmul.f32 %v6609_v16, %v7031_v18  ;;  %v803_v35 = vmul.f32 %v6641_v28, %v753_v7 }
 0x1f2   : > { %v604_v5 = vpop.permute.xlu1 %603  ;;  %v1572_v36 = vadd.f32 %v6771_v19, %v1456_v56  ;;  %v1571_v46 = vadd.f32 %v6768_v17, %v1455_v51  ;;  %2230 = vmatpush1.bf16.msra.mxu1 %v5480_v59  ;;  %v804_v63 = vmul.f32 %v8122_v61, %v753_v7 }
 0x1f3   : > { %v699_v8 = vmul.f32 %v6602_v12, %v604_v5  ;;  %v700_v58 = vmul.f32 %v6605_v13, %v604_v5  ;;  %2231 = vmatprep.subr.bf16.mxu1 %v5481_v2  ;;  %v659_v51 = vmul.f32 %v8134_v40, %v604_v5  ;;  %v660_v56 = vmul.f32 %v8135_v27, %v604_v5  ;;  %v5489_v5 = vld [vmem:[%s6389_s24 + $0x1e0] ss:$8 sps:$4 sm:$0xff]  }
 0x1f4   : > { %v1604_v29 = vmax.f32 %v1572_v36, 0.0  ;;  %v1603_v32 = vmax.f32 %v1571_v46, 0.0  ;;  %v5486_v36 = vld [vmem:[%s6389_s24 + $0x1d0] ss:$8 sps:$4 sm:$0xff]  }
 0x1f5   : > { %v907_v25 = vadd.f32 %v875_v44, %v699_v8  ;;  %v908_v42 = vadd.f32 %v876_v24, %v700_v58 }
 0x1f6   : > { %v609_v34 = vpop.permute.xlu1 %608  ;;  %v1628_v26 = vpack.c.bf16 %v1606_v37, %v1604_v29  ;;  %v1627_v23 = vpack.c.bf16 %v1605_v1, %v1603_v32  ;;  %2232 = vmatpush1.bf16.msra.mxu1 %v5483_v39  ;;  %v5487_v37 = vld [vmem:[%s6389_s24 + $0x1e4] ss:$8 sps:$4 sm:$0xff]   ;;  %v835_v32 = vadd.f32 %v803_v35, %v659_v51  ;;  %v836_v1 = vadd.f32 %v804_v63, %v660_v56 }
 0x1f7   : > { %2233 = vmatprep.subr.bf16.mxu1 %v5484_v14  ;;  %v701_v31 = vmul.f32 %v6602_v12, %v609_v34  ;;  %v702_v0 = vmul.f32 %v6605_v13, %v609_v34  ;;  %v1014_v56 = vmul.f32 %v6678_v49, %v7031_v18 }
 0x1f8   : > { %1912 = vmatprep.mubr.bf16.mxu0 %v1628_v26  ;;  %v5490_v26 = vld [vmem:[%s6389_s24 + $0x1f4] ss:$8 sps:$4 sm:$0xff]  }
 0x1f9   : > { %1913 = vmatmul.mubr.bf16.gmra.mrb[16].mxu0 %v1627_v23 }
 0x1fa   : > { %2234 = vmatpush1.bf16.msra.mxu1 %v5486_v36 }
 0x1fb   : > { %v757_v55 = vpop.permute.xlu1 %756  ;;  %2235 = vmatprep.subr.bf16.mxu1 %v5487_v37 }
 0x1fc   : > { %v877_v33 = vmul.f32 %v8112_v53, %v757_v55  ;;  %v878_v10 = vmul.f32 %v8113_v4, %v757_v55  ;;  %v805_v23 = vmul.f32 %v6641_v28, %v757_v55  ;;  %v806_v39 = vmul.f32 %v8122_v61, %v757_v55 }
 0x1fe   : > { %v909_v44 = vadd.f32 %v877_v33, %v701_v31  ;;  %v910_v24 = vadd.f32 %v878_v10, %v702_v0  ;;  %2236 = vmatpush1.bf16.msra.mxu1 %v5489_v5  ;;  %v662_v31 = vmul.f32 %v8135_v27, %v609_v34 }
 0x1ff   : > { %2237 = vmatprep.subr.bf16.mxu1 %v5490_v26 }
 0x200   : > { %v961_v46 = vpop.permute.xlu1 %960  ;;  %v1117_v59 = vadd.f32 %v1085_v11, %v909_v44  ;;  %v1118_v8 = vadd.f32 %v1086_v62, %v910_v24  ;;  %v661_v62 = vmul.f32 %v8134_v40, %v609_v34  ;;  %v838_v44 = vadd.f32 %v806_v39, %v662_v31 }
 0x201   : > { %v1011_v58 = vmul.f32 %v8133_v3, %v961_v46  ;;  %v1012_v2 = vmul.f32 %v6678_v49, %v961_v46  ;;  %v1083_v29 = vmul.f32 %v6607_v15, %v961_v46  ;;  %v1084_v7 = vmul.f32 %v6609_v16, %v961_v46 }
 0x202   : > { %v837_v34 = vadd.f32 %v805_v23, %v661_v62 }
 0x203   : > { %v1115_v14 = vadd.f32 %v1083_v29, %v907_v25  ;;  %v1116_v11 = vadd.f32 %v1084_v7, %v908_v42  ;;  %v1043_v0 = vadd.f32 %v1011_v58, %v835_v32  ;;  %v1044_v33 = vadd.f32 %v1012_v2, %v836_v1  ;;  %v5492_v25 = vld [vmem:[%s6389_s24 + $0x1f0] ss:$8 sps:$4 sm:$0xff]  }
 0x204   : > { %v1013_v42 = vmul.f32 %v8133_v3, %v7031_v18  ;;  %2238 = vmatpush1.bf16.msra.mxu1 %v5492_v25  ;;  %v8145_v2 = vld [vmem:[#allocation51_spill] sm:$0xff] }
 0x205   : > { %v1169_v10 = vpop.permute.xlu1 %1168  ;;  %v1427_v29 = vmul.f32 %v6753_v52, %v8145_v2  ;;  %v1428_v7 = vmul.f32 %v6756_v50, %v8145_v2  ;;  %v1499_v37 = vmul.f32 %v6680_v57, %v8145_v2  ;;  %v1500_v32 = vmul.f32 %v6682_v60, %v8145_v2 }
 0x206   : > { %v1219_v35 = vmul.f32 %v6689_v21, %v1169_v10  ;;  %v1220_v63 = vmul.f32 %v6750_v54, %v1169_v10  ;;  %v1291_v51 = vmul.f32 %v8125_v6, %v1169_v10  ;;  %v1292_v55 = vmul.f32 %v8126_v30, %v1169_v10 }
 0x207   : > { %v1045_v39 = vadd.f32 %v1013_v42, %v837_v34 }
 0x208   : > { %v1251_v24 = vadd.f32 %v1219_v35, %v1043_v0  ;;  %v1252_v36 = vadd.f32 %v1220_v63, %v1044_v33  ;;  %v1323_v46 = vadd.f32 %v1291_v51, %v1115_v14  ;;  %v1324_v58 = vadd.f32 %v1292_v55, %v1116_v11 }
 0x209   : > { %v1173_v18 = vpop.permute.xlu1 %1172  ;;  %v1046_v14 = vadd.f32 %v1014_v56, %v838_v44 }
 0x20a   : > { %v1221_v1 = vmul.f32 %v6689_v21, %v1173_v18  ;;  %v1222_v5 = vmul.f32 %v6750_v54, %v1173_v18  ;;  %v1293_v26 = vmul.f32 %v8125_v6, %v1173_v18  ;;  %v1294_v23 = vmul.f32 %v8126_v30, %v1173_v18 }
 0x20b   : > { %v7273_v11 = vadd.f32 %v1499_v37, %v1323_v46  ;;  %v7275_v62 = vadd.f32 %v1500_v32, %v1324_v58  ;;  %v1460_v31 = vadd.f32 %v1428_v7, %v1252_v36  ;;  %v1459_v0 = vadd.f32 %v1427_v29, %v1251_v24 }
 0x20c   : > { %v1325_v33 = vadd.f32 %v1293_v26, %v1117_v59  ;;  %v1326_v10 = vadd.f32 %v1294_v23, %v1118_v8  ;;  %v1253_v35 = vadd.f32 %v1221_v1, %v1045_v39  ;;  %v1254_v63 = vadd.f32 %v1222_v5, %v1046_v14 }
 0x20d   : > { %8146 = vst [vmem:[#allocation34_spill] sm:$0xff] %v7273_v11  ;;  %8147 = vst [vmem:[#allocation35_spill] sm:$0xff] %v7275_v62  ;;  %v1576_v56 = vadd.f32 %v6771_v19, %v1460_v31  ;;  %v1575_v34 = vadd.f32 %v6768_v17, %v1459_v0  ;;  %v7293_v31 = vpop.permute.xlu0 %772  ;;  %v705_v0 = vmul.f32 %v6602_v12, %v7170_v48 }
 0x20e   : > { %v1381_v51 = vpop.permute.xlu1 %1380 }
 0x20f   : > { %v1429_v55 = vmul.f32 %v6753_v52, %v1381_v51  ;;  %v1430_v25 = vmul.f32 %v6756_v50, %v1381_v51  ;;  %v1501_v2 = vmul.f32 %v6680_v57, %v1381_v51  ;;  %v1502_v42 = vmul.f32 %v6682_v60, %v1381_v51 }
 0x210   : > { %v1608_v29 = vmax.f32 %v1576_v56, 0.0  ;;  %v1607_v37 = vmax.f32 %v1575_v34, 0.0  ;;  %v1088_v51 = vmul.f32 %v6609_v16, %v7050_v22 }
 0x211   : > { %v1461_v44 = vadd.f32 %v1429_v55, %v1253_v35  ;;  %v1462_v36 = vadd.f32 %v1430_v25, %v1254_v63  ;;  %v7283_v24 = vadd.f32 %v1501_v2, %v1325_v33  ;;  %v7285_v59 = vadd.f32 %v1502_v42, %v1326_v10 }
 0x212   : > { %v706_v33 = vmul.f32 %v6605_v13, %v7170_v48  ;;  %v1087_v63 = vmul.f32 %v6607_v15, %v7050_v22 }
 0x213   : > { %8148 = vst [vmem:[#allocation28_spill] sm:$0xff] %v7283_v24  ;;  %8149 = vst [vmem:[#allocation27_spill] sm:$0xff] %v7285_v59  ;;  %v614_v8 = vpop.permute.xlu1 %613  ;;  %v1578_v46 = vadd.f32 %v6771_v19, %v1462_v36  ;;  %v1577_v58 = vadd.f32 %v6768_v17, %v1461_v44  ;;  %v1181_v36 = vpop.permute.xlu0 %1180 }
 0x214   : > { %v703_v26 = vmul.f32 %v6602_v12, %v614_v8  ;;  %v704_v23 = vmul.f32 %v6605_v13, %v614_v8 }
 0x215   : > { %v1610_v7 = vmax.f32 %v1578_v46, 0.0  ;;  %v1609_v32 = vmax.f32 %v1577_v58, 0.0 }
 0x217   : > { %v1630_v18 = vpack.c.bf16 %v1610_v7, %v1608_v29  ;;  %v1629_v1 = vpack.c.bf16 %v1609_v32, %v1607_v37  ;;  %v1297_v32 = vmul.f32 %v8125_v6, %v1181_v36 }
 0x218   : > { %v761_v5 = vpop.permute.xlu1 %760 }
 0x219   : > { %v879_v39 = vmul.f32 %v8112_v53, %v761_v5  ;;  %v880_v14 = vmul.f32 %v8113_v4, %v761_v5  ;;  %1922 = vmatprep.mubr.bf16.mxu0 %v1630_v18  ;;  %v807_v46 = vmul.f32 %v6641_v28, %v761_v5  ;;  %v808_v58 = vmul.f32 %v8122_v61, %v761_v5 }
 0x21a   : > { %1923 = vmatmul.mubr.bf16.gmra.mrb[20].mxu0 %v1629_v1  ;;  %v1298_v18 = vmul.f32 %v8126_v30, %v1181_v36  ;;  %v663_v1 = vmul.f32 %v8134_v40, %v614_v8  ;;  %v666_v5 = vmul.f32 %v8135_v27, %v7170_v48 }
 0x21b   : > { %v911_v10 = vadd.f32 %v879_v39, %v703_v26  ;;  %v912_v35 = vadd.f32 %v880_v14, %v704_v23  ;;  %v664_v26 = vmul.f32 %v8135_v27, %v614_v8  ;;  %v665_v14 = vmul.f32 %v8134_v40, %v7170_v48 }
 0x21c   : > { %v765_v55 = vpop.permute.xlu1 %764  ;;  %v1016_v8 = vmul.f32 %v6678_v49, %v7050_v22 }
 0x21d   : > { %v881_v25 = vmul.f32 %v8112_v53, %v765_v55  ;;  %v882_v2 = vmul.f32 %v8113_v4, %v765_v55  ;;  %v1119_v42 = vadd.f32 %v1087_v63, %v911_v10  ;;  %v1120_v56 = vadd.f32 %v1088_v51, %v912_v35 }
 0x21e   : > { %v809_v10 = vmul.f32 %v6641_v28, %v765_v55  ;;  %v810_v35 = vmul.f32 %v8122_v61, %v765_v55 }
 0x21f   : > { %v913_v34 = vadd.f32 %v881_v25, %v705_v0  ;;  %v914_v44 = vadd.f32 %v882_v2, %v706_v33  ;;  %v839_v0 = vadd.f32 %v807_v46, %v663_v1  ;;  %v840_v33 = vadd.f32 %v808_v58, %v664_v26 }
 0x220   : > { %v1015_v25 = vmul.f32 %v8133_v3, %v7050_v22  ;;  %v1225_v22 = vmul.f32 %v6689_v21, %v1181_v36 }
 0x221   : > { %v973_v29 = vpop.permute.xlu1 %972 }
 0x222   : > { %v1089_v7 = vmul.f32 %v6607_v15, %v973_v29  ;;  %v1090_v37 = vmul.f32 %v6609_v16, %v973_v29  ;;  %v1017_v2 = vmul.f32 %v8133_v3, %v973_v29 }
 0x224   : > { %v1121_v23 = vadd.f32 %v1089_v7, %v913_v34  ;;  %v1122_v39 = vadd.f32 %v1090_v37, %v914_v44  ;;  %v1018_v34 = vmul.f32 %v6678_v49, %v973_v29  ;;  %v1047_v7 = vadd.f32 %v1015_v25, %v839_v0 }
 0x225   : > { %v1048_v37 = vadd.f32 %v1016_v8, %v840_v33 }
 0x226   : > { %v1329_v63 = vadd.f32 %v1297_v32, %v1121_v23  ;;  %v1330_v51 = vadd.f32 %v1298_v18, %v1122_v39  ;;  %v841_v32 = vadd.f32 %v809_v10, %v665_v14  ;;  %v842_v18 = vadd.f32 %v810_v35, %v666_v5 }
 0x227   : > { %v1177_v44 = vpop.permute.xlu1 %1176  ;;  %v1226_v23 = vmul.f32 %v6750_v54, %v1181_v36 }
 0x228   : > { %v1223_v48 = vmul.f32 %v6689_v21, %v1177_v44  ;;  %v1224_v46 = vmul.f32 %v6750_v54, %v1177_v44  ;;  %v1295_v58 = vmul.f32 %v8125_v6, %v1177_v44  ;;  %v1296_v55 = vmul.f32 %v8126_v30, %v1177_v44 }
 0x229   : > { %v1049_v29 = vadd.f32 %v1017_v2, %v841_v32  ;;  %v1050_v39 = vadd.f32 %v1018_v34, %v842_v18 }
 0x22a   : > { %v1327_v1 = vadd.f32 %v1295_v58, %v1119_v42  ;;  %v1328_v26 = vadd.f32 %v1296_v55, %v1120_v56  ;;  %v1255_v59 = vadd.f32 %v1223_v48, %v1047_v7  ;;  %v1256_v24 = vadd.f32 %v1224_v46, %v1048_v37 }
 0x22b   : > { %v1257_v36 = vadd.f32 %v1225_v22, %v1049_v29  ;;  %v1258_v10 = vadd.f32 %v1226_v23, %v1050_v39  ;;  %v885_v48 = vmul.f32 %v8112_v53, %v7293_v31  ;;  %v886_v46 = vmul.f32 %v8113_v4, %v7293_v31 }
 0x22c   : > { %v1385_v62 = vpop.permute.xlu1 %1384 }
 0x22d   : > { %v1431_v11 = vmul.f32 %v6753_v52, %v1385_v62  ;;  %v1432_v45 = vmul.f32 %v6756_v50, %v1385_v62  ;;  %v1503_v0 = vmul.f32 %v6680_v57, %v1385_v62  ;;  %v1504_v14 = vmul.f32 %v6682_v60, %v1385_v62 }
 0x22f   : > { %v1463_v5 = vadd.f32 %v1431_v11, %v1255_v59  ;;  %v1464_v42 = vadd.f32 %v1432_v45, %v1256_v24  ;;  %v7335_v56 = vadd.f32 %v1503_v0, %v1327_v1  ;;  %v7337_v33 = vadd.f32 %v1504_v14, %v1328_v26 }
 0x230   : > { %v1389_v35 = vpop.permute.xlu1 %1388  ;;  %v707_v0 = vmul.f32 %v6602_v12, %v7194_v41  ;;  %v708_v14 = vmul.f32 %v6605_v13, %v7194_v41 }
 0x231   : > { %v1433_v25 = vmul.f32 %v6753_v52, %v1389_v35  ;;  %v1434_v8 = vmul.f32 %v6756_v50, %v1389_v35  ;;  %v1505_v2 = vmul.f32 %v6680_v57, %v1389_v35  ;;  %v1506_v34 = vmul.f32 %v6682_v60, %v1389_v35  ;;  %v1185_v35 = vpop.permute.xlu0 %1184 }
 0x232   : > { %v1580_v44 = vadd.f32 %v6771_v19, %v1464_v42  ;;  %v1579_v11 = vadd.f32 %v6768_v17, %v1463_v5 }
 0x233   : > { %v1465_v45 = vadd.f32 %v1433_v25, %v1257_v36  ;;  %v1466_v62 = vadd.f32 %v1434_v8, %v1258_v10  ;;  %v7345_v24 = vadd.f32 %v1505_v2, %v1329_v63  ;;  %v7347_v59 = vadd.f32 %v1506_v34, %v1330_v51 }
 0x234   : > { %v1612_v18 = vmax.f32 %v1580_v44, 0.0  ;;  %v1611_v1 = vmax.f32 %v1579_v11, 0.0  ;;  %v667_v25 = vmul.f32 %v8134_v40, %v7194_v41  ;;  %v668_v8 = vmul.f32 %v8135_v27, %v7194_v41 }
 0x235   : > { %v629_v58 = vpop.permute.xlu1 %628  ;;  %v1582_v55 = vadd.f32 %v6771_v19, %v1466_v62  ;;  %v1581_v7 = vadd.f32 %v6768_v17, %v1465_v45  ;;  %v1299_v11 = vmul.f32 %v8125_v6, %v1185_v35  ;;  %v1300_v45 = vmul.f32 %v8126_v30, %v1185_v35 }
 0x236   : > { %v709_v37 = vmul.f32 %v6602_v12, %v629_v58  ;;  %v710_v32 = vmul.f32 %v6605_v13, %v629_v58  ;;  %v813_v12 = vmul.f32 %v6641_v28, %v7293_v31  ;;  %v814_v13 = vmul.f32 %v8122_v61, %v7293_v31 }
 0x237   : > { %v1614_v63 = vmax.f32 %v1582_v55, 0.0  ;;  %v1613_v51 = vmax.f32 %v1581_v7, 0.0  ;;  %v669_v34 = vmul.f32 %v8134_v40, %v629_v58  ;;  %v670_v44 = vmul.f32 %v8135_v27, %v629_v58 }
 0x238   : > { %v917_v26 = vadd.f32 %v885_v48, %v709_v37  ;;  %v918_v22 = vadd.f32 %v886_v46, %v710_v32  ;;  %v1227_v7 = vmul.f32 %v6689_v21, %v1185_v35  ;;  %v1228_v40 = vmul.f32 %v6750_v54, %v1185_v35 }
 0x239   : > { %v1632_v23 = vpack.c.bf16 %v1614_v63, %v1612_v18  ;;  %v1631_v29 = vpack.c.bf16 %v1613_v51, %v1611_v1  ;;  %v845_v18 = vadd.f32 %v813_v12, %v669_v34  ;;  %v846_v63 = vadd.f32 %v814_v13, %v670_v44 }
 0x23a   : > { %v769_v39 = vpop.permute.xlu1 %768 }
 0x23b   : > { %v883_v5 = vmul.f32 %v8112_v53, %v769_v39  ;;  %v884_v42 = vmul.f32 %v8113_v4, %v769_v39  ;;  %1932 = vmatprep.mubr.bf16.mxu0 %v1632_v23  ;;  %v811_v41 = vmul.f32 %v6641_v28, %v769_v39  ;;  %v812_v62 = vmul.f32 %v8122_v61, %v769_v39  ;;  %v1397_v61 = vpop.permute.xlu0 %1396 }
 0x23c   : > { %1933 = vmatmul.mubr.bf16.gmra.mrb[24].mxu0 %v1631_v29 }
 0x23d   : > { %v915_v36 = vadd.f32 %v883_v5, %v707_v0  ;;  %v916_v10 = vadd.f32 %v884_v42, %v708_v14  ;;  %v843_v23 = vadd.f32 %v811_v41, %v667_v25  ;;  %v844_v29 = vadd.f32 %v812_v62, %v668_v8 }
 0x23e   : > { %v1437_v14 = vmul.f32 %v6753_v52, %v1397_v61  ;;  %v1438_v5 = vmul.f32 %v6756_v50, %v1397_v61 }
 0x23f   : > { %v977_v2 = vpop.permute.xlu1 %976 }
 0x240   : > { %v1091_v53 = vmul.f32 %v6607_v15, %v977_v2  ;;  %v1092_v4 = vmul.f32 %v6609_v16, %v977_v2  ;;  %v1019_v31 = vmul.f32 %v8133_v3, %v977_v2  ;;  %v1020_v55 = vmul.f32 %v6678_v49, %v977_v2 }
 0x242   : > { %v1123_v48 = vadd.f32 %v1091_v53, %v915_v36  ;;  %v1124_v46 = vadd.f32 %v1092_v4, %v916_v10  ;;  %v1052_v42 = vadd.f32 %v1020_v55, %v844_v29 }
 0x243   : > { %v981_v37 = vpop.permute.xlu1 %980 }
 0x244   : > { %v1021_v27 = vmul.f32 %v8133_v3, %v981_v37  ;;  %v1022_v58 = vmul.f32 %v6678_v49, %v981_v37  ;;  %v1093_v32 = vmul.f32 %v6607_v15, %v981_v37  ;;  %v1094_v28 = vmul.f32 %v6609_v16, %v981_v37 }
 0x245   : > { %v1331_v1 = vadd.f32 %v1299_v11, %v1123_v48  ;;  %v1332_v51 = vadd.f32 %v1300_v45, %v1124_v46  ;;  %v1509_v3 = vmul.f32 %v6680_v57, %v1397_v61  ;;  %v1510_v49 = vmul.f32 %v6682_v60, %v1397_v61 }
 0x246   : > { %v1125_v39 = vadd.f32 %v1093_v32, %v917_v26  ;;  %v1126_v0 = vadd.f32 %v1094_v28, %v918_v22  ;;  %v1051_v15 = vadd.f32 %v1019_v31, %v843_v23  ;;  %v1053_v16 = vadd.f32 %v1021_v27, %v845_v18  ;;  %v4733_v32 = vld [vmem:[%s6392_s8 + $0x1] ss:$8 sm:$0x3] }
 0x247   : > { %v1054_v36 = vadd.f32 %v1022_v58, %v846_v63  ;;  %v1260_v4 = vadd.f32 %v1228_v40, %v1052_v42  ;;  %v8150_v28 = vld [vmem:[#allocation30_spill] sm:$0xff]  ;;  %v8151_v18 = vld [vmem:[#allocation29_spill] sm:$0xff] }
 0x248   : > { %v1189_v10 = vpop.permute.xlu1 %1188  ;;  %v1259_v53 = vadd.f32 %v1227_v7, %v1051_v15  ;;  %v7413_v61 = vrot.slane %v4733_v32, %v8150_v28  ;;  %v7416_v63 = vrot.slane %v4733_v32, %v8151_v18  ;;  %v5501_v32 = vld [vmem:[%s6389_s24 + $0x224] ss:$8 sps:$4 sm:$0xff]  }
 0x249   : > { %v1229_v35 = vmul.f32 %v6689_v21, %v1189_v10  ;;  %v1230_v25 = vmul.f32 %v6750_v54, %v1189_v10  ;;  %v1301_v26 = vmul.f32 %v8125_v6, %v1189_v10  ;;  %v1302_v22 = vmul.f32 %v8126_v30, %v1189_v10 }
 0x24b   : > { %v1261_v8 = vadd.f32 %v1229_v35, %v1053_v16  ;;  %v1262_v2 = vadd.f32 %v1230_v25, %v1054_v36  ;;  %v1333_v12 = vadd.f32 %v1301_v26, %v1125_v39  ;;  %v1334_v13 = vadd.f32 %v1302_v22, %v1126_v0 }
 0x24d   : > { %v1469_v34 = vadd.f32 %v1437_v14, %v1261_v8  ;;  %v1470_v44 = vadd.f32 %v1438_v5, %v1262_v2  ;;  %v1393_v11 = vpop.permute.xlu1 %1392  ;;  %v7395_v45 = vadd.f32 %v1509_v3, %v1333_v12  ;;  %v7397_v41 = vadd.f32 %v1510_v49, %v1334_v13 }
 0x24e   : > { %v1435_v21 = vmul.f32 %v6753_v52, %v1393_v11  ;;  %v1436_v54 = vmul.f32 %v6756_v50, %v1393_v11  ;;  %v1507_v6 = vmul.f32 %v6680_v57, %v1393_v11  ;;  %v1508_v30 = vmul.f32 %v6682_v60, %v1393_v11 }
 0x24f   : > { %v1586_v62 = vadd.f32 %v6771_v19, %v1470_v44  ;;  %v1585_v48 = vadd.f32 %v6768_v17, %v1469_v34 }
 0x250   : > { %v1467_v46 = vadd.f32 %v1435_v21, %v1259_v53  ;;  %v1468_v31 = vadd.f32 %v1436_v54, %v1260_v4  ;;  %v7405_v55 = vadd.f32 %v1507_v6, %v1331_v1  ;;  %v7407_v7 = vadd.f32 %v1508_v30, %v1332_v51 }
 0x251   : > { %v1618_v37 = vmax.f32 %v1586_v62, 0.0  ;;  %v1617_v27 = vmax.f32 %v1585_v48, 0.0 }
 0x252   : > { %v1584_v40 = vadd.f32 %v6771_v19, %v1468_v31  ;;  %v1583_v52 = vadd.f32 %v6768_v17, %v1467_v46 }
 0x254   : > { %v1616_v50 = vmax.f32 %v1584_v40, 0.0  ;;  %v1615_v57 = vmax.f32 %v1583_v52, 0.0 }
 0x256   : > { %v1634_v60 = vpack.c.bf16 %v1618_v37, %v1616_v50  ;;  %v1633_v58 = vpack.c.bf16 %v1617_v27, %v1615_v57  ;;  %v5493_v57 = vld [vmem:[%s6389_s24 + $0x200] ss:$8 sps:$4 sm:$0xff]   ;;  %v5495_v27 = vld [vmem:[%s6389_s24 + $0x204] ss:$8 sps:$4 sm:$0xff]  }
 0x257   : > { %2574 = vmatprep.subr.bf16.mxu0 %v5495_v27 }
 0x258   : > { %1942 = vmatprep.mubr.bf16.mxu0 %v1634_v60  ;;  %v5498_v60 = vld [vmem:[%s6389_s24 + $0x214] ss:$8 sps:$4 sm:$0xff]   ;;  %2575 = vmatpush1.bf16.msra.mxu0 %v5493_v57 }
 0x259   : > { %1943 = vmatmul.mubr.bf16.gmra.mrb[28].mxu0 %v1633_v58  ;;  %v5496_v58 = vld [vmem:[%s6389_s24 + $0x210] ss:$8 sps:$4 sm:$0xff]   ;;  %2576 = vmatprep.subr.bf16.mxu0 %v5498_v60 }
 0x25a   : > { %v5526_v60 = vld [vmem:[%s6389_s24 + $0x2b0] ss:$8 sps:$4 sm:$0xff]  }
 0x25c   : > { %2577 = vmatpush1.bf16.msra.mxu0 %v5496_v58 }
 0x25d   : > { %2578 = vmatprep.subr.bf16.mxu0 %v5501_v32  ;;  %v5531_v32 = vld [vmem:[%s6389_s24 + $0x2c4] ss:$8 sps:$4 sm:$0xff]  }
 0x27b   : > { %v1874_v1 = vpop.f32.mrb[0].mxu0 }
 0x27c   : > { %v1875_v19 = vadd.f32 %v1874_v1, %v7413_v61  ;;  %v1876_v51 = vpop.f32.mrb[1].mxu0  ;;  %v5499_v1 = vld [vmem:[%s6389_s24 + $0x220] ss:$8 sps:$4 sm:$0xff]  }
 0x27d   : > { %v1877_v17 = vadd.f32 %v1876_v51, %v7416_v63  ;;  %v1878_v23 = vpop.f32.mrb[2].mxu0  ;;  %2579 = vmatpush1.bf16.msra.mxu0 %v5499_v1 }
 0x27e   : > { %v1879_v29 = vadd.f32 %v1878_v23, %v7413_v61  ;;  %v1880_v39 = vpop.f32.mrb[3].mxu0  ;;  %v1953_v14 = vmax.f32 %v1875_v19, 0.0 }
 0x27f   : > { %v1881_v0 = vadd.f32 %v1880_v39, %v7416_v63  ;;  %v1954_v3 = vmax.f32 %v1877_v17, 0.0 }
 0x280   : > { %v1955_v5 = vmax.f32 %v1879_v29, 0.0 }
 0x281   : > { %v1956_v49 = vmax.f32 %v1881_v0, 0.0 }
 0x282   : > { %v1985_v15 = vpack.c.bf16 %v1955_v5, %v1953_v14  ;;  %v5504_v5 = vld [vmem:[%s6389_s24 + $0x234] ss:$8 sps:$4 sm:$0xff]  }
 0x283   : > { %v1884_v42 = vpop.f32.mrb[4].mxu0  ;;  %v1986_v16 = vpack.c.bf16 %v1956_v49, %v1954_v3  ;;  %2580 = vmatprep.subr.bf16.mxu0 %v5504_v5 }
 0x284   : > { %v1885_v36 = vadd.f32 %v1884_v42, %v7413_v61  ;;  %v1886_v10 = vpop.f32.mrb[5].mxu0 }
 0x285   : > { %v1887_v35 = vadd.f32 %v1886_v10, %v7416_v63  ;;  %v1888_v25 = vpop.f32.mrb[6].mxu0  ;;  %2239 = vmatprep.mubr.bf16.mxu1 %v1986_v16 }
 0x286   : > { %v1889_v26 = vadd.f32 %v1888_v25, %v7413_v61  ;;  %v1890_v22 = vpop.f32.mrb[7].mxu0  ;;  %2240 = vmatmul.mubr.bf16.vlgmr.msra.gmra.mrb[0].mxu1 %v1985_v15  ;;  %v1957_v2 = vmax.f32 %v1885_v36, 0.0  ;;  %v5502_v15 = vld [vmem:[%s6389_s24 + $0x230] ss:$8 sps:$4 sm:$0xff]   ;;  %v5507_v36 = vld [vmem:[%s6389_s24 + $0x244] ss:$8 sps:$4 sm:$0xff]  }
 0x287   : > { %v1891_v8 = vadd.f32 %v1890_v22, %v7416_v63  ;;  %v1958_v13 = vmax.f32 %v1887_v35, 0.0  ;;  %2581 = vmatpush1.bf16.msra.mxu0 %v5502_v15  ;;  %v5505_v35 = vld [vmem:[%s6389_s24 + $0x240] ss:$8 sps:$4 sm:$0xff]   ;;  %v5508_v22 = vld [vmem:[%s6389_s24 + $0x250] ss:$8 sps:$4 sm:$0xff]  }
 0x288   : > { %v1959_v12 = vmax.f32 %v1889_v26, 0.0  ;;  %2582 = vmatprep.subr.bf16.mxu0 %v5507_v36  ;;  %v5510_v26 = vld [vmem:[%s6389_s24 + $0x254] ss:$8 sps:$4 sm:$0xff]  }
 0x289   : > { %v1960_v53 = vmax.f32 %v1891_v8, 0.0  ;;  %v5513_v8 = vld [vmem:[%s6389_s24 + $0x264] ss:$8 sps:$4 sm:$0xff]  }
 0x28a   : > { %v1987_v4 = vpack.c.bf16 %v1959_v12, %v1957_v2  ;;  %v5511_v2 = vld [vmem:[%s6389_s24 + $0x260] ss:$8 sps:$4 sm:$0xff]   ;;  %v5516_v12 = vld [vmem:[%s6389_s24 + $0x274] ss:$8 sps:$4 sm:$0xff]  }
 0x28b   : > { %v1988_v34 = vpack.c.bf16 %v1960_v53, %v1958_v13  ;;  %2583 = vmatpush1.bf16.msra.mxu0 %v5505_v35  ;;  %v5514_v13 = vld [vmem:[%s6389_s24 + $0x270] ss:$8 sps:$4 sm:$0xff]   ;;  %v5519_v53 = vld [vmem:[%s6389_s24 + $0x284] ss:$8 sps:$4 sm:$0xff]  }
 0x28c   : > { %2584 = vmatprep.subr.bf16.mxu0 %v5510_v26 }
 0x28d   : > { %2249 = vmatprep.mubr.bf16.mxu1 %v1988_v34  ;;  %v5522_v34 = vld [vmem:[%s6389_s24 + $0x294] ss:$8 sps:$4 sm:$0xff]  }
 0x28e   : > { %2250 = vmatmul.mubr.bf16.gmra.mrb[4].mxu1 %v1987_v4  ;;  %v1894_v44 = vpop.f32.mrb[8].mxu0  ;;  %v5517_v4 = vld [vmem:[%s6389_s24 + $0x280] ss:$8 sps:$4 sm:$0xff]  }
 0x28f   : > { %v1895_v11 = vadd.f32 %v1894_v44, %v7413_v61  ;;  %v1896_v21 = vpop.f32.mrb[9].mxu0  ;;  %2585 = vmatpush1.bf16.msra.mxu0 %v5508_v22  ;;  %v5520_v44 = vld [vmem:[%s6389_s24 + $0x290] ss:$8 sps:$4 sm:$0xff]  }
 0x290   : > { %v1897_v54 = vadd.f32 %v1896_v21, %v7416_v63  ;;  %v1898_v6 = vpop.f32.mrb[10].mxu0  ;;  %2586 = vmatprep.subr.bf16.mxu0 %v5513_v8 }
 0x291   : > { %v1899_v30 = vadd.f32 %v1898_v6, %v7413_v61  ;;  %v1900_v62 = vpop.f32.mrb[11].mxu0  ;;  %v1961_v46 = vmax.f32 %v1895_v11, 0.0  ;;  %v5525_v11 = vld [vmem:[%s6389_s24 + $0x2a4] ss:$8 sps:$4 sm:$0xff]  }
 0x292   : > { %v1901_v48 = vadd.f32 %v1900_v62, %v7416_v63  ;;  %v1962_v40 = vmax.f32 %v1897_v54, 0.0 }
 0x293   : > { %v1963_v31 = vmax.f32 %v1899_v30, 0.0  ;;  %2587 = vmatpush1.bf16.msra.mxu0 %v5511_v2 }
 0x294   : > { %v1964_v52 = vmax.f32 %v1901_v48, 0.0  ;;  %2588 = vmatprep.subr.bf16.mxu0 %v5516_v12  ;;  %v5523_v48 = vld [vmem:[%s6389_s24 + $0x2a0] ss:$8 sps:$4 sm:$0xff]  }
 0x295   : > { %v1989_v50 = vpack.c.bf16 %v1963_v31, %v1961_v46 }
 0x296   : > { %v1990_v37 = vpack.c.bf16 %v1964_v52, %v1962_v40  ;;  %v5528_v40 = vld [vmem:[%s6389_s24 + $0x2b4] ss:$8 sps:$4 sm:$0xff]  }
 0x297   : > { %2589 = vmatpush1.bf16.msra.mxu0 %v5514_v13 }
 0x298   : > { %2259 = vmatprep.mubr.bf16.mxu1 %v1990_v37  ;;  %2590 = vmatprep.subr.bf16.mxu0 %v5519_v53 }
 0x299   : > { %2260 = vmatmul.mubr.bf16.gmra.mrb[8].mxu1 %v1989_v50 }
 0x29b   : > { %2591 = vmatpush1.bf16.msra.mxu0 %v5517_v4 }
 0x29c   : > { %2592 = vmatprep.subr.bf16.mxu0 %v5522_v34 }
 0x29f   : > { %2593 = vmatpush1.bf16.msra.mxu0 %v5520_v44 }
 0x2a0   : > { %2594 = vmatprep.subr.bf16.mxu0 %v5525_v11 }
 0x2a3   : > { %2595 = vmatpush1.bf16.msra.mxu0 %v5523_v48 }
 0x2a4   : > { %2596 = vmatprep.subr.bf16.mxu0 %v5528_v40 }
 0x2a7   : > { %2597 = vmatpush1.bf16.msra.mxu0 %v5526_v60 }
 0x2a8   : > { %2598 = vmatprep.subr.bf16.mxu0 %v5531_v32 }
 0x2af   : > { %v1904_v19 = vpop.f32.mrb[12].mxu0 }
 0x2b0   : > { %v1905_v51 = vadd.f32 %v1904_v19, %v7413_v61  ;;  %v1906_v17 = vpop.f32.mrb[13].mxu0  ;;  %v5529_v19 = vld [vmem:[%s6389_s24 + $0x2c0] ss:$8 sps:$4 sm:$0xff]  }
 0x2b1   : > { %v1907_v23 = vadd.f32 %v1906_v17, %v7416_v63  ;;  %v1908_v29 = vpop.f32.mrb[14].mxu0  ;;  %2599 = vmatpush1.bf16.msra.mxu0 %v5529_v19  ;;  %v5532_v17 = vld [vmem:[%s6389_s24 + $0x2d0] ss:$8 sps:$4 sm:$0xff]  }
 0x2b2   : > { %v1909_v39 = vadd.f32 %v1908_v29, %v7413_v61  ;;  %v1910_v0 = vpop.f32.mrb[15].mxu0  ;;  %v1965_v3 = vmax.f32 %v1905_v51, 0.0  ;;  %v5534_v51 = vld [vmem:[%s6389_s24 + $0x2d4] ss:$8 sps:$4 sm:$0xff]   ;;  %v5535_v29 = vld [vmem:[%s6389_s24 + $0x2e0] ss:$8 sps:$4 sm:$0xff]  }
 0x2b3   : > { %v1911_v14 = vadd.f32 %v1910_v0, %v7416_v63  ;;  %v1966_v42 = vmax.f32 %v1907_v23, 0.0  ;;  %2600 = vmatprep.subr.bf16.mxu0 %v5534_v51  ;;  %v5537_v23 = vld [vmem:[%s6389_s24 + $0x2e4] ss:$8 sps:$4 sm:$0xff]   ;;  %v5538_v0 = vld [vmem:[%s6389_s24 + $0x2f0] ss:$8 sps:$4 sm:$0xff]  }
 0x2b4   : > { %v1967_v49 = vmax.f32 %v1909_v39, 0.0  ;;  %v5540_v39 = vld [vmem:[%s6389_s24 + $0x2f4] ss:$8 sps:$4 sm:$0xff]  }
 0x2b5   : > { %v1968_v16 = vmax.f32 %v1911_v14, 0.0  ;;  %2601 = vmatpush1.bf16.msra.mxu0 %v5532_v17  ;;  %v4798_v17 = vld [vmem:[%s6392_s8 + $0x2] ss:$8 sm:$0x3] }
 0x2b6   : > { %v1991_v10 = vpack.c.bf16 %v1967_v49, %v1965_v3  ;;  %2602 = vmatprep.subr.bf16.mxu0 %v5537_v23  ;;  %v7484_v23 = vrot.slane %v4798_v17, %v8150_v28 }
 0x2b7   : > { %v1992_v25 = vpack.c.bf16 %v1968_v16, %v1966_v42 }
 0x2b9   : > { %2269 = vmatprep.mubr.bf16.mxu1 %v1992_v25  ;;  %2603 = vmatpush1.bf16.msra.mxu0 %v5535_v29  ;;  %v7487_v29 = vrot.slane %v4798_v17, %v8151_v18  ;;  %v5549_v17 = vld [vmem:[%s6389_s24 + $0x324] ss:$8 sps:$4 sm:$0xff]  }
 0x2ba   : > { %2270 = vmatmul.mubr.bf16.gmra.mrb[12].mxu1 %v1991_v10  ;;  %2604 = vmatprep.subr.bf16.mxu0 %v5540_v39 }
 0x2bd   : > { %2605 = vmatpush1.bf16.msra.mxu0 %v5538_v0 }
 0x2cc   : > { %v1914_v21 = vpop.f32.mrb[16].mxu0 }
 0x2cd   : > { %v1915_v54 = vadd.f32 %v1914_v21, %v7413_v61  ;;  %v1916_v6 = vpop.f32.mrb[17].mxu0 }
 0x2ce   : > { %v1917_v30 = vadd.f32 %v1916_v6, %v7416_v63  ;;  %v1918_v62 = vpop.f32.mrb[18].mxu0 }
 0x2cf   : > { %v1919_v46 = vadd.f32 %v1918_v62, %v7413_v61  ;;  %v1920_v31 = vpop.f32.mrb[19].mxu0  ;;  %v1969_v50 = vmax.f32 %v1915_v54, 0.0 }
 0x2d0   : > { %v1921_v52 = vadd.f32 %v1920_v31, %v7416_v63  ;;  %v1970_v57 = vmax.f32 %v1917_v30, 0.0 }
 0x2d1   : > { %v1971_v37 = vmax.f32 %v1919_v46, 0.0 }
 0x2d2   : > { %v1972_v27 = vmax.f32 %v1921_v52, 0.0 }
 0x2d3   : > { %v1993_v58 = vpack.c.bf16 %v1971_v37, %v1969_v50 }
 0x2d4   : > { %v1994_v1 = vpack.c.bf16 %v1972_v27, %v1970_v57 }
 0x2d6   : > { %2279 = vmatprep.mubr.bf16.mxu1 %v1994_v1 }
 0x2d7   : > { %2280 = vmatmul.mubr.bf16.gmra.mrb[16].mxu1 %v1993_v58 }
 0x2ed   : > { %v1924_v14 = vpop.f32.mrb[20].mxu0 }
 0x2ee   : > { %v1925_v5 = vadd.f32 %v1924_v14, %v7413_v61  ;;  %v1926_v3 = vpop.f32.mrb[21].mxu0 }
 0x2ef   : > { %v1927_v49 = vadd.f32 %v1926_v3, %v7416_v63  ;;  %v1928_v15 = vpop.f32.mrb[22].mxu0 }
 0x2f0   : > { %v1929_v42 = vadd.f32 %v1928_v15, %v7413_v61  ;;  %v1930_v16 = vpop.f32.mrb[23].mxu0  ;;  %v1973_v10 = vmax.f32 %v1925_v5, 0.0 }
 0x2f1   : > { %v1931_v36 = vadd.f32 %v1930_v16, %v7416_v63  ;;  %v1974_v25 = vmax.f32 %v1927_v49, 0.0 }
 0x2f2   : > { %v1975_v35 = vmax.f32 %v1929_v42, 0.0 }
 0x2f3   : > { %v1976_v26 = vmax.f32 %v1931_v36, 0.0 }
 0x2f4   : > { %v1995_v22 = vpack.c.bf16 %v1975_v35, %v1973_v10 }
 0x2f5   : > { %v1996_v8 = vpack.c.bf16 %v1976_v26, %v1974_v25 }
 0x2f7   : > { %2289 = vmatprep.mubr.bf16.mxu1 %v1996_v8 }
 0x2f8   : > { %2290 = vmatmul.mubr.bf16.gmra.mrb[20].mxu1 %v1995_v22 }
 0x30f   : > { %v1934_v2 = vpop.f32.mrb[24].mxu0 }
 0x310   : > { %v1935_v12 = vadd.f32 %v1934_v2, %v7413_v61  ;;  %v1936_v13 = vpop.f32.mrb[25].mxu0 }
 0x311   : > { %v1937_v53 = vadd.f32 %v1936_v13, %v7416_v63  ;;  %v1938_v4 = vpop.f32.mrb[26].mxu0 }
 0x312   : > { %v1939_v34 = vadd.f32 %v1938_v4, %v7413_v61  ;;  %v1940_v44 = vpop.f32.mrb[27].mxu0  ;;  %v1977_v21 = vmax.f32 %v1935_v12, 0.0 }
 0x313   : > { %v1941_v11 = vadd.f32 %v1940_v44, %v7416_v63  ;;  %v1978_v6 = vmax.f32 %v1937_v53, 0.0 }
 0x314   : > { %v1979_v54 = vmax.f32 %v1939_v34, 0.0 }
 0x315   : > { %v1980_v30 = vmax.f32 %v1941_v11, 0.0 }
 0x316   : > { %v1997_v62 = vpack.c.bf16 %v1979_v54, %v1977_v21 }
 0x317   : > { %v1998_v48 = vpack.c.bf16 %v1980_v30, %v1978_v6 }
 0x319   : > { %2299 = vmatprep.mubr.bf16.mxu1 %v1998_v48 }
 0x31a   : > { %2300 = vmatmul.mubr.bf16.gmra.mrb[24].mxu1 %v1997_v62 }
 0x32c   : > { %v1944_v46 = vpop.f32.mrb[28].mxu0 }
 0x32d   : > { %v1945_v31 = vadd.f32 %v1944_v46, %v7413_v61  ;;  %v1946_v40 = vpop.f32.mrb[29].mxu0 }
 0x32e   : > { %v1947_v52 = vadd.f32 %v1946_v40, %v7416_v63  ;;  %v1948_v50 = vpop.f32.mrb[30].mxu0 }
 0x32f   : > { %v1949_v37 = vadd.f32 %v1948_v50, %v7413_v61  ;;  %v1950_v57 = vpop.f32.mrb[31].mxu0  ;;  %v1981_v60 = vmax.f32 %v1945_v31, 0.0 }
 0x330   : > { %v1951_v27 = vadd.f32 %v1950_v57, %v7416_v63  ;;  %v1982_v32 = vmax.f32 %v1947_v52, 0.0 }
 0x331   : > { %v1983_v58 = vmax.f32 %v1949_v37, 0.0 }
 0x332   : > { %v1984_v1 = vmax.f32 %v1951_v27, 0.0 }
 0x333   : > { %v1999_v19 = vpack.c.bf16 %v1983_v58, %v1981_v60 }
 0x334   : > { %v2000_v51 = vpack.c.bf16 %v1984_v1, %v1982_v32  ;;  %v5541_v32 = vld [vmem:[%s6389_s24 + $0x300] ss:$8 sps:$4 sm:$0xff]   ;;  %v5543_v1 = vld [vmem:[%s6389_s24 + $0x304] ss:$8 sps:$4 sm:$0xff]  }
 0x335   : > { %2941 = vmatprep.subr.bf16.mxu1 %v5543_v1 }
 0x336   : > { %2309 = vmatprep.mubr.bf16.mxu1 %v2000_v51  ;;  %2942 = vmatpush1.bf16.msra.mxu1 %v5541_v32  ;;  %v5544_v51 = vld [vmem:[%s6389_s24 + $0x310] ss:$8 sps:$4 sm:$0xff]  }
 0x337   : > { %2310 = vmatmul.mubr.bf16.gmra.mrb[28].mxu1 %v1999_v19  ;;  %v5546_v19 = vld [vmem:[%s6389_s24 + $0x314] ss:$8 sps:$4 sm:$0xff]  }
 0x338   : > { %2943 = vmatprep.subr.bf16.mxu1 %v5546_v19  ;;  %v5574_v19 = vld [vmem:[%s6389_s24 + $0x3b0] ss:$8 sps:$4 sm:$0xff]  }
 0x33a   : > { %2944 = vmatpush1.bf16.msra.mxu1 %v5544_v51 }
 0x33b   : > { %2945 = vmatprep.subr.bf16.mxu1 %v5549_v17  ;;  %v5579_v17 = vld [vmem:[%s6389_s24 + $0x3c4] ss:$8 sps:$4 sm:$0xff]  }
 0x359   : > { %v2241_v39 = vpop.f32.mrb[0].mxu1 }
 0x35a   : > { %v2242_v61 = vadd.f32 %v2241_v39, %v7484_v23  ;;  %v2243_v0 = vpop.f32.mrb[1].mxu1  ;;  %v5547_v39 = vld [vmem:[%s6389_s24 + $0x320] ss:$8 sps:$4 sm:$0xff]  }
 0x35b   : > { %v2244_v63 = vadd.f32 %v2243_v0, %v7487_v29  ;;  %v2245_v14 = vpop.f32.mrb[2].mxu1  ;;  %2946 = vmatpush1.bf16.msra.mxu1 %v5547_v39 }
 0x35c   : > { %v2246_v5 = vadd.f32 %v2245_v14, %v7484_v23  ;;  %v2247_v3 = vpop.f32.mrb[3].mxu1  ;;  %v2320_v15 = vmax.f32 %v2242_v61, 0.0 }
 0x35d   : > { %v2248_v49 = vadd.f32 %v2247_v3, %v7487_v29  ;;  %v2321_v16 = vmax.f32 %v2244_v63, 0.0 }
 0x35e   : > { %v2322_v42 = vmax.f32 %v2246_v5, 0.0 }
 0x35f   : > { %v2323_v36 = vmax.f32 %v2248_v49, 0.0 }
 0x360   : > { %v2352_v10 = vpack.c.bf16 %v2322_v42, %v2320_v15  ;;  %v5552_v42 = vld [vmem:[%s6389_s24 + $0x334] ss:$8 sps:$4 sm:$0xff]  }
 0x361   : > { %v2353_v35 = vpack.c.bf16 %v2323_v36, %v2321_v16  ;;  %v2251_v25 = vpop.f32.mrb[4].mxu1  ;;  %2947 = vmatprep.subr.bf16.mxu1 %v5552_v42 }
 0x362   : > { %v2252_v26 = vadd.f32 %v2251_v25, %v7484_v23  ;;  %v2253_v22 = vpop.f32.mrb[5].mxu1 }
 0x363   : > { %v2254_v8 = vadd.f32 %v2253_v22, %v7487_v29  ;;  %v2255_v2 = vpop.f32.mrb[6].mxu1  ;;  %2606 = vmatprep.mubr.bf16.mxu0 %v2353_v35 }
 0x364   : > { %v2256_v12 = vadd.f32 %v2255_v2, %v7484_v23  ;;  %v2257_v13 = vpop.f32.mrb[7].mxu1  ;;  %2607 = vmatmul.mubr.bf16.vlgmr.msra.gmra.mrb[32].mxu0 %v2352_v10  ;;  %v2324_v4 = vmax.f32 %v2252_v26, 0.0  ;;  %v5550_v10 = vld [vmem:[%s6389_s24 + $0x330] ss:$8 sps:$4 sm:$0xff]   ;;  %v5555_v26 = vld [vmem:[%s6389_s24 + $0x344] ss:$8 sps:$4 sm:$0xff]  }
 0x365   : > { %v2258_v53 = vadd.f32 %v2257_v13, %v7487_v29  ;;  %v2325_v44 = vmax.f32 %v2254_v8, 0.0  ;;  %2948 = vmatpush1.bf16.msra.mxu1 %v5550_v10  ;;  %v5553_v8 = vld [vmem:[%s6389_s24 + $0x340] ss:$8 sps:$4 sm:$0xff]   ;;  %v5556_v13 = vld [vmem:[%s6389_s24 + $0x350] ss:$8 sps:$4 sm:$0xff]  }
 0x366   : > { %v2326_v34 = vmax.f32 %v2256_v12, 0.0  ;;  %2949 = vmatprep.subr.bf16.mxu1 %v5555_v26  ;;  %v5558_v12 = vld [vmem:[%s6389_s24 + $0x354] ss:$8 sps:$4 sm:$0xff]  }
 0x367   : > { %v2327_v11 = vmax.f32 %v2258_v53, 0.0  ;;  %v5561_v53 = vld [vmem:[%s6389_s24 + $0x364] ss:$8 sps:$4 sm:$0xff]  }
 0x368   : > { %v2354_v21 = vpack.c.bf16 %v2326_v34, %v2324_v4  ;;  %v5559_v4 = vld [vmem:[%s6389_s24 + $0x360] ss:$8 sps:$4 sm:$0xff]   ;;  %v5564_v34 = vld [vmem:[%s6389_s24 + $0x374] ss:$8 sps:$4 sm:$0xff]  }
 0x369   : > { %v2355_v54 = vpack.c.bf16 %v2327_v11, %v2325_v44  ;;  %2950 = vmatpush1.bf16.msra.mxu1 %v5553_v8  ;;  %v5562_v44 = vld [vmem:[%s6389_s24 + $0x370] ss:$8 sps:$4 sm:$0xff]   ;;  %v5567_v11 = vld [vmem:[%s6389_s24 + $0x384] ss:$8 sps:$4 sm:$0xff]  }
 0x36a   : > { %2951 = vmatprep.subr.bf16.mxu1 %v5558_v12 }
 0x36b   : > { %2616 = vmatprep.mubr.bf16.mxu0 %v2355_v54  ;;  %v5570_v54 = vld [vmem:[%s6389_s24 + $0x394] ss:$8 sps:$4 sm:$0xff]  }
 0x36c   : > { %2617 = vmatmul.mubr.bf16.gmra.mrb[36].mxu0 %v2354_v21  ;;  %v2261_v6 = vpop.f32.mrb[8].mxu1  ;;  %v5565_v21 = vld [vmem:[%s6389_s24 + $0x380] ss:$8 sps:$4 sm:$0xff]  }
 0x36d   : > { %v2262_v30 = vadd.f32 %v2261_v6, %v7484_v23  ;;  %v2263_v62 = vpop.f32.mrb[9].mxu1  ;;  %2952 = vmatpush1.bf16.msra.mxu1 %v5556_v13  ;;  %v5568_v6 = vld [vmem:[%s6389_s24 + $0x390] ss:$8 sps:$4 sm:$0xff]  }
 0x36e   : > { %v2264_v48 = vadd.f32 %v2263_v62, %v7487_v29  ;;  %v2265_v46 = vpop.f32.mrb[10].mxu1  ;;  %2953 = vmatprep.subr.bf16.mxu1 %v5561_v53 }
 0x36f   : > { %v2266_v31 = vadd.f32 %v2265_v46, %v7484_v23  ;;  %v2267_v40 = vpop.f32.mrb[11].mxu1  ;;  %v2328_v50 = vmax.f32 %v2262_v30, 0.0  ;;  %v5573_v30 = vld [vmem:[%s6389_s24 + $0x3a4] ss:$8 sps:$4 sm:$0xff]  }
 0x370   : > { %v2268_v52 = vadd.f32 %v2267_v40, %v7487_v29  ;;  %v2329_v57 = vmax.f32 %v2264_v48, 0.0 }
 0x371   : > { %v2330_v37 = vmax.f32 %v2266_v31, 0.0  ;;  %2954 = vmatpush1.bf16.msra.mxu1 %v5559_v4 }
 0x372   : > { %v2331_v27 = vmax.f32 %v2268_v52, 0.0  ;;  %2955 = vmatprep.subr.bf16.mxu1 %v5564_v34  ;;  %v5571_v52 = vld [vmem:[%s6389_s24 + $0x3a0] ss:$8 sps:$4 sm:$0xff]  }
 0x373   : > { %v2356_v60 = vpack.c.bf16 %v2330_v37, %v2328_v50 }
 0x374   : > { %v2357_v58 = vpack.c.bf16 %v2331_v27, %v2329_v57  ;;  %v5576_v57 = vld [vmem:[%s6389_s24 + $0x3b4] ss:$8 sps:$4 sm:$0xff]  }
 0x375   : > { %2956 = vmatpush1.bf16.msra.mxu1 %v5562_v44 }
 0x376   : > { %2626 = vmatprep.mubr.bf16.mxu0 %v2357_v58  ;;  %2957 = vmatprep.subr.bf16.mxu1 %v5567_v11 }
 0x377   : > { %2627 = vmatmul.mubr.bf16.gmra.mrb[40].mxu0 %v2356_v60 }
 0x379   : > { %2958 = vmatpush1.bf16.msra.mxu1 %v5565_v21 }
 0x37a   : > { %2959 = vmatprep.subr.bf16.mxu1 %v5570_v54 }
 0x37d   : > { %2960 = vmatpush1.bf16.msra.mxu1 %v5568_v6 }
 0x37e   : > { %2961 = vmatprep.subr.bf16.mxu1 %v5573_v30 }
 0x381   : > { %2962 = vmatpush1.bf16.msra.mxu1 %v5571_v52 }
 0x382   : > { %2963 = vmatprep.subr.bf16.mxu1 %v5576_v57 }
 0x385   : > { %2964 = vmatpush1.bf16.msra.mxu1 %v5574_v19 }
 0x386   : > { %2965 = vmatprep.subr.bf16.mxu1 %v5579_v17 }
 0x38d   : > { %v2271_v61 = vpop.f32.mrb[12].mxu1 }
 0x38e   : > { %v2272_v0 = vadd.f32 %v2271_v61, %v7484_v23  ;;  %v2273_v63 = vpop.f32.mrb[13].mxu1  ;;  %v5577_v61 = vld [vmem:[%s6389_s24 + $0x3c0] ss:$8 sps:$4 sm:$0xff]  }
 0x38f   : > { %v2274_v14 = vadd.f32 %v2273_v63, %v7487_v29  ;;  %v2275_v5 = vpop.f32.mrb[14].mxu1  ;;  %2966 = vmatpush1.bf16.msra.mxu1 %v5577_v61  ;;  %v5580_v63 = vld [vmem:[%s6389_s24 + $0x3d0] ss:$8 sps:$4 sm:$0xff]  }
 0x390   : > { %v2276_v3 = vadd.f32 %v2275_v5, %v7484_v23  ;;  %v2277_v49 = vpop.f32.mrb[15].mxu1  ;;  %v2332_v16 = vmax.f32 %v2272_v0, 0.0  ;;  %v5582_v0 = vld [vmem:[%s6389_s24 + $0x3d4] ss:$8 sps:$4 sm:$0xff]   ;;  %v5583_v5 = vld [vmem:[%s6389_s24 + $0x3e0] ss:$8 sps:$4 sm:$0xff]  }
 0x391   : > { %v2278_v15 = vadd.f32 %v2277_v49, %v7487_v29  ;;  %v2333_v35 = vmax.f32 %v2274_v14, 0.0  ;;  %2967 = vmatprep.subr.bf16.mxu1 %v5582_v0  ;;  %v5585_v14 = vld [vmem:[%s6389_s24 + $0x3e4] ss:$8 sps:$4 sm:$0xff]   ;;  %v5586_v49 = vld [vmem:[%s6389_s24 + $0x3f0] ss:$8 sps:$4 sm:$0xff]  }
 0x392   : > { %v2334_v36 = vmax.f32 %v2276_v3, 0.0  ;;  %v5588_v3 = vld [vmem:[%s6389_s24 + $0x3f4] ss:$8 sps:$4 sm:$0xff]  }
 0x393   : > { %v2335_v25 = vmax.f32 %v2278_v15, 0.0  ;;  %2968 = vmatpush1.bf16.msra.mxu1 %v5580_v63  ;;  %v4863_v63 = vld [vmem:[%s6392_s8 + $0x3] ss:$8 sm:$0x3] }
 0x394   : > { %v2358_v22 = vpack.c.bf16 %v2334_v36, %v2332_v16  ;;  %2969 = vmatprep.subr.bf16.mxu1 %v5585_v14  ;;  %v7555_v14 = vrot.slane %v4863_v63, %v8150_v28 }
 0x395   : > { %v2359_v2 = vpack.c.bf16 %v2335_v25, %v2333_v35 }
 0x397   : > { %2636 = vmatprep.mubr.bf16.mxu0 %v2359_v2  ;;  %2970 = vmatpush1.bf16.msra.mxu1 %v5583_v5  ;;  %v7558_v5 = vrot.slane %v4863_v63, %v8151_v18  ;;  %v5597_v63 = vld [vmem:[%s6389_s24 + $0x424] ss:$8 sps:$4 sm:$0xff]  }
 0x398   : > { %2637 = vmatmul.mubr.bf16.gmra.mrb[44].mxu0 %v2358_v22  ;;  %2971 = vmatprep.subr.bf16.mxu1 %v5588_v3 }
 0x39b   : > { %2972 = vmatpush1.bf16.msra.mxu1 %v5586_v49 }
 0x3aa   : > { %v2281_v62 = vpop.f32.mrb[16].mxu1 }
 0x3ab   : > { %v2282_v48 = vadd.f32 %v2281_v62, %v7484_v23  ;;  %v2283_v46 = vpop.f32.mrb[17].mxu1 }
 0x3ac   : > { %v2284_v31 = vadd.f32 %v2283_v46, %v7487_v29  ;;  %v2285_v40 = vpop.f32.mrb[18].mxu1 }
 0x3ad   : > { %v2286_v50 = vadd.f32 %v2285_v40, %v7484_v23  ;;  %v2287_v37 = vpop.f32.mrb[19].mxu1  ;;  %v2336_v60 = vmax.f32 %v2282_v48, 0.0 }
 0x3ae   : > { %v2288_v27 = vadd.f32 %v2287_v37, %v7487_v29  ;;  %v2337_v32 = vmax.f32 %v2284_v31, 0.0 }
 0x3af   : > { %v2338_v58 = vmax.f32 %v2286_v50, 0.0 }
 0x3b0   : > { %v2339_v1 = vmax.f32 %v2288_v27, 0.0 }
 0x3b1   : > { %v2360_v51 = vpack.c.bf16 %v2338_v58, %v2336_v60 }
 0x3b2   : > { %v2361_v39 = vpack.c.bf16 %v2339_v1, %v2337_v32 }
 0x3b4   : > { %2646 = vmatprep.mubr.bf16.mxu0 %v2361_v39 }
 0x3b5   : > { %2647 = vmatmul.mubr.bf16.gmra.mrb[48].mxu0 %v2360_v51 }
 0x3cb   : > { %v2291_v15 = vpop.f32.mrb[20].mxu1 }
 0x3cc   : > { %v2292_v42 = vadd.f32 %v2291_v15, %v7484_v23  ;;  %v2293_v16 = vpop.f32.mrb[21].mxu1 }
 0x3cd   : > { %v2294_v36 = vadd.f32 %v2293_v16, %v7487_v29  ;;  %v2295_v10 = vpop.f32.mrb[22].mxu1 }
 0x3ce   : > { %v2296_v35 = vadd.f32 %v2295_v10, %v7484_v23  ;;  %v2297_v25 = vpop.f32.mrb[23].mxu1  ;;  %v2340_v22 = vmax.f32 %v2292_v42, 0.0 }
 0x3cf   : > { %v2298_v26 = vadd.f32 %v2297_v25, %v7487_v29  ;;  %v2341_v2 = vmax.f32 %v2294_v36, 0.0 }
 0x3d0   : > { %v2342_v8 = vmax.f32 %v2296_v35, 0.0 }
 0x3d1   : > { %v2343_v12 = vmax.f32 %v2298_v26, 0.0 }
 0x3d2   : > { %v2362_v13 = vpack.c.bf16 %v2342_v8, %v2340_v22 }
 0x3d3   : > { %v2363_v53 = vpack.c.bf16 %v2343_v12, %v2341_v2 }
 0x3d5   : > { %2656 = vmatprep.mubr.bf16.mxu0 %v2363_v53 }
 0x3d6   : > { %2657 = vmatmul.mubr.bf16.gmra.mrb[52].mxu0 %v2362_v13 }
 0x3ed   : > { %v2301_v4 = vpop.f32.mrb[24].mxu1 }
 0x3ee   : > { %v2302_v34 = vadd.f32 %v2301_v4, %v7484_v23  ;;  %v2303_v44 = vpop.f32.mrb[25].mxu1 }
 0x3ef   : > { %v2304_v11 = vadd.f32 %v2303_v44, %v7487_v29  ;;  %v2305_v21 = vpop.f32.mrb[26].mxu1 }
 0x3f0   : > { %v2306_v54 = vadd.f32 %v2305_v21, %v7484_v23  ;;  %v2307_v6 = vpop.f32.mrb[27].mxu1  ;;  %v2344_v62 = vmax.f32 %v2302_v34, 0.0 }
 0x3f1   : > { %v2308_v30 = vadd.f32 %v2307_v6, %v7487_v29  ;;  %v2345_v46 = vmax.f32 %v2304_v11, 0.0 }
 0x3f2   : > { %v2346_v48 = vmax.f32 %v2306_v54, 0.0 }
 0x3f3   : > { %v2347_v31 = vmax.f32 %v2308_v30, 0.0 }
 0x3f4   : > { %v2364_v40 = vpack.c.bf16 %v2346_v48, %v2344_v62 }
 0x3f5   : > { %v2365_v52 = vpack.c.bf16 %v2347_v31, %v2345_v46 }
 0x3f7   : > { %2666 = vmatprep.mubr.bf16.mxu0 %v2365_v52 }
 0x3f8   : > { %2667 = vmatmul.mubr.bf16.gmra.mrb[56].mxu0 %v2364_v40 }
 0x40a   : > { %v2311_v50 = vpop.f32.mrb[28].mxu1 }
 0x40b   : > { %v2312_v37 = vadd.f32 %v2311_v50, %v7484_v23  ;;  %v2313_v57 = vpop.f32.mrb[29].mxu1 }
 0x40c   : > { %v2314_v27 = vadd.f32 %v2313_v57, %v7487_v29  ;;  %v2315_v60 = vpop.f32.mrb[30].mxu1 }
 0x40d   : > { %v2316_v58 = vadd.f32 %v2315_v60, %v7484_v23  ;;  %v2317_v32 = vpop.f32.mrb[31].mxu1  ;;  %v2348_v19 = vmax.f32 %v2312_v37, 0.0 }
 0x40e   : > { %v2318_v1 = vadd.f32 %v2317_v32, %v7487_v29  ;;  %v2349_v17 = vmax.f32 %v2314_v27, 0.0 }
 0x40f   : > { %v2350_v51 = vmax.f32 %v2316_v58, 0.0 }
 0x410   : > { %v2351_v39 = vmax.f32 %v2318_v1, 0.0 }
 0x411   : > { %v2366_v61 = vpack.c.bf16 %v2350_v51, %v2348_v19 }
 0x412   : > { %v2367_v0 = vpack.c.bf16 %v2351_v39, %v2349_v17  ;;  %v5589_v17 = vld [vmem:[%s6389_s24 + $0x400] ss:$8 sps:$4 sm:$0xff]   ;;  %v5591_v39 = vld [vmem:[%s6389_s24 + $0x404] ss:$8 sps:$4 sm:$0xff]  }
 0x413   : > { %3308 = vmatprep.subr.bf16.mxu0 %v5591_v39 }
 0x414   : > { %2676 = vmatprep.mubr.bf16.mxu0 %v2367_v0  ;;  %3309 = vmatpush1.bf16.msra.mxu0 %v5589_v17  ;;  %v5592_v0 = vld [vmem:[%s6389_s24 + $0x410] ss:$8 sps:$4 sm:$0xff]  }
 0x415   : > { %2677 = vmatmul.mubr.bf16.gmra.mrb[60].mxu0 %v2366_v61  ;;  %v5594_v61 = vld [vmem:[%s6389_s24 + $0x414] ss:$8 sps:$4 sm:$0xff]  }
 0x416   : > { %3310 = vmatprep.subr.bf16.mxu0 %v5594_v61  ;;  %v5622_v61 = vld [vmem:[%s6389_s24 + $0x4b0] ss:$8 sps:$4 sm:$0xff]  }
 0x418   : > { %3311 = vmatpush1.bf16.msra.mxu0 %v5592_v0 }
 0x419   : > { %3312 = vmatprep.subr.bf16.mxu0 %v5597_v63  ;;  %v5627_v63 = vld [vmem:[%s6389_s24 + $0x4c4] ss:$8 sps:$4 sm:$0xff]  }
 0x437   : > { %v2608_v3 = vpop.f32.mrb[32].mxu0 }
 0x438   : > { %v2609_v23 = vadd.f32 %v2608_v3, %v7555_v14  ;;  %v2610_v49 = vpop.f32.mrb[33].mxu0  ;;  %v5595_v3 = vld [vmem:[%s6389_s24 + $0x420] ss:$8 sps:$4 sm:$0xff]  }
 0x439   : > { %v2611_v29 = vadd.f32 %v2610_v49, %v7558_v5  ;;  %v2612_v15 = vpop.f32.mrb[34].mxu0  ;;  %3313 = vmatpush1.bf16.msra.mxu0 %v5595_v3 }
 0x43a   : > { %v2613_v42 = vadd.f32 %v2612_v15, %v7555_v14  ;;  %v2614_v16 = vpop.f32.mrb[35].mxu0  ;;  %v2687_v10 = vmax.f32 %v2609_v23, 0.0 }
 0x43b   : > { %v2615_v36 = vadd.f32 %v2614_v16, %v7558_v5  ;;  %v2688_v25 = vmax.f32 %v2611_v29, 0.0 }
 0x43c   : > { %v2689_v35 = vmax.f32 %v2613_v42, 0.0 }
 0x43d   : > { %v2690_v26 = vmax.f32 %v2615_v36, 0.0 }
 0x43e   : > { %v2719_v22 = vpack.c.bf16 %v2689_v35, %v2687_v10  ;;  %v5600_v35 = vld [vmem:[%s6389_s24 + $0x434] ss:$8 sps:$4 sm:$0xff]  }
 0x43f   : > { %v2720_v8 = vpack.c.bf16 %v2690_v26, %v2688_v25  ;;  %v2618_v2 = vpop.f32.mrb[36].mxu0  ;;  %3314 = vmatprep.subr.bf16.mxu0 %v5600_v35 }
 0x440   : > { %v2619_v12 = vadd.f32 %v2618_v2, %v7555_v14  ;;  %v2620_v13 = vpop.f32.mrb[37].mxu0 }
 0x441   : > { %v2621_v53 = vadd.f32 %v2620_v13, %v7558_v5  ;;  %v2622_v4 = vpop.f32.mrb[38].mxu0  ;;  %2973 = vmatprep.mubr.bf16.mxu1 %v2720_v8 }
 0x442   : > { %v2623_v34 = vadd.f32 %v2622_v4, %v7555_v14  ;;  %v2624_v44 = vpop.f32.mrb[39].mxu0  ;;  %2974 = vmatmul.mubr.bf16.vlgmr.msra.gmra.mrb[32].mxu1 %v2719_v22  ;;  %v2691_v21 = vmax.f32 %v2619_v12, 0.0  ;;  %v5598_v22 = vld [vmem:[%s6389_s24 + $0x430] ss:$8 sps:$4 sm:$0xff]   ;;  %v5603_v12 = vld [vmem:[%s6389_s24 + $0x444] ss:$8 sps:$4 sm:$0xff]  }
 0x443   : > { %v2625_v11 = vadd.f32 %v2624_v44, %v7558_v5  ;;  %v2692_v6 = vmax.f32 %v2621_v53, 0.0  ;;  %3315 = vmatpush1.bf16.msra.mxu0 %v5598_v22  ;;  %v5601_v53 = vld [vmem:[%s6389_s24 + $0x440] ss:$8 sps:$4 sm:$0xff]   ;;  %v5604_v44 = vld [vmem:[%s6389_s24 + $0x450] ss:$8 sps:$4 sm:$0xff]  }
 0x444   : > { %v2693_v54 = vmax.f32 %v2623_v34, 0.0  ;;  %3316 = vmatprep.subr.bf16.mxu0 %v5603_v12  ;;  %v5606_v34 = vld [vmem:[%s6389_s24 + $0x454] ss:$8 sps:$4 sm:$0xff]  }
 0x445   : > { %v2694_v30 = vmax.f32 %v2625_v11, 0.0  ;;  %v5609_v11 = vld [vmem:[%s6389_s24 + $0x464] ss:$8 sps:$4 sm:$0xff]  }
 0x446   : > { %v2721_v62 = vpack.c.bf16 %v2693_v54, %v2691_v21  ;;  %v5607_v21 = vld [vmem:[%s6389_s24 + $0x460] ss:$8 sps:$4 sm:$0xff]   ;;  %v5612_v54 = vld [vmem:[%s6389_s24 + $0x474] ss:$8 sps:$4 sm:$0xff]  }
 0x447   : > { %v2722_v48 = vpack.c.bf16 %v2694_v30, %v2692_v6  ;;  %3317 = vmatpush1.bf16.msra.mxu0 %v5601_v53  ;;  %v5610_v6 = vld [vmem:[%s6389_s24 + $0x470] ss:$8 sps:$4 sm:$0xff]   ;;  %v5615_v30 = vld [vmem:[%s6389_s24 + $0x484] ss:$8 sps:$4 sm:$0xff]  }
 0x448   : > { %3318 = vmatprep.subr.bf16.mxu0 %v5606_v34 }
 0x449   : > { %2983 = vmatprep.mubr.bf16.mxu1 %v2722_v48  ;;  %v5618_v48 = vld [vmem:[%s6389_s24 + $0x494] ss:$8 sps:$4 sm:$0xff]  }
 0x44a   : > { %2984 = vmatmul.mubr.bf16.gmra.mrb[36].mxu1 %v2721_v62  ;;  %v2628_v46 = vpop.f32.mrb[40].mxu0  ;;  %v5613_v62 = vld [vmem:[%s6389_s24 + $0x480] ss:$8 sps:$4 sm:$0xff]  }
 0x44b   : > { %v2629_v31 = vadd.f32 %v2628_v46, %v7555_v14  ;;  %v2630_v40 = vpop.f32.mrb[41].mxu0  ;;  %3319 = vmatpush1.bf16.msra.mxu0 %v5604_v44  ;;  %v5616_v46 = vld [vmem:[%s6389_s24 + $0x490] ss:$8 sps:$4 sm:$0xff]  }
 0x44c   : > { %v2631_v52 = vadd.f32 %v2630_v40, %v7558_v5  ;;  %v2632_v50 = vpop.f32.mrb[42].mxu0  ;;  %3320 = vmatprep.subr.bf16.mxu0 %v5609_v11 }
 0x44d   : > { %v2633_v37 = vadd.f32 %v2632_v50, %v7555_v14  ;;  %v2634_v57 = vpop.f32.mrb[43].mxu0  ;;  %v2695_v60 = vmax.f32 %v2629_v31, 0.0  ;;  %v5621_v31 = vld [vmem:[%s6389_s24 + $0x4a4] ss:$8 sps:$4 sm:$0xff]  }
 0x44e   : > { %v2635_v27 = vadd.f32 %v2634_v57, %v7558_v5  ;;  %v2696_v32 = vmax.f32 %v2631_v52, 0.0 }
 0x44f   : > { %v2697_v58 = vmax.f32 %v2633_v37, 0.0  ;;  %3321 = vmatpush1.bf16.msra.mxu0 %v5607_v21 }
 0x450   : > { %v2698_v1 = vmax.f32 %v2635_v27, 0.0  ;;  %3322 = vmatprep.subr.bf16.mxu0 %v5612_v54  ;;  %v5619_v27 = vld [vmem:[%s6389_s24 + $0x4a0] ss:$8 sps:$4 sm:$0xff]  }
 0x451   : > { %v2723_v19 = vpack.c.bf16 %v2697_v58, %v2695_v60 }
 0x452   : > { %v2724_v51 = vpack.c.bf16 %v2698_v1, %v2696_v32  ;;  %v5624_v32 = vld [vmem:[%s6389_s24 + $0x4b4] ss:$8 sps:$4 sm:$0xff]  }
 0x453   : > { %3323 = vmatpush1.bf16.msra.mxu0 %v5610_v6 }
 0x454   : > { %2993 = vmatprep.mubr.bf16.mxu1 %v2724_v51  ;;  %3324 = vmatprep.subr.bf16.mxu0 %v5615_v30 }
 0x455   : > { %2994 = vmatmul.mubr.bf16.gmra.mrb[40].mxu1 %v2723_v19 }
 0x457   : > { %3325 = vmatpush1.bf16.msra.mxu0 %v5613_v62 }
 0x458   : > { %3326 = vmatprep.subr.bf16.mxu0 %v5618_v48 }
 0x45b   : > { %3327 = vmatpush1.bf16.msra.mxu0 %v5616_v46 }
 0x45c   : > { %3328 = vmatprep.subr.bf16.mxu0 %v5621_v31 }
 0x45f   : > { %3329 = vmatpush1.bf16.msra.mxu0 %v5619_v27 }
 0x460   : > { %3330 = vmatprep.subr.bf16.mxu0 %v5624_v32 }
 0x463   : > { %3331 = vmatpush1.bf16.msra.mxu0 %v5622_v61 }
 0x464   : > { %3332 = vmatprep.subr.bf16.mxu0 %v5627_v63 }
 0x46b   : > { %v2638_v23 = vpop.f32.mrb[44].mxu0 }
 0x46c   : > { %v2639_v49 = vadd.f32 %v2638_v23, %v7555_v14  ;;  %v2640_v29 = vpop.f32.mrb[45].mxu0  ;;  %v5625_v23 = vld [vmem:[%s6389_s24 + $0x4c0] ss:$8 sps:$4 sm:$0xff]  }
 0x46d   : > { %v2641_v15 = vadd.f32 %v2640_v29, %v7558_v5  ;;  %v2642_v42 = vpop.f32.mrb[46].mxu0  ;;  %3333 = vmatpush1.bf16.msra.mxu0 %v5625_v23  ;;  %v5628_v29 = vld [vmem:[%s6389_s24 + $0x4d0] ss:$8 sps:$4 sm:$0xff]  }
 0x46e   : > { %v2643_v16 = vadd.f32 %v2642_v42, %v7555_v14  ;;  %v2644_v36 = vpop.f32.mrb[47].mxu0  ;;  %v2699_v25 = vmax.f32 %v2639_v49, 0.0  ;;  %v5630_v49 = vld [vmem:[%s6389_s24 + $0x4d4] ss:$8 sps:$4 sm:$0xff]   ;;  %v5631_v42 = vld [vmem:[%s6389_s24 + $0x4e0] ss:$8 sps:$4 sm:$0xff]  }
 0x46f   : > { %v2645_v10 = vadd.f32 %v2644_v36, %v7558_v5  ;;  %v2700_v8 = vmax.f32 %v2641_v15, 0.0  ;;  %3334 = vmatprep.subr.bf16.mxu0 %v5630_v49  ;;  %v5633_v15 = vld [vmem:[%s6389_s24 + $0x4e4] ss:$8 sps:$4 sm:$0xff]   ;;  %v5634_v36 = vld [vmem:[%s6389_s24 + $0x4f0] ss:$8 sps:$4 sm:$0xff]  }
 0x470   : > { %v2701_v26 = vmax.f32 %v2643_v16, 0.0  ;;  %v5636_v16 = vld [vmem:[%s6389_s24 + $0x4f4] ss:$8 sps:$4 sm:$0xff]  }
 0x471   : > { %v2702_v2 = vmax.f32 %v2645_v10, 0.0  ;;  %3335 = vmatpush1.bf16.msra.mxu0 %v5628_v29  ;;  %v4928_v29 = vld [vmem:[%s6392_s8 + $0x4] ss:$8 sm:$0x3] }
 0x472   : > { %v2725_v13 = vpack.c.bf16 %v2701_v26, %v2699_v25  ;;  %3336 = vmatprep.subr.bf16.mxu0 %v5633_v15  ;;  %v7626_v15 = vrot.slane %v4928_v29, %v8150_v28 }
 0x473   : > { %v2726_v4 = vpack.c.bf16 %v2702_v2, %v2700_v8 }
 0x475   : > { %3003 = vmatprep.mubr.bf16.mxu1 %v2726_v4  ;;  %3337 = vmatpush1.bf16.msra.mxu0 %v5631_v42  ;;  %v7629_v42 = vrot.slane %v4928_v29, %v8151_v18 }
 0x476   : > { %3004 = vmatmul.mubr.bf16.gmra.mrb[44].mxu1 %v2725_v13  ;;  %3338 = vmatprep.subr.bf16.mxu0 %v5636_v16 }
 0x479   : > { %3339 = vmatpush1.bf16.msra.mxu0 %v5634_v36 }
 0x488   : > { %v2648_v40 = vpop.f32.mrb[48].mxu0 }
 0x489   : > { %v2649_v52 = vadd.f32 %v2648_v40, %v7555_v14  ;;  %v2650_v50 = vpop.f32.mrb[49].mxu0 }
 0x48a   : > { %v2651_v37 = vadd.f32 %v2650_v50, %v7558_v5  ;;  %v2652_v57 = vpop.f32.mrb[50].mxu0 }
 0x48b   : > { %v2653_v60 = vadd.f32 %v2652_v57, %v7555_v14  ;;  %v2654_v58 = vpop.f32.mrb[51].mxu0  ;;  %v2703_v19 = vmax.f32 %v2649_v52, 0.0 }
 0x48c   : > { %v2655_v1 = vadd.f32 %v2654_v58, %v7558_v5  ;;  %v2704_v17 = vmax.f32 %v2651_v37, 0.0 }
 0x48d   : > { %v2705_v51 = vmax.f32 %v2653_v60, 0.0 }
 0x48e   : > { %v2706_v39 = vmax.f32 %v2655_v1, 0.0 }
 0x48f   : > { %v2727_v0 = vpack.c.bf16 %v2705_v51, %v2703_v19 }
 0x490   : > { %v2728_v3 = vpack.c.bf16 %v2706_v39, %v2704_v17 }
 0x492   : > { %3013 = vmatprep.mubr.bf16.mxu1 %v2728_v3 }
 0x493   : > { %3014 = vmatmul.mubr.bf16.gmra.mrb[48].mxu1 %v2727_v0 }
 0x4a9   : > { %v2658_v10 = vpop.f32.mrb[52].mxu0 }
 0x4aa   : > { %v2659_v35 = vadd.f32 %v2658_v10, %v7555_v14  ;;  %v2660_v25 = vpop.f32.mrb[53].mxu0 }
 0x4ab   : > { %v2661_v26 = vadd.f32 %v2660_v25, %v7558_v5  ;;  %v2662_v22 = vpop.f32.mrb[54].mxu0 }
 0x4ac   : > { %v2663_v8 = vadd.f32 %v2662_v22, %v7555_v14  ;;  %v2664_v2 = vpop.f32.mrb[55].mxu0  ;;  %v2707_v13 = vmax.f32 %v2659_v35, 0.0 }
 0x4ad   : > { %v2665_v12 = vadd.f32 %v2664_v2, %v7558_v5  ;;  %v2708_v4 = vmax.f32 %v2661_v26, 0.0 }
 0x4ae   : > { %v2709_v53 = vmax.f32 %v2663_v8, 0.0 }
 0x4af   : > { %v2710_v34 = vmax.f32 %v2665_v12, 0.0 }
 0x4b0   : > { %v2729_v44 = vpack.c.bf16 %v2709_v53, %v2707_v13 }
 0x4b1   : > { %v2730_v11 = vpack.c.bf16 %v2710_v34, %v2708_v4 }
 0x4b3   : > { %3023 = vmatprep.mubr.bf16.mxu1 %v2730_v11 }
 0x4b4   : > { %3024 = vmatmul.mubr.bf16.gmra.mrb[52].mxu1 %v2729_v44 }
 0x4cb   : > { %v2668_v21 = vpop.f32.mrb[56].mxu0 }
 0x4cc   : > { %v2669_v54 = vadd.f32 %v2668_v21, %v7555_v14  ;;  %v2670_v6 = vpop.f32.mrb[57].mxu0 }
 0x4cd   : > { %v2671_v30 = vadd.f32 %v2670_v6, %v7558_v5  ;;  %v2672_v62 = vpop.f32.mrb[58].mxu0 }
 0x4ce   : > { %v2673_v48 = vadd.f32 %v2672_v62, %v7555_v14  ;;  %v2674_v46 = vpop.f32.mrb[59].mxu0  ;;  %v2711_v40 = vmax.f32 %v2669_v54, 0.0 }
 0x4cf   : > { %v2675_v31 = vadd.f32 %v2674_v46, %v7558_v5  ;;  %v2712_v50 = vmax.f32 %v2671_v30, 0.0 }
 0x4d0   : > { %v2713_v52 = vmax.f32 %v2673_v48, 0.0 }
 0x4d1   : > { %v2714_v37 = vmax.f32 %v2675_v31, 0.0 }
 0x4d2   : > { %v2731_v57 = vpack.c.bf16 %v2713_v52, %v2711_v40 }
 0x4d3   : > { %v2732_v27 = vpack.c.bf16 %v2714_v37, %v2712_v50 }
 0x4d5   : > { %3033 = vmatprep.mubr.bf16.mxu1 %v2732_v27 }
 0x4d6   : > { %3034 = vmatmul.mubr.bf16.gmra.mrb[56].mxu1 %v2731_v57 }
 0x4e8   : > { %v2678_v60 = vpop.f32.mrb[60].mxu0 }
 0x4e9   : > { %v2679_v58 = vadd.f32 %v2678_v60, %v7555_v14  ;;  %v2680_v32 = vpop.f32.mrb[61].mxu0 }
 0x4ea   : > { %v2681_v1 = vadd.f32 %v2680_v32, %v7558_v5  ;;  %v2682_v19 = vpop.f32.mrb[62].mxu0 }
 0x4eb   : > { %v2683_v51 = vadd.f32 %v2682_v19, %v7555_v14  ;;  %v2684_v17 = vpop.f32.mrb[63].mxu0  ;;  %v2715_v61 = vmax.f32 %v2679_v58, 0.0 }
 0x4ec   : > { %v2685_v39 = vadd.f32 %v2684_v17, %v7558_v5  ;;  %v2716_v63 = vmax.f32 %v2681_v1, 0.0 }
 0x4ed   : > { %v2717_v0 = vmax.f32 %v2683_v51, 0.0 }
 0x4ee   : > { %v2718_v3 = vmax.f32 %v2685_v39, 0.0 }
 0x4ef   : > { %v2733_v23 = vpack.c.bf16 %v2717_v0, %v2715_v61 }
 0x4f0   : > { %v2734_v49 = vpack.c.bf16 %v2718_v3, %v2716_v63  ;;  %v5637_v63 = vld [vmem:[%s6389_s24 + $0x500] ss:$8 sps:$4 sm:$0xff]   ;;  %v5639_v3 = vld [vmem:[%s6389_s24 + $0x504] ss:$8 sps:$4 sm:$0xff]  }
 0x4f1   : > { %3707 = vmatprep.subr.bf16.mxu1 %v5639_v3 }
 0x4f2   : > { %3043 = vmatprep.mubr.bf16.mxu1 %v2734_v49  ;;  %3708 = vmatpush1.bf16.msra.mxu1 %v5637_v63  ;;  %v5640_v49 = vld [vmem:[%s6389_s24 + $0x510] ss:$8 sps:$4 sm:$0xff]  }
 0x4f3   : > { %3044 = vmatmul.mubr.bf16.gmra.mrb[60].mxu1 %v2733_v23  ;;  %v5642_v23 = vld [vmem:[%s6389_s24 + $0x514] ss:$8 sps:$4 sm:$0xff]  }
 0x4f4   : > { %3709 = vmatprep.subr.bf16.mxu1 %v5642_v23 }
 0x4f6   : > { %3710 = vmatpush1.bf16.msra.mxu1 %v5640_v49  ;;  %v5670_v49 = vld [vmem:[%s6389_s24 + $0x5b0] ss:$8 sps:$4 sm:$0xff]  }
 0x515   : > { %v2975_v16 = vpop.f32.mrb[32].mxu1 }
 0x516   : > { %v2976_v14 = vadd.f32 %v2975_v16, %v7626_v15  ;;  %v2977_v36 = vpop.f32.mrb[33].mxu1 }
 0x517   : > { %v2978_v5 = vadd.f32 %v2977_v36, %v7629_v42  ;;  %v2979_v10 = vpop.f32.mrb[34].mxu1  ;;  %v5643_v36 = vld [vmem:[%s6389_s24 + $0x520] ss:$8 sps:$4 sm:$0xff]  }
 0x518   : > { %v2980_v35 = vadd.f32 %v2979_v10, %v7626_v15  ;;  %v2981_v25 = vpop.f32.mrb[35].mxu1  ;;  %v3054_v22 = vmax.f32 %v2976_v14, 0.0 }
 0x519   : > { %v2982_v26 = vadd.f32 %v2981_v25, %v7629_v42  ;;  %v3055_v2 = vmax.f32 %v2978_v5, 0.0  ;;  %v5645_v5 = vld [vmem:[%s6389_s24 + $0x524] ss:$8 sps:$4 sm:$0xff]  }
 0x51a   : > { %v3056_v8 = vmax.f32 %v2980_v35, 0.0  ;;  %3711 = vmatprep.subr.bf16.mxu1 %v5645_v5  ;;  %v5676_v5 = vld [vmem:[%s6389_s24 + $0x5d0] ss:$8 sps:$4 sm:$0xff]  }
 0x51b   : > { %v3057_v12 = vmax.f32 %v2982_v26, 0.0  ;;  %3712 = vmatpush1.bf16.msra.mxu1 %v5643_v36  ;;  %v5678_v36 = vld [vmem:[%s6389_s24 + $0x5d4] ss:$8 sps:$4 sm:$0xff]  }
 0x51c   : > { %v3086_v13 = vpack.c.bf16 %v3056_v8, %v3054_v22 }
 0x51d   : > { %v3087_v53 = vpack.c.bf16 %v3057_v12, %v3055_v2  ;;  %v2985_v4 = vpop.f32.mrb[36].mxu1  ;;  %v5646_v12 = vld [vmem:[%s6389_s24 + $0x530] ss:$8 sps:$4 sm:$0xff]  }
 0x51e   : > { %v2986_v34 = vadd.f32 %v2985_v4, %v7626_v15  ;;  %v2987_v44 = vpop.f32.mrb[37].mxu1 }
 0x51f   : > { %v2988_v11 = vadd.f32 %v2987_v44, %v7629_v42  ;;  %v2989_v21 = vpop.f32.mrb[38].mxu1  ;;  %3340 = vmatprep.mubr.bf16.mxu0 %v3087_v53 }
 0x520   : > { %v2990_v54 = vadd.f32 %v2989_v21, %v7626_v15  ;;  %v2991_v6 = vpop.f32.mrb[39].mxu1  ;;  %3341 = vmatmul.mubr.bf16.vlgmr.msra.gmra.mrb[64].mxu0 %v3086_v13  ;;  %v3058_v62 = vmax.f32 %v2986_v34, 0.0  ;;  %v5648_v13 = vld [vmem:[%s6389_s24 + $0x534] ss:$8 sps:$4 sm:$0xff]   ;;  %v5651_v34 = vld [vmem:[%s6389_s24 + $0x544] ss:$8 sps:$4 sm:$0xff]  }
 0x521   : > { %v2992_v30 = vadd.f32 %v2991_v6, %v7629_v42  ;;  %v3059_v46 = vmax.f32 %v2988_v11, 0.0  ;;  %3713 = vmatprep.subr.bf16.mxu1 %v5648_v13  ;;  %v5649_v21 = vld [vmem:[%s6389_s24 + $0x540] ss:$8 sps:$4 sm:$0xff]   ;;  %v5652_v6 = vld [vmem:[%s6389_s24 + $0x550] ss:$8 sps:$4 sm:$0xff]  }
 0x522   : > { %v3060_v48 = vmax.f32 %v2990_v54, 0.0  ;;  %3714 = vmatpush1.bf16.msra.mxu1 %v5646_v12  ;;  %v5654_v54 = vld [vmem:[%s6389_s24 + $0x554] ss:$8 sps:$4 sm:$0xff]  }
 0x523   : > { %v3061_v31 = vmax.f32 %v2992_v30, 0.0  ;;  %3715 = vmatprep.subr.bf16.mxu1 %v5651_v34  ;;  %v5657_v30 = vld [vmem:[%s6389_s24 + $0x564] ss:$8 sps:$4 sm:$0xff]  }
 0x524   : > { %v3088_v40 = vpack.c.bf16 %v3060_v48, %v3058_v62  ;;  %v5655_v62 = vld [vmem:[%s6389_s24 + $0x560] ss:$8 sps:$4 sm:$0xff]   ;;  %v5660_v48 = vld [vmem:[%s6389_s24 + $0x574] ss:$8 sps:$4 sm:$0xff]  }
 0x525   : > { %v3089_v52 = vpack.c.bf16 %v3061_v31, %v3059_v46  ;;  %v5658_v46 = vld [vmem:[%s6389_s24 + $0x570] ss:$8 sps:$4 sm:$0xff]   ;;  %v5663_v31 = vld [vmem:[%s6389_s24 + $0x584] ss:$8 sps:$4 sm:$0xff]  }
 0x526   : > { %3716 = vmatpush1.bf16.msra.mxu1 %v5649_v21 }
 0x527   : > { %3350 = vmatprep.mubr.bf16.mxu0 %v3089_v52  ;;  %3717 = vmatprep.subr.bf16.mxu1 %v5654_v54  ;;  %v5666_v52 = vld [vmem:[%s6389_s24 + $0x594] ss:$8 sps:$4 sm:$0xff]  }
 0x528   : > { %3351 = vmatmul.mubr.bf16.gmra.mrb[68].mxu0 %v3088_v40  ;;  %v2995_v50 = vpop.f32.mrb[40].mxu1  ;;  %v5661_v40 = vld [vmem:[%s6389_s24 + $0x580] ss:$8 sps:$4 sm:$0xff]  }
 0x529   : > { %v2996_v37 = vadd.f32 %v2995_v50, %v7626_v15  ;;  %v2997_v57 = vpop.f32.mrb[41].mxu1  ;;  %v5664_v50 = vld [vmem:[%s6389_s24 + $0x590] ss:$8 sps:$4 sm:$0xff]  }
 0x52a   : > { %v2998_v27 = vadd.f32 %v2997_v57, %v7629_v42  ;;  %v2999_v60 = vpop.f32.mrb[42].mxu1  ;;  %3718 = vmatpush1.bf16.msra.mxu1 %v5652_v6  ;;  %v5669_v57 = vld [vmem:[%s6389_s24 + $0x5a4] ss:$8 sps:$4 sm:$0xff]  }
 0x52b   : > { %v3000_v58 = vadd.f32 %v2999_v60, %v7626_v15  ;;  %v3001_v32 = vpop.f32.mrb[43].mxu1  ;;  %v3062_v19 = vmax.f32 %v2996_v37, 0.0  ;;  %3719 = vmatprep.subr.bf16.mxu1 %v5657_v30 }
 0x52c   : > { %v3002_v1 = vadd.f32 %v3001_v32, %v7629_v42  ;;  %v3063_v17 = vmax.f32 %v2998_v27, 0.0 }
 0x52d   : > { %v3064_v51 = vmax.f32 %v3000_v58, 0.0 }
 0x52e   : > { %v3065_v39 = vmax.f32 %v3002_v1, 0.0  ;;  %3720 = vmatpush1.bf16.msra.mxu1 %v5655_v62 }
 0x52f   : > { %v3090_v61 = vpack.c.bf16 %v3064_v51, %v3062_v19  ;;  %3721 = vmatprep.subr.bf16.mxu1 %v5660_v48  ;;  %v5667_v51 = vld [vmem:[%s6389_s24 + $0x5a0] ss:$8 sps:$4 sm:$0xff]  }
 0x530   : > { %v3091_v0 = vpack.c.bf16 %v3065_v39, %v3063_v17  ;;  %v5672_v39 = vld [vmem:[%s6389_s24 + $0x5b4] ss:$8 sps:$4 sm:$0xff]  }
 0x532   : > { %3360 = vmatprep.mubr.bf16.mxu0 %v3091_v0  ;;  %3722 = vmatpush1.bf16.msra.mxu1 %v5658_v46 }
 0x533   : > { %3361 = vmatmul.mubr.bf16.gmra.mrb[72].mxu0 %v3090_v61  ;;  %3723 = vmatprep.subr.bf16.mxu1 %v5663_v31 }
 0x536   : > { %3724 = vmatpush1.bf16.msra.mxu1 %v5661_v40 }
 0x537   : > { %3725 = vmatprep.subr.bf16.mxu1 %v5666_v52 }
 0x53a   : > { %3726 = vmatpush1.bf16.msra.mxu1 %v5664_v50 }
 0x53b   : > { %3727 = vmatprep.subr.bf16.mxu1 %v5669_v57 }
 0x53e   : > { %3728 = vmatpush1.bf16.msra.mxu1 %v5667_v51 }
 0x53f   : > { %3729 = vmatprep.subr.bf16.mxu1 %v5672_v39 }
 0x542   : > { %3730 = vmatpush1.bf16.msra.mxu1 %v5670_v49 }
 0x549   : > { %v3005_v29 = vpop.f32.mrb[44].mxu1 }
 0x54a   : > { %v3006_v16 = vadd.f32 %v3005_v29, %v7626_v15  ;;  %v3007_v14 = vpop.f32.mrb[45].mxu1 }
 0x54b   : > { %v3008_v10 = vadd.f32 %v3007_v14, %v7629_v42  ;;  %v3009_v35 = vpop.f32.mrb[46].mxu1  ;;  %v5673_v14 = vld [vmem:[%s6389_s24 + $0x5c0] ss:$8 sps:$4 sm:$0xff]  }
 0x54c   : > { %v3010_v25 = vadd.f32 %v3009_v35, %v7626_v15  ;;  %v3011_v26 = vpop.f32.mrb[47].mxu1  ;;  %v3066_v8 = vmax.f32 %v3006_v16, 0.0  ;;  %v5675_v16 = vld [vmem:[%s6389_s24 + $0x5c4] ss:$8 sps:$4 sm:$0xff]   ;;  %v5679_v35 = vld [vmem:[%s6389_s24 + $0x5e0] ss:$8 sps:$4 sm:$0xff]  }
 0x54d   : > { %v3012_v22 = vadd.f32 %v3011_v26, %v7629_v42  ;;  %v3067_v53 = vmax.f32 %v3008_v10, 0.0  ;;  %3731 = vmatprep.subr.bf16.mxu1 %v5675_v16  ;;  %v5681_v10 = vld [vmem:[%s6389_s24 + $0x5e4] ss:$8 sps:$4 sm:$0xff]   ;;  %v5682_v26 = vld [vmem:[%s6389_s24 + $0x5f0] ss:$8 sps:$4 sm:$0xff]  }
 0x54e   : > { %v3068_v2 = vmax.f32 %v3010_v25, 0.0  ;;  %3732 = vmatpush1.bf16.msra.mxu1 %v5673_v14  ;;  %v5684_v25 = vld [vmem:[%s6389_s24 + $0x5f4] ss:$8 sps:$4 sm:$0xff]  }
 0x54f   : > { %v3069_v4 = vmax.f32 %v3012_v22, 0.0  ;;  %3733 = vmatprep.subr.bf16.mxu1 %v5678_v36 }
 0x550   : > { %v3092_v44 = vpack.c.bf16 %v3068_v2, %v3066_v8 }
 0x551   : > { %v3093_v11 = vpack.c.bf16 %v3069_v4, %v3067_v53 }
 0x552   : > { %3734 = vmatpush1.bf16.msra.mxu1 %v5676_v5  ;;  %v4993_v5 = vld [vmem:[%s6392_s8 + $0x5] ss:$8 sm:$0x3] }
 0x553   : > { %3370 = vmatprep.mubr.bf16.mxu0 %v3093_v11  ;;  %3735 = vmatprep.subr.bf16.mxu1 %v5681_v10  ;;  %v7697_v10 = vrot.slane %v4993_v5, %v8150_v28 }
 0x554   : > { %3371 = vmatmul.mubr.bf16.gmra.mrb[76].mxu0 %v3092_v44 }
 0x556   : > { %3736 = vmatpush1.bf16.msra.mxu1 %v5679_v35  ;;  %v7700_v35 = vrot.slane %v4993_v5, %v8151_v18 }
 0x557   : > { %3737 = vmatprep.subr.bf16.mxu1 %v5684_v25 }
 0x55a   : > { %3738 = vmatpush1.bf16.msra.mxu1 %v5682_v26 }
 0x566   : > { %v3015_v37 = vpop.f32.mrb[48].mxu1 }
 0x567   : > { %v3016_v27 = vadd.f32 %v3015_v37, %v7626_v15  ;;  %v3017_v60 = vpop.f32.mrb[49].mxu1 }
 0x568   : > { %v3018_v58 = vadd.f32 %v3017_v60, %v7629_v42  ;;  %v3019_v32 = vpop.f32.mrb[50].mxu1 }
 0x569   : > { %v3020_v1 = vadd.f32 %v3019_v32, %v7626_v15  ;;  %v3021_v19 = vpop.f32.mrb[51].mxu1  ;;  %v3070_v61 = vmax.f32 %v3016_v27, 0.0 }
 0x56a   : > { %v3022_v17 = vadd.f32 %v3021_v19, %v7629_v42  ;;  %v3071_v63 = vmax.f32 %v3018_v58, 0.0 }
 0x56b   : > { %v3072_v0 = vmax.f32 %v3020_v1, 0.0 }
 0x56c   : > { %v3073_v3 = vmax.f32 %v3022_v17, 0.0 }
 0x56d   : > { %v3094_v23 = vpack.c.bf16 %v3072_v0, %v3070_v61 }
 0x56e   : > { %v3095_v29 = vpack.c.bf16 %v3073_v3, %v3071_v63 }
 0x570   : > { %3380 = vmatprep.mubr.bf16.mxu0 %v3095_v29 }
 0x571   : > { %3381 = vmatmul.mubr.bf16.gmra.mrb[80].mxu0 %v3094_v23 }
 0x587   : > { %v3025_v22 = vpop.f32.mrb[52].mxu1 }
 0x588   : > { %v3026_v8 = vadd.f32 %v3025_v22, %v7626_v15  ;;  %v3027_v2 = vpop.f32.mrb[53].mxu1 }
 0x589   : > { %v3028_v12 = vadd.f32 %v3027_v2, %v7629_v42  ;;  %v3029_v13 = vpop.f32.mrb[54].mxu1 }
 0x58a   : > { %v3030_v53 = vadd.f32 %v3029_v13, %v7626_v15  ;;  %v3031_v4 = vpop.f32.mrb[55].mxu1  ;;  %v3074_v44 = vmax.f32 %v3026_v8, 0.0  ;;  %v8152_v8 = vld [vmem:[#allocation25_spill] sm:$0xff] }
 0x58b   : > { %v3032_v34 = vadd.f32 %v3031_v4, %v7629_v42  ;;  %v3075_v21 = vmax.f32 %v3028_v12, 0.0 }
 0x58c   : > { %v3076_v11 = vmax.f32 %v3030_v53, 0.0  ;;  %v8153_v53 = vld [vmem:[#allocation44_spill] sm:$0xff] }
 0x58d   : > { %v3077_v54 = vmax.f32 %v3032_v34, 0.0 }
 0x58e   : > { %v3096_v6 = vpack.c.bf16 %v3076_v11, %v3074_v44  ;;  %v8154_v44 = vld [vmem:[#allocation40_spill] sm:$0xff] }
 0x58f   : > { %v3097_v30 = vpack.c.bf16 %v3077_v54, %v3075_v21  ;;  %v8155_v21 = vld [vmem:[#allocation41_spill] sm:$0xff] }
 0x591   : > { %3390 = vmatprep.mubr.bf16.mxu0 %v3097_v30 }
 0x592   : > { %3391 = vmatmul.mubr.bf16.gmra.mrb[84].mxu0 %v3096_v6 }
 0x5a9   : > { %v3035_v62 = vpop.f32.mrb[56].mxu1 }
 0x5aa   : > { %v3036_v48 = vadd.f32 %v3035_v62, %v7626_v15  ;;  %v3037_v46 = vpop.f32.mrb[57].mxu1 }
 0x5ab   : > { %v3038_v31 = vadd.f32 %v3037_v46, %v7629_v42  ;;  %v3039_v40 = vpop.f32.mrb[58].mxu1 }
 0x5ac   : > { %v3040_v52 = vadd.f32 %v3039_v40, %v7626_v15  ;;  %v3041_v50 = vpop.f32.mrb[59].mxu1  ;;  %v3078_v57 = vmax.f32 %v3036_v48, 0.0 }
 0x5ad   : > { %v3042_v37 = vadd.f32 %v3041_v50, %v7629_v42  ;;  %v3079_v60 = vmax.f32 %v3038_v31, 0.0 }
 0x5ae   : > { %v3080_v27 = vmax.f32 %v3040_v52, 0.0 }
 0x5af   : > { %v3081_v58 = vmax.f32 %v3042_v37, 0.0 }
 0x5b0   : > { %v3098_v32 = vpack.c.bf16 %v3080_v27, %v3078_v57  ;;  %v8156_v27 = vld [vmem:[#allocation52_spill] sm:$0xff] }
 0x5b1   : > { %v3099_v1 = vpack.c.bf16 %v3081_v58, %v3079_v60 }
 0x5b3   : > { %3400 = vmatprep.mubr.bf16.mxu0 %v3099_v1  ;;  %v8157_v1 = vld [vmem:[#allocation53_spill] sm:$0xff] }
 0x5b4   : > { %3401 = vmatmul.mubr.bf16.gmra.mrb[88].mxu0 %v3098_v32 }
 0x5c6   : > { %v3045_v19 = vpop.f32.mrb[60].mxu1 }
 0x5c7   : > { %v3046_v51 = vadd.f32 %v3045_v19, %v7626_v15  ;;  %v3047_v17 = vpop.f32.mrb[61].mxu1 }
 0x5c8   : > { %v3048_v39 = vadd.f32 %v3047_v17, %v7629_v42  ;;  %v3049_v61 = vpop.f32.mrb[62].mxu1  ;;  %v8158_v17 = vld [vmem:[#allocation49_spill] sm:$0xff] }
 0x5c9   : > { %v3050_v0 = vadd.f32 %v3049_v61, %v7626_v15  ;;  %v3051_v63 = vpop.f32.mrb[63].mxu1  ;;  %v3082_v23 = vmax.f32 %v3046_v51, 0.0  ;;  %v8159_v61 = vld [vmem:[#allocation50_spill] sm:$0xff] }
 0x5ca   : > { %v3052_v3 = vadd.f32 %v3051_v63, %v7629_v42  ;;  %v3083_v29 = vmax.f32 %v3048_v39, 0.0 }
 0x5cb   : > { %v3084_v49 = vmax.f32 %v3050_v0, 0.0 }
 0x5cc   : > { %v3085_v16 = vmax.f32 %v3052_v3, 0.0 }
 0x5cd   : > { %v3100_v14 = vpack.c.bf16 %v3084_v49, %v3082_v23 }
 0x5ce   : > { %v3101_v36 = vpack.c.bf16 %v3085_v16, %v3083_v29 }
 0x5d0   : > { %3410 = vmatprep.mubr.bf16.mxu0 %v3101_v36 }
 0x5d1   : > { %3411 = vmatmul.mubr.bf16.gmra.mrb[92].mxu0 %v3100_v14 }
 0x5f3   : > { %v3342_v25 = vpop.f32.mrb[64].mxu0 }
 0x5f4   : > { %v3343_v15 = vadd.f32 %v3342_v25, %v7697_v10  ;;  %v3344_v26 = vpop.f32.mrb[65].mxu0 }
 0x5f5   : > { %v3345_v42 = vadd.f32 %v3344_v26, %v7700_v35  ;;  %v3346_v22 = vpop.f32.mrb[66].mxu0 }
 0x5f6   : > { %v3421_v2 = vadd.f32 %v3343_v15, %v8152_v8  ;;  %v3347_v12 = vadd.f32 %v3346_v22, %v7697_v10  ;;  %v3348_v13 = vpop.f32.mrb[67].mxu0 }
 0x5f7   : > { %v3422_v4 = vadd.f32 %v3345_v42, %v8153_v53  ;;  %v3349_v34 = vadd.f32 %v3348_v13, %v7700_v35  ;;  %v8161_v53 = vld [vmem:[#allocation32_spill] sm:$0xff] }
 0x5f8   : > { %v3423_v11 = vadd.f32 %v3347_v12, %v8154_v44  ;;  %v3453_v6 = vmax.f32 %v3421_v2, 0.0  ;;  %v8160_v12 = vld [vmem:[#allocation31_spill] sm:$0xff] }
 0x5f9   : > { %v3424_v54 = vadd.f32 %v3349_v34, %v8155_v21  ;;  %v3454_v62 = vmax.f32 %v3422_v4, 0.0 }
 0x5fa   : > { %v3455_v30 = vmax.f32 %v3423_v11, 0.0 }
 0x5fb   : > { %v3456_v48 = vmax.f32 %v3424_v54, 0.0  ;;  %v3352_v46 = vpop.f32.mrb[68].mxu0 }
 0x5fc   : > { %v3485_v31 = vpack.c.bf16 %v3455_v30, %v3453_v6  ;;  %v3353_v40 = vadd.f32 %v3352_v46, %v7697_v10  ;;  %v3354_v52 = vpop.f32.mrb[69].mxu0  ;;  %v5685_v6 = vld [vmem:[%s6389_s24 + $0x600] ss:$8 sps:$4 sm:$0xff]   ;;  %v5687_v30 = vld [vmem:[%s6389_s24 + $0x604] ss:$8 sps:$4 sm:$0xff]  }
 0x5fd   : > { %v3355_v50 = vadd.f32 %v3354_v52, %v7700_v35  ;;  %v3356_v37 = vpop.f32.mrb[70].mxu0  ;;  %v3486_v57 = vpack.c.bf16 %v3456_v48, %v3454_v62  ;;  %4074 = vmatprep.subr.bf16.mxu0 %v5687_v30  ;;  %v5688_v62 = vld [vmem:[%s6389_s24 + $0x610] ss:$8 sps:$4 sm:$0xff]  }
 0x5fe   : > { %v3425_v60 = vadd.f32 %v3353_v40, %v8156_v27  ;;  %v3357_v58 = vadd.f32 %v3356_v37, %v7697_v10  ;;  %v3358_v32 = vpop.f32.mrb[71].mxu0  ;;  %4075 = vmatpush1.bf16.msra.mxu0 %v5685_v6  ;;  %v8162_v37 = vld [vmem:[#allocation26_spill] sm:$0xff] }
 0x5ff   : > { %v3426_v19 = vadd.f32 %v3355_v50, %v8157_v1  ;;  %v3359_v51 = vadd.f32 %v3358_v32, %v7700_v35  ;;  %3739 = vmatprep.mubr.bf16.mxu1 %v3486_v57  ;;  %v5693_v50 = vld [vmem:[%s6389_s24 + $0x624] ss:$8 sps:$4 sm:$0xff]   ;;  %v8163_v32 = vld [vmem:[#allocation47_spill] sm:$0xff] }
 0x600   : > { %v3427_v39 = vadd.f32 %v3357_v58, %v8158_v17  ;;  %3740 = vmatmul.mubr.bf16.vlgmr.msra.gmra.mrb[64].mxu1 %v3485_v31  ;;  %v3457_v63 = vmax.f32 %v3425_v60, 0.0  ;;  %v5691_v58 = vld [vmem:[%s6389_s24 + $0x620] ss:$8 sps:$4 sm:$0xff]  }
 0x601   : > { %v3428_v0 = vadd.f32 %v3359_v51, %v8159_v61  ;;  %v3458_v23 = vmax.f32 %v3426_v19, 0.0  ;;  %v8164_v51 = vld [vmem:[#allocation45_spill] sm:$0xff]  ;;  %v5696_v61 = vld [vmem:[%s6389_s24 + $0x634] ss:$8 sps:$4 sm:$0xff]  }
 0x602   : > { %v3459_v3 = vmax.f32 %v3427_v39, 0.0  ;;  %v5694_v39 = vld [vmem:[%s6389_s24 + $0x630] ss:$8 sps:$4 sm:$0xff]  }
 0x603   : > { %v3460_v49 = vmax.f32 %v3428_v0, 0.0  ;;  %v8165_v0 = vld [vmem:[#allocation36_spill] sm:$0xff] }
 0x604   : > { %v3487_v29 = vpack.c.bf16 %v3459_v3, %v3457_v63  ;;  %v5699_v3 = vld [vmem:[%s6389_s24 + $0x644] ss:$8 sps:$4 sm:$0xff]  }
 0x605   : > { %v3488_v16 = vpack.c.bf16 %v3460_v49, %v3458_v23 }
 0x606   : > { %v3362_v14 = vpop.f32.mrb[72].mxu0 }
 0x607   : > { %3749 = vmatprep.mubr.bf16.mxu1 %v3488_v16  ;;  %v3363_v36 = vadd.f32 %v3362_v14, %v7697_v10  ;;  %v3364_v5 = vpop.f32.mrb[73].mxu0 }
 0x608   : > { %3750 = vmatmul.mubr.bf16.gmra.mrb[68].mxu1 %v3487_v29  ;;  %v3365_v25 = vadd.f32 %v3364_v5, %v7700_v35  ;;  %v3366_v15 = vpop.f32.mrb[74].mxu0 }
 0x609   : > { %v3429_v26 = vadd.f32 %v3363_v36, %v7036_v20  ;;  %v3367_v42 = vadd.f32 %v3366_v15, %v7697_v10  ;;  %v3368_v22 = vpop.f32.mrb[75].mxu0  ;;  %v5697_v36 = vld [vmem:[%s6389_s24 + $0x640] ss:$8 sps:$4 sm:$0xff]   ;;  %v5700_v15 = vld [vmem:[%s6389_s24 + $0x650] ss:$8 sps:$4 sm:$0xff]  }
 0x60a   : > { %v3430_v8 = vadd.f32 %v3365_v25, %v7039_v47  ;;  %v3369_v2 = vadd.f32 %v3368_v22, %v7700_v35  ;;  %v5690_v47 = vld [vmem:[%s6389_s24 + $0x614] ss:$8 sps:$4 sm:$0xff]  }
 0x60b   : > { %v3431_v13 = vadd.f32 %v3367_v42, %v8160_v12  ;;  %v3461_v34 = vmax.f32 %v3429_v26, 0.0  ;;  %4076 = vmatprep.subr.bf16.mxu0 %v5690_v47  ;;  %v5702_v25 = vld [vmem:[%s6389_s24 + $0x654] ss:$8 sps:$4 sm:$0xff]   ;;  %v5705_v26 = vld [vmem:[%s6389_s24 + $0x664] ss:$8 sps:$4 sm:$0xff]  }
 0x60c   : > { %v3432_v4 = vadd.f32 %v3369_v2, %v8161_v53  ;;  %v3462_v11 = vmax.f32 %v3430_v8, 0.0  ;;  %4077 = vmatpush1.bf16.msra.mxu0 %v5688_v62  ;;  %v5703_v42 = vld [vmem:[%s6389_s24 + $0x660] ss:$8 sps:$4 sm:$0xff]   ;;  %v5708_v22 = vld [vmem:[%s6389_s24 + $0x674] ss:$8 sps:$4 sm:$0xff]  }
 0x60d   : > { %v3463_v44 = vmax.f32 %v3431_v13, 0.0  ;;  %4078 = vmatprep.subr.bf16.mxu0 %v5693_v50  ;;  %v5706_v8 = vld [vmem:[%s6389_s24 + $0x670] ss:$8 sps:$4 sm:$0xff]   ;;  %v5711_v2 = vld [vmem:[%s6389_s24 + $0x684] ss:$8 sps:$4 sm:$0xff]  }
 0x60e   : > { %v3464_v21 = vmax.f32 %v3432_v4, 0.0  ;;  %v5709_v12 = vld [vmem:[%s6389_s24 + $0x680] ss:$8 sps:$4 sm:$0xff]   ;;  %v5714_v13 = vld [vmem:[%s6389_s24 + $0x694] ss:$8 sps:$4 sm:$0xff]  }
 0x60f   : > { %v3489_v54 = vpack.c.bf16 %v3463_v44, %v3461_v34  ;;  %v5712_v4 = vld [vmem:[%s6389_s24 + $0x690] ss:$8 sps:$4 sm:$0xff]  }
 0x610   : > { %v3490_v20 = vpack.c.bf16 %v3464_v21, %v3462_v11  ;;  %4079 = vmatpush1.bf16.msra.mxu0 %v5691_v58  ;;  %v5717_v11 = vld [vmem:[%s6389_s24 + $0x6a4] ss:$8 sps:$4 sm:$0xff]   ;;  %v5721_v58 = vld [vmem:[%s6389_s24 + $0x6c0] ss:$8 sps:$4 sm:$0xff]  }
 0x611   : > { %4080 = vmatprep.subr.bf16.mxu0 %v5696_v61 }
 0x612   : > { %3759 = vmatprep.mubr.bf16.mxu1 %v3490_v20 }
 0x613   : > { %3760 = vmatmul.mubr.bf16.gmra.mrb[72].mxu1 %v3489_v54 }
 0x614   : > { %4081 = vmatpush1.bf16.msra.mxu0 %v5694_v39  ;;  %v5730_v39 = vld [vmem:[%s6389_s24 + $0x6f0] ss:$8 sps:$4 sm:$0xff]  }
 0x615   : > { %4082 = vmatprep.subr.bf16.mxu0 %v5699_v3 }
 0x618   : > { %4083 = vmatpush1.bf16.msra.mxu0 %v5697_v36  ;;  %v8168_v36 = vld [vmem:[#allocation35_spill] sm:$0xff] }
 0x619   : > { %4084 = vmatprep.subr.bf16.mxu0 %v5702_v25 }
 0x61c   : > { %4085 = vmatpush1.bf16.msra.mxu0 %v5700_v15  ;;  %v8169_v15 = vld [vmem:[#allocation28_spill] sm:$0xff] }
 0x61d   : > { %4086 = vmatprep.subr.bf16.mxu0 %v5705_v26 }
 0x620   : > { %4087 = vmatpush1.bf16.msra.mxu0 %v5703_v42  ;;  %v8170_v42 = vld [vmem:[#allocation27_spill] sm:$0xff] }
 0x621   : > { %4088 = vmatprep.subr.bf16.mxu0 %v5708_v22 }
 0x624   : > { %4089 = vmatpush1.bf16.msra.mxu0 %v5706_v8 }
 0x625   : > { %4090 = vmatprep.subr.bf16.mxu0 %v5711_v2 }
 0x627   : > { %v3372_v48 = vpop.f32.mrb[76].mxu0 }
 0x628   : > { %v3373_v46 = vadd.f32 %v3372_v48, %v7697_v10  ;;  %v3374_v31 = vpop.f32.mrb[77].mxu0  ;;  %4091 = vmatpush1.bf16.msra.mxu0 %v5709_v12  ;;  %v5715_v48 = vld [vmem:[%s6389_s24 + $0x6a0] ss:$8 sps:$4 sm:$0xff]  }
 0x629   : > { %v3375_v40 = vadd.f32 %v3374_v31, %v7700_v35  ;;  %v3376_v52 = vpop.f32.mrb[78].mxu0  ;;  %4092 = vmatprep.subr.bf16.mxu0 %v5714_v13  ;;  %v5720_v31 = vld [vmem:[%s6389_s24 + $0x6b4] ss:$8 sps:$4 sm:$0xff]  }
 0x62a   : > { %v3433_v57 = vadd.f32 %v3373_v46, %v8162_v37  ;;  %v3377_v27 = vadd.f32 %v3376_v52, %v7697_v10  ;;  %v3378_v60 = vpop.f32.mrb[79].mxu0 }
 0x62b   : > { %v3434_v1 = vadd.f32 %v3375_v40, %v8163_v32  ;;  %v3379_v19 = vadd.f32 %v3378_v60, %v7700_v35  ;;  %v8166_v40 = vld [vmem:[#allocation46_spill] sm:$0xff]  ;;  %v5726_v32 = vld [vmem:[%s6389_s24 + $0x6d4] ss:$8 sps:$4 sm:$0xff]  }
 0x62c   : > { %v3435_v17 = vadd.f32 %v3377_v27, %v8164_v51  ;;  %v3465_v23 = vmax.f32 %v3433_v57, 0.0  ;;  %4093 = vmatpush1.bf16.msra.mxu0 %v5712_v4  ;;  %v5723_v60 = vld [vmem:[%s6389_s24 + $0x6c4] ss:$8 sps:$4 sm:$0xff]   ;;  %v5727_v51 = vld [vmem:[%s6389_s24 + $0x6e0] ss:$8 sps:$4 sm:$0xff]  }
 0x62d   : > { %v3436_v63 = vadd.f32 %v3379_v19, %v8165_v0  ;;  %v3466_v29 = vmax.f32 %v3434_v1, 0.0  ;;  %4094 = vmatprep.subr.bf16.mxu0 %v5717_v11  ;;  %v5724_v1 = vld [vmem:[%s6389_s24 + $0x6d0] ss:$8 sps:$4 sm:$0xff]   ;;  %v5729_v19 = vld [vmem:[%s6389_s24 + $0x6e4] ss:$8 sps:$4 sm:$0xff]  }
 0x62e   : > { %v3467_v49 = vmax.f32 %v3435_v17, 0.0  ;;  %v5732_v17 = vld [vmem:[%s6389_s24 + $0x6f4] ss:$8 sps:$4 sm:$0xff]  }
 0x62f   : > { %v3468_v16 = vmax.f32 %v3436_v63, 0.0 }
 0x630   : > { %v3491_v14 = vpack.c.bf16 %v3467_v49, %v3465_v23  ;;  %4095 = vmatpush1.bf16.msra.mxu0 %v5715_v48  ;;  %v8167_v49 = vld [vmem:[#allocation34_spill] sm:$0xff] }
 0x631   : > { %v3492_v5 = vpack.c.bf16 %v3468_v16, %v3466_v29  ;;  %4096 = vmatprep.subr.bf16.mxu0 %v5720_v31 }
 0x633   : > { %3769 = vmatprep.mubr.bf16.mxu1 %v3492_v5 }
 0x634   : > { %3770 = vmatmul.mubr.bf16.gmra.mrb[76].mxu1 %v3491_v14 }
 0x644   : > { %v3382_v53 = vpop.f32.mrb[80].mxu0 }
 0x645   : > { %v3383_v34 = vadd.f32 %v3382_v53, %v7697_v10  ;;  %v3384_v44 = vpop.f32.mrb[81].mxu0 }
 0x646   : > { %v3385_v21 = vadd.f32 %v3384_v44, %v7700_v35  ;;  %v3386_v54 = vpop.f32.mrb[82].mxu0 }
 0x647   : > { %v3437_v20 = vadd.f32 %v3383_v34, %v7214_v9  ;;  %v3387_v6 = vadd.f32 %v3386_v54, %v7697_v10  ;;  %v3388_v30 = vpop.f32.mrb[83].mxu0 }
 0x648   : > { %v3438_v47 = vadd.f32 %v3385_v21, %v7216_v38  ;;  %v3389_v62 = vadd.f32 %v3388_v30, %v7700_v35  ;;  %v5718_v38 = vld [vmem:[%s6389_s24 + $0x6b0] ss:$8 sps:$4 sm:$0xff]   ;;  %s6040_s24 = smov [#allocation13]  }
 0x649   : > { %v3439_v46 = vadd.f32 %v3387_v6, %v7202_v43  ;;  %v3469_v9 = vmax.f32 %v3437_v20, 0.0  ;;  %4097 = vmatpush1.bf16.msra.mxu0 %v5718_v38  ;;  %s5933_s12 = sshll.u32 %s6040_s24, 4  ;;  %s5934_s12 = int_to_ptr.vmem [resolvable:$false] %s5933_s12 }
 0x64a   : > { %v3440_v52 = vadd.f32 %v3389_v62, %v8166_v40  ;;  %v3470_v37 = vmax.f32 %v3438_v47, 0.0  ;;  %4098 = vmatprep.subr.bf16.mxu0 %v5723_v60  ;;  %p5936_p8 = scmp.lt.s32.totalorder %s7936_s19, %s5934_s12 }
 0x64b   : > { %v3471_v50 = vmax.f32 %v3439_v46, 0.0 }
 0x64c   : > { %v3472_v57 = vmax.f32 %v3440_v52, 0.0 }
 0x64d   : > { %v3493_v27 = vpack.c.bf16 %v3471_v50, %v3469_v9  ;;  %4099 = vmatpush1.bf16.msra.mxu0 %v5721_v58 }
 0x64e   : > { %v3494_v43 = vpack.c.bf16 %v3472_v57, %v3470_v37  ;;  %4100 = vmatprep.subr.bf16.mxu0 %v5726_v32 }
 0x650   : > { %3779 = vmatprep.mubr.bf16.mxu1 %v3494_v43 }
 0x651   : > { %3780 = vmatmul.mubr.bf16.gmra.mrb[80].mxu1 %v3493_v27  ;;  %4101 = vmatpush1.bf16.msra.mxu0 %v5724_v1 }
 0x652   : > { %4102 = vmatprep.subr.bf16.mxu0 %v5729_v19 }
 0x655   : > { %4103 = vmatpush1.bf16.msra.mxu0 %v5727_v51 }
 0x656   : > { %4104 = vmatprep.subr.bf16.mxu0 %v5732_v17 }
 0x659   : > { %4105 = vmatpush1.bf16.msra.mxu0 %v5730_v39 }
 0x665   : > { %v3392_v61 = vpop.f32.mrb[84].mxu0 }
 0x666   : > { %v3393_v0 = vadd.f32 %v3392_v61, %v7697_v10  ;;  %v3394_v63 = vpop.f32.mrb[85].mxu0 }
 0x667   : > { %v3395_v3 = vadd.f32 %v3394_v63, %v7700_v35  ;;  %v3396_v23 = vpop.f32.mrb[86].mxu0 }
 0x668   : > { %v3441_v29 = vadd.f32 %v3393_v0, %v8167_v49  ;;  %v3397_v16 = vadd.f32 %v3396_v23, %v7697_v10  ;;  %v3398_v14 = vpop.f32.mrb[87].mxu0 }
 0x669   : > { %v3442_v5 = vadd.f32 %v3395_v3, %v8168_v36  ;;  %v3399_v25 = vadd.f32 %v3398_v14, %v7700_v35 }
 0x66a   : > { %v3443_v26 = vadd.f32 %v3397_v16, %v8169_v15  ;;  %v3473_v8 = vmax.f32 %v3441_v29, 0.0 }
 0x66b   : > { %v3444_v22 = vadd.f32 %v3399_v25, %v8170_v42  ;;  %v3474_v12 = vmax.f32 %v3442_v5, 0.0 }
 0x66c   : > { %v3475_v2 = vmax.f32 %v3443_v26, 0.0 }
 0x66d   : > { %v3476_v13 = vmax.f32 %v3444_v22, 0.0 }
 0x66e   : > { %v3495_v53 = vpack.c.bf16 %v3475_v2, %v3473_v8 }
 0x66f   : > { %v3496_v4 = vpack.c.bf16 %v3476_v13, %v3474_v12 }
 0x671   : > { %3789 = vmatprep.mubr.bf16.mxu1 %v3496_v4 }
 0x672   : > { %3790 = vmatmul.mubr.bf16.gmra.mrb[84].mxu1 %v3495_v53 }
 0x687   : > { %v3402_v34 = vpop.f32.mrb[88].mxu0 }
 0x688   : > { %v3403_v44 = vadd.f32 %v3402_v34, %v7697_v10  ;;  %v3404_v11 = vpop.f32.mrb[89].mxu0 }
 0x689   : > { %v3405_v21 = vadd.f32 %v3404_v11, %v7700_v35  ;;  %v3406_v54 = vpop.f32.mrb[90].mxu0 }
 0x68a   : > { %v3445_v20 = vadd.f32 %v3403_v44, %v7335_v56  ;;  %v3407_v6 = vadd.f32 %v3406_v54, %v7697_v10  ;;  %v3408_v30 = vpop.f32.mrb[91].mxu0 }
 0x68b   : > { %v3446_v47 = vadd.f32 %v3405_v21, %v7337_v33  ;;  %v3409_v62 = vadd.f32 %v3408_v30, %v7700_v35 }
 0x68c   : > { %v3447_v48 = vadd.f32 %v3407_v6, %v7345_v24  ;;  %v3477_v31 = vmax.f32 %v3445_v20, 0.0 }
 0x68d   : > { %v3448_v46 = vadd.f32 %v3409_v62, %v7347_v59  ;;  %v3478_v52 = vmax.f32 %v3446_v47, 0.0 }
 0x68e   : > { %v3479_v40 = vmax.f32 %v3447_v48, 0.0 }
 0x68f   : > { %v3480_v9 = vmax.f32 %v3448_v46, 0.0 }
 0x690   : > { %v3497_v50 = vpack.c.bf16 %v3479_v40, %v3477_v31 }
 0x691   : > { %v3498_v37 = vpack.c.bf16 %v3480_v9, %v3478_v52 }
 0x693   : > { %3799 = vmatprep.mubr.bf16.mxu1 %v3498_v37 }
 0x694   : > { %3800 = vmatmul.mubr.bf16.gmra.mrb[88].mxu1 %v3497_v50 }
 0x6a4   : > { %v3412_v56 = vpop.f32.mrb[92].mxu0 }
 0x6a5   : > { %v3413_v57 = vadd.f32 %v3412_v56, %v7697_v10  ;;  %v3414_v38 = vpop.f32.mrb[93].mxu0 }
 0x6a6   : > { %v3415_v33 = vadd.f32 %v3414_v38, %v7700_v35  ;;  %v3416_v27 = vpop.f32.mrb[94].mxu0 }
 0x6a7   : > { %v3449_v24 = vadd.f32 %v3413_v57, %v7405_v55  ;;  %v3417_v59 = vadd.f32 %v3416_v27, %v7697_v10  ;;  %v3418_v60 = vpop.f32.mrb[95].mxu0  ;;  %v5058_v55 = vld [vmem:[%s6392_s8 + $0x6] ss:$8 sm:$0x3] }
 0x6a8   : > { %v3450_v43 = vadd.f32 %v3415_v33, %v7407_v7  ;;  %v3419_v58 = vadd.f32 %v3418_v60, %v7700_v35  ;;  %v7800_v10 = vrot.slane %v5058_v55, %v8150_v28  ;;  %v7803_v7 = vrot.slane %v5058_v55, %v8151_v18  ;;  %v5736_v55 = vld [vmem:[%s6401_s21 + $0x8] sm:$0xff]  }
 0x6a9   : > { %v3451_v32 = vadd.f32 %v3417_v59, %v7395_v45  ;;  %v3481_v19 = vmax.f32 %v3449_v24, 0.0 }
 0x6aa   : > { %v3452_v1 = vadd.f32 %v3419_v58, %v7397_v41  ;;  %v3482_v17 = vmax.f32 %v3450_v43, 0.0 }
 0x6ab   : > { %v3483_v51 = vmax.f32 %v3451_v32, 0.0 }
 0x6ac   : > { %v3484_v39 = vmax.f32 %v3452_v1, 0.0 }
 0x6ad   : > { %v3499_v61 = vpack.c.bf16 %v3483_v51, %v3481_v19 }
 0x6ae   : > { %v3500_v0 = vpack.c.bf16 %v3484_v39, %v3482_v17  ;;  %v5733_v39 = vld [vmem:[%s6401_s21 + $0x40] sm:$0xff]  }
 0x6af   : > { %5184 = vmatprep.subr.bf16.mxu1 %v5733_v39 }
 0x6b0   : > { %3809 = vmatprep.mubr.bf16.mxu1 %v3500_v0  ;;  %v5735_v0 = vld [vmem:[%s6401_s21 + $0x48] sm:$0xff]  }
 0x6b1   : > { %3810 = vmatmul.mubr.bf16.gmra.mrb[92].mxu1 %v3499_v61  ;;  %v5734_v61 = vld [vmem:[%s6401_s21] sm:$0xff]  }
 0x6b2   : > { %5185 = vmatpush3.bf16.msra.mxu1 %v5734_v61 }
 0x6b3   : > { %5186 = vmatprep.subr.bf16.mxu1 %v5735_v0 }
 0x6b6   : > { %5187 = vmatpush3.bf16.msra.mxu1 %v5736_v55 }
 0x6d3   : > { %v3741_v35 = vpop.f32.mrb[64].mxu1 }
 0x6d4   : > { %v3742_v45 = vadd.f32 %v3741_v35, %v7800_v10  ;;  %v3743_v63 = vpop.f32.mrb[65].mxu1  ;;  %v5737_v35 = vld [vmem:[%s6401_s21 + $0x50] sm:$0xff]  }
 0x6d5   : > { %v3744_v41 = vadd.f32 %v3743_v63, %v7803_v7  ;;  %v3745_v3 = vpop.f32.mrb[66].mxu1  ;;  %5188 = vmatprep.subr.bf16.mxu1 %v5737_v35  ;;  %v5739_v63 = vld [vmem:[%s6401_s21 + $0x58] sm:$0xff]  }
 0x6d6   : > { %v3746_v23 = vadd.f32 %v3745_v3, %v7800_v10  ;;  %v3747_v49 = vpop.f32.mrb[67].mxu1  ;;  %v3820_v16 = vmax.f32 %v3742_v45, 0.0  ;;  %v5738_v45 = vld [vmem:[%s6401_s21 + $0x10] sm:$0xff]   ;;  %v5741_v3 = vld [vmem:[%s6401_s21 + $0x60] sm:$0xff]  }
 0x6d7   : > { %v3748_v29 = vadd.f32 %v3747_v49, %v7803_v7  ;;  %v3821_v36 = vmax.f32 %v3744_v41, 0.0  ;;  %5189 = vmatpush3.bf16.msra.mxu1 %v5738_v45  ;;  %v5740_v41 = vld [vmem:[%s6401_s21 + $0x18] sm:$0xff]   ;;  %v5743_v49 = vld [vmem:[%s6401_s21 + $0x68] sm:$0xff]  }
 0x6d8   : > { %v3822_v14 = vmax.f32 %v3746_v23, 0.0  ;;  %5190 = vmatprep.subr.bf16.mxu1 %v5739_v63  ;;  %v5742_v23 = vld [vmem:[%s6401_s21 + $0x20] sm:$0xff]  }
 0x6d9   : > { %v3823_v5 = vmax.f32 %v3748_v29, 0.0 }
 0x6da   : > { %v3852_v25 = vpack.c.bf16 %v3822_v14, %v3820_v16 }
 0x6db   : > { %v3853_v15 = vpack.c.bf16 %v3823_v5, %v3821_v36  ;;  %v3751_v26 = vpop.f32.mrb[68].mxu1  ;;  %5191 = vmatpush3.bf16.msra.mxu1 %v5740_v41 }
 0x6dc   : > { %v3752_v42 = vadd.f32 %v3751_v26, %v7800_v10  ;;  %v3753_v22 = vpop.f32.mrb[69].mxu1  ;;  %5192 = vmatprep.subr.bf16.mxu1 %v5741_v3 }
 0x6dd   : > { %v3754_v8 = vadd.f32 %v3753_v22, %v7803_v7  ;;  %v3755_v2 = vpop.f32.mrb[70].mxu1  ;;  %4106 = vmatprep.mubr.bf16.mxu0 %v3853_v15 }
 0x6de   : > { %v3756_v12 = vadd.f32 %v3755_v2, %v7800_v10  ;;  %v3757_v13 = vpop.f32.mrb[71].mxu1  ;;  %4107 = vmatmul.mubr.bf16.vlgmr.msra.gmra.mrb[96].mxu0 %v3852_v25  ;;  %v3824_v4 = vmax.f32 %v3752_v42, 0.0 }
 0x6df   : > { %v3758_v53 = vadd.f32 %v3757_v13, %v7803_v7  ;;  %v3825_v44 = vmax.f32 %v3754_v8, 0.0  ;;  %5193 = vmatpush3.bf16.msra.mxu1 %v5742_v23 }
 0x6e0   : > { %v3826_v34 = vmax.f32 %v3756_v12, 0.0  ;;  %5194 = vmatprep.subr.bf16.mxu1 %v5743_v49 }
 0x6e1   : > { %v3827_v11 = vmax.f32 %v3758_v53, 0.0  ;;  %v5744_v53 = vld [vmem:[%s6401_s21 + $0x28] sm:$0xff]  }
 0x6e2   : > { %v3854_v21 = vpack.c.bf16 %v3826_v34, %v3824_v4  ;;  %v5745_v4 = vld [vmem:[%s6401_s21 + $0x70] sm:$0xff]  }
 0x6e3   : > { %v3855_v54 = vpack.c.bf16 %v3827_v11, %v3825_v44  ;;  %5195 = vmatpush3.bf16.msra.mxu1 %v5744_v53  ;;  %v5746_v34 = vld [vmem:[%s6401_s21 + $0x30] sm:$0xff]   ;;  %v5747_v44 = vld [vmem:[%s6401_s21 + $0x78] sm:$0xff]  }
 0x6e4   : > { %5196 = vmatprep.subr.bf16.mxu1 %v5745_v4  ;;  %v5748_v11 = vld [vmem:[%s6401_s21 + $0x38] sm:$0xff]  }
 0x6e5   : > { %4116 = vmatprep.mubr.bf16.mxu0 %v3855_v54 }
 0x6e6   : > { %4117 = vmatmul.mubr.bf16.gmra.mrb[100].mxu0 %v3854_v21  ;;  %v3761_v20 = vpop.f32.mrb[72].mxu1 }
 0x6e7   : > { %v3762_v6 = vadd.f32 %v3761_v20, %v7800_v10  ;;  %v3763_v30 = vpop.f32.mrb[73].mxu1  ;;  %5197 = vmatpush3.bf16.msra.mxu1 %v5746_v34 }
 0x6e8   : > { %v3764_v47 = vadd.f32 %v3763_v30, %v7803_v7  ;;  %v3765_v62 = vpop.f32.mrb[74].mxu1  ;;  %5198 = vmatprep.subr.bf16.mxu1 %v5747_v44 }
 0x6e9   : > { %v3766_v48 = vadd.f32 %v3765_v62, %v7800_v10  ;;  %v3767_v46 = vpop.f32.mrb[75].mxu1  ;;  %v3828_v40 = vmax.f32 %v3762_v6, 0.0 }
 0x6ea   : > { %v3768_v31 = vadd.f32 %v3767_v46, %v7803_v7  ;;  %v3829_v9 = vmax.f32 %v3764_v47, 0.0 }
 0x6eb   : > { %v3830_v52 = vmax.f32 %v3766_v48, 0.0  ;;  %5199 = vmatpush3.bf16.msra.mxu1 %v5748_v11 }
 0x6ec   : > { %v3831_v50 = vmax.f32 %v3768_v31, 0.0 }
 0x6ed   : > { %v3856_v37 = vpack.c.bf16 %v3830_v52, %v3828_v40 }
 0x6ee   : > { %v3857_v56 = vpack.c.bf16 %v3831_v50, %v3829_v9 }
 0x6f0   : > { %4126 = vmatprep.mubr.bf16.mxu0 %v3857_v56 }
 0x6f1   : > { %4127 = vmatmul.mubr.bf16.gmra.mrb[104].mxu0 %v3856_v37 }
 0x707   : > { %v3771_v57 = vpop.f32.mrb[76].mxu1 }
 0x708   : > { %v3772_v38 = vadd.f32 %v3771_v57, %v7800_v10  ;;  %v3773_v33 = vpop.f32.mrb[77].mxu1 }
 0x709   : > { %v3774_v27 = vadd.f32 %v3773_v33, %v7803_v7  ;;  %v3775_v24 = vpop.f32.mrb[78].mxu1 }
 0x70a   : > { %v3776_v59 = vadd.f32 %v3775_v24, %v7800_v10  ;;  %v3777_v60 = vpop.f32.mrb[79].mxu1  ;;  %v3832_v58 = vmax.f32 %v3772_v38, 0.0 }
 0x70b   : > { %v3778_v43 = vadd.f32 %v3777_v60, %v7803_v7  ;;  %v3833_v1 = vmax.f32 %v3774_v27, 0.0 }
 0x70c   : > { %v3834_v32 = vmax.f32 %v3776_v59, 0.0 }
 0x70d   : > { %v3835_v19 = vmax.f32 %v3778_v43, 0.0 }
 0x70e   : > { %v3858_v51 = vpack.c.bf16 %v3834_v32, %v3832_v58 }
 0x70f   : > { %v3859_v17 = vpack.c.bf16 %v3835_v19, %v3833_v1 }
 0x711   : > { %4136 = vmatprep.mubr.bf16.mxu0 %v3859_v17 }
 0x712   : > { %4137 = vmatmul.mubr.bf16.gmra.mrb[108].mxu0 %v3858_v51 }
 0x724   : > { %v3781_v29 = vpop.f32.mrb[80].mxu1 }
 0x725   : > { %v3782_v16 = vadd.f32 %v3781_v29, %v7800_v10  ;;  %v3783_v14 = vpop.f32.mrb[81].mxu1 }
 0x726   : > { %v3784_v36 = vadd.f32 %v3783_v14, %v7803_v7  ;;  %v3785_v5 = vpop.f32.mrb[82].mxu1 }
 0x727   : > { %v3786_v25 = vadd.f32 %v3785_v5, %v7800_v10  ;;  %v3787_v15 = vpop.f32.mrb[83].mxu1  ;;  %v3836_v42 = vmax.f32 %v3782_v16, 0.0  ;;  %v5123_v16 = vld [vmem:[%s6392_s8 + $0x7] ss:$8 sm:$0x3]  ;;  %s5935_s8 = scalar_lea.vmem %s5934_s12, 4096 }
 0x728   : > { %v3788_v26 = vadd.f32 %v3787_v15, %v7803_v7  ;;  %v3837_v8 = vmax.f32 %v3784_v36, 0.0  ;;  %v7855_v14 = vrot.slane %v5123_v16, %v8150_v28  ;;  %v7858_v36 = vrot.slane %v5123_v16, %v8151_v18  ;;  %p5937_p10 = scmp.lt.s32.totalorder %s5935_s8, %s5929_s29 }
 0x729   : > { %v3838_v22 = vmax.f32 %v3786_v25, 0.0 }
 0x72a   : > { %v3839_v2 = vmax.f32 %v3788_v26, 0.0  ;;  %p5938_p13 = por %p5937_p10, %p5936_p8 }
 0x72b   : > { %v3860_v12 = vpack.c.bf16 %v3838_v22, %v3836_v42 }
 0x72c   : > { %v3861_v13 = vpack.c.bf16 %v3839_v2, %v3837_v8  ;;  %p5939_p9 = pnand %p5938_p13, %p5932_p7 }
 0x72e   : > { %4146 = vmatprep.mubr.bf16.mxu0 %v3861_v13 }
 0x72f   : > { %4147 = vmatmul.mubr.bf16.gmra.mrb[112].mxu0 %v3860_v12 }
 0x745   : > { %v3791_v21 = vpop.f32.mrb[84].mxu1 }
 0x746   : > { %v3792_v54 = vadd.f32 %v3791_v21, %v7800_v10  ;;  %v3793_v20 = vpop.f32.mrb[85].mxu1 }
 0x747   : > { %v3794_v6 = vadd.f32 %v3793_v20, %v7803_v7  ;;  %v3795_v30 = vpop.f32.mrb[86].mxu1 }
 0x748   : > { %v3796_v47 = vadd.f32 %v3795_v30, %v7800_v10  ;;  %v3797_v62 = vpop.f32.mrb[87].mxu1  ;;  %v3840_v46 = vmax.f32 %v3792_v54, 0.0 }
 0x749   : > { %v3798_v48 = vadd.f32 %v3797_v62, %v7803_v7  ;;  %v3841_v40 = vmax.f32 %v3794_v6, 0.0 }
 0x74a   : > { %v3842_v31 = vmax.f32 %v3796_v47, 0.0 }
 0x74b   : > { %v3843_v52 = vmax.f32 %v3798_v48, 0.0 }
 0x74c   : > { %v3862_v9 = vpack.c.bf16 %v3842_v31, %v3840_v46 }
 0x74d   : > { %v3863_v50 = vpack.c.bf16 %v3843_v52, %v3841_v40 }
 0x74f   : > { %4156 = vmatprep.mubr.bf16.mxu0 %v3863_v50 }
 0x750   : > { %4157 = vmatmul.mubr.bf16.gmra.mrb[116].mxu0 %v3862_v9 }
 0x767   : > { %v3801_v37 = vpop.f32.mrb[88].mxu1 }
 0x768   : > { %v3802_v56 = vadd.f32 %v3801_v37, %v7800_v10  ;;  %v3803_v57 = vpop.f32.mrb[89].mxu1 }
 0x769   : > { %v3804_v38 = vadd.f32 %v3803_v57, %v7803_v7  ;;  %v3805_v33 = vpop.f32.mrb[90].mxu1 }
 0x76a   : > { %v3806_v27 = vadd.f32 %v3805_v33, %v7800_v10  ;;  %v3807_v24 = vpop.f32.mrb[91].mxu1  ;;  %v3844_v60 = vmax.f32 %v3802_v56, 0.0 }
 0x76b   : > { %v3808_v59 = vadd.f32 %v3807_v24, %v7803_v7  ;;  %v3845_v58 = vmax.f32 %v3804_v38, 0.0 }
 0x76c   : > { %v3846_v43 = vmax.f32 %v3806_v27, 0.0 }
 0x76d   : > { %v3847_v32 = vmax.f32 %v3808_v59, 0.0 }
 0x76e   : > { %v3864_v1 = vpack.c.bf16 %v3846_v43, %v3844_v60 }
 0x76f   : > { %v3865_v19 = vpack.c.bf16 %v3847_v32, %v3845_v58 }
 0x771   : > { %4166 = vmatprep.mubr.bf16.mxu0 %v3865_v19 }
 0x772   : > { %4167 = vmatmul.mubr.bf16.gmra.mrb[120].mxu0 %v3864_v1 }
 0x784   : > { %v3811_v51 = vpop.f32.mrb[92].mxu1 }
 0x785   : > { %v3812_v17 = vadd.f32 %v3811_v51, %v7800_v10  ;;  %v3813_v39 = vpop.f32.mrb[93].mxu1 }
 0x786   : > { %v3814_v61 = vadd.f32 %v3813_v39, %v7803_v7  ;;  %v3815_v0 = vpop.f32.mrb[94].mxu1 }
 0x787   : > { %v3816_v55 = vadd.f32 %v3815_v0, %v7800_v10  ;;  %v3817_v35 = vpop.f32.mrb[95].mxu1  ;;  %v3848_v63 = vmax.f32 %v3812_v17, 0.0 }
 0x788   : > { %v3818_v45 = vadd.f32 %v3817_v35, %v7803_v7  ;;  %v3849_v3 = vmax.f32 %v3814_v61, 0.0 }
 0x789   : > { %v3850_v41 = vmax.f32 %v3816_v55, 0.0 }
 0x78a   : > { %v3851_v23 = vmax.f32 %v3818_v45, 0.0 }
 0x78b   : > { %v3866_v49 = vpack.c.bf16 %v3850_v41, %v3848_v63 }
 0x78c   : > { %v3867_v29 = vpack.c.bf16 %v3851_v23, %v3849_v3 }
 0x78e   : > { %4176 = vmatprep.mubr.bf16.mxu0 %v3867_v29 }
 0x78f   : > { %4177 = vmatmul.mubr.bf16.gmra.mrb[124].mxu0 %v3866_v49 }
 0x7b1   : > { %v4108_v5 = vpop.f32.mrb[96].mxu0 }
 0x7b2   : > { %v4109_v10 = vadd.f32 %v4108_v5, %v7855_v14  ;;  %v4110_v25 = vpop.f32.mrb[97].mxu0 }
 0x7b3   : > { %v4111_v7 = vadd.f32 %v4110_v25, %v7858_v36  ;;  %v4112_v15 = vpop.f32.mrb[98].mxu0 }
 0x7b4   : > { %v4113_v26 = vadd.f32 %v4112_v15, %v7855_v14  ;;  %v4114_v42 = vpop.f32.mrb[99].mxu0  ;;  %v4187_v8 = vmax.f32 %v4109_v10, 0.0 }
 0x7b5   : > { %v4115_v22 = vadd.f32 %v4114_v42, %v7858_v36  ;;  %v4188_v12 = vmax.f32 %v4111_v7, 0.0 }
 0x7b6   : > { %v4189_v2 = vmax.f32 %v4113_v26, 0.0 }
 0x7b7   : > { %v4190_v28 = vmax.f32 %v4115_v22, 0.0 }
 0x7b8   : > { %v4219_v13 = vpack.c.bf16 %v4189_v2, %v4187_v8 }
 0x7b9   : > { %v4220_v53 = vpack.c.bf16 %v4190_v28, %v4188_v12  ;;  %v4118_v18 = vpop.f32.mrb[100].mxu0 }
 0x7ba   : > { %v4119_v4 = vadd.f32 %v4118_v18, %v7855_v14  ;;  %v4120_v34 = vpop.f32.mrb[101].mxu0 }
 0x7bb   : > { %v4121_v44 = vadd.f32 %v4120_v34, %v7858_v36  ;;  %v4122_v11 = vpop.f32.mrb[102].mxu0  ;;  %4402 = vmatprep.mubr.bf16.mxu1 %v4220_v53 }
 0x7bc   : > { %v4123_v21 = vadd.f32 %v4122_v11, %v7855_v14  ;;  %v4124_v54 = vpop.f32.mrb[103].mxu0  ;;  %4403 = vmatmul.mubr.bf16.vlgmr.msra.gmra.mrb[96].mxu1 %v4219_v13  ;;  %v4191_v6 = vmax.f32 %v4119_v4, 0.0 }
 0x7bd   : > { %v4125_v20 = vadd.f32 %v4124_v54, %v7858_v36  ;;  %v4192_v47 = vmax.f32 %v4121_v44, 0.0 }
 0x7be   : > { %v4193_v30 = vmax.f32 %v4123_v21, 0.0 }
 0x7bf   : > { %v4194_v62 = vmax.f32 %v4125_v20, 0.0 }
 0x7c0   : > { %v4221_v48 = vpack.c.bf16 %v4193_v30, %v4191_v6 }
 0x7c1   : > { %v4222_v46 = vpack.c.bf16 %v4194_v62, %v4192_v47 }
 0x7c3   : > { %4410 = vmatprep.mubr.bf16.mxu1 %v4222_v46 }
 0x7c4   : > { %4411 = vmatmul.mubr.bf16.gmra.mrb[100].mxu1 %v4221_v48  ;;  %v4128_v31 = vpop.f32.mrb[104].mxu0 }
 0x7c5   : > { %v4129_v40 = vadd.f32 %v4128_v31, %v7855_v14  ;;  %v4130_v52 = vpop.f32.mrb[105].mxu0 }
 0x7c6   : > { %v4131_v9 = vadd.f32 %v4130_v52, %v7858_v36  ;;  %v4132_v50 = vpop.f32.mrb[106].mxu0 }
 0x7c7   : > { %v4133_v37 = vadd.f32 %v4132_v50, %v7855_v14  ;;  %v4134_v56 = vpop.f32.mrb[107].mxu0  ;;  %v4195_v38 = vmax.f32 %v4129_v40, 0.0 }
 0x7c8   : > { %v4135_v57 = vadd.f32 %v4134_v56, %v7858_v36  ;;  %v4196_v27 = vmax.f32 %v4131_v9, 0.0 }
 0x7c9   : > { %v4197_v33 = vmax.f32 %v4133_v37, 0.0 }
 0x7ca   : > { %v4198_v24 = vmax.f32 %v4135_v57, 0.0 }
 0x7cb   : > { %v4223_v59 = vpack.c.bf16 %v4197_v33, %v4195_v38 }
 0x7cc   : > { %v4224_v60 = vpack.c.bf16 %v4198_v24, %v4196_v27 }
 0x7ce   : > { %4418 = vmatprep.mubr.bf16.mxu1 %v4224_v60 }
 0x7cf   : > { %4419 = vmatmul.mubr.bf16.gmra.mrb[104].mxu1 %v4223_v59 }
 0x7e5   : > { %v4138_v43 = vpop.f32.mrb[108].mxu0 }
 0x7e6   : > { %v4139_v58 = vadd.f32 %v4138_v43, %v7855_v14  ;;  %v4140_v32 = vpop.f32.mrb[109].mxu0 }
 0x7e7   : > { %v4141_v1 = vadd.f32 %v4140_v32, %v7858_v36  ;;  %v4142_v19 = vpop.f32.mrb[110].mxu0 }
 0x7e8   : > { %v4143_v51 = vadd.f32 %v4142_v19, %v7855_v14  ;;  %v4144_v17 = vpop.f32.mrb[111].mxu0  ;;  %v4199_v61 = vmax.f32 %v4139_v58, 0.0 }
 0x7e9   : > { %v4145_v39 = vadd.f32 %v4144_v17, %v7858_v36  ;;  %v4200_v55 = vmax.f32 %v4141_v1, 0.0 }
 0x7ea   : > { %v4201_v0 = vmax.f32 %v4143_v51, 0.0 }
 0x7eb   : > { %v4202_v35 = vmax.f32 %v4145_v39, 0.0 }
 0x7ec   : > { %v4225_v45 = vpack.c.bf16 %v4201_v0, %v4199_v61  ;;  %v7894_v0 = vld [vmem:[%s455_s15] ss:$0 sm:$0xff] }
 0x7ed   : > { %v4226_v63 = vpack.c.bf16 %v4202_v35, %v4200_v55 }
 0x7ef   : > { %4426 = vmatprep.mubr.bf16.mxu1 %v4226_v63 }
 0x7f0   : > { %4427 = vmatmul.mubr.bf16.gmra.mrb[108].mxu1 %v4225_v45 }
 0x802   : > { %v4148_v41 = vpop.f32.mrb[112].mxu0 }
 0x803   : > { %v4149_v3 = vadd.f32 %v4148_v41, %v7855_v14  ;;  %v4150_v23 = vpop.f32.mrb[113].mxu0 }
 0x804   : > { %v4151_v49 = vadd.f32 %v4150_v23, %v7858_v36  ;;  %v4152_v29 = vpop.f32.mrb[114].mxu0 }
 0x805   : > { %v4153_v16 = vadd.f32 %v4152_v29, %v7855_v14  ;;  %v4154_v5 = vpop.f32.mrb[115].mxu0  ;;  %v4203_v25 = vmax.f32 %v4149_v3, 0.0 }
 0x806   : > { %v4155_v10 = vadd.f32 %v4154_v5, %v7858_v36  ;;  %v4204_v15 = vmax.f32 %v4151_v49, 0.0 }
 0x807   : > { %v4205_v7 = vmax.f32 %v4153_v16, 0.0 }
 0x808   : > { %v4206_v26 = vmax.f32 %v4155_v10, 0.0 }
 0x809   : > { %v4227_v42 = vpack.c.bf16 %v4205_v7, %v4203_v25 }
 0x80a   : > { %v4228_v22 = vpack.c.bf16 %v4206_v26, %v4204_v15 }
 0x80c   : > { %4434 = vmatprep.mubr.bf16.mxu1 %v4228_v22 }
 0x80d   : > { %4435 = vmatmul.mubr.bf16.gmra.mrb[112].mxu1 %v4227_v42 }
 0x823   : > { %v4158_v8 = vpop.f32.mrb[116].mxu0 }
 0x824   : > { %v4159_v2 = vadd.f32 %v4158_v8, %v7855_v14  ;;  %v4160_v12 = vpop.f32.mrb[117].mxu0 }
 0x825   : > { %v4161_v28 = vadd.f32 %v4160_v12, %v7858_v36  ;;  %v4162_v13 = vpop.f32.mrb[118].mxu0 }
 0x826   : > { %v4163_v53 = vadd.f32 %v4162_v13, %v7855_v14  ;;  %v4164_v18 = vpop.f32.mrb[119].mxu0  ;;  %v4207_v34 = vmax.f32 %v4159_v2, 0.0 }
 0x827   : > { %v4165_v4 = vadd.f32 %v4164_v18, %v7858_v36  ;;  %v4208_v11 = vmax.f32 %v4161_v28, 0.0 }
 0x828   : > { %v4209_v44 = vmax.f32 %v4163_v53, 0.0 }
 0x829   : > { %v4210_v21 = vmax.f32 %v4165_v4, 0.0 }
 0x82a   : > { %v4229_v54 = vpack.c.bf16 %v4209_v44, %v4207_v34 }
 0x82b   : > { %v4230_v20 = vpack.c.bf16 %v4210_v21, %v4208_v11 }
 0x82d   : > { %4442 = vmatprep.mubr.bf16.mxu1 %v4230_v20 }
 0x82e   : > { %4443 = vmatmul.mubr.bf16.gmra.mrb[116].mxu1 %v4229_v54 }
 0x845   : > { %v4168_v6 = vpop.f32.mrb[120].mxu0 }
 0x846   : > { %v4169_v30 = vadd.f32 %v4168_v6, %v7855_v14  ;;  %v4170_v47 = vpop.f32.mrb[121].mxu0 }
 0x847   : > { %v4171_v62 = vadd.f32 %v4170_v47, %v7858_v36  ;;  %v4172_v48 = vpop.f32.mrb[122].mxu0 }
 0x848   : > { %v4173_v46 = vadd.f32 %v4172_v48, %v7855_v14  ;;  %v4174_v31 = vpop.f32.mrb[123].mxu0  ;;  %v4211_v52 = vmax.f32 %v4169_v30, 0.0 }
 0x849   : > { %v4175_v40 = vadd.f32 %v4174_v31, %v7858_v36  ;;  %v4212_v50 = vmax.f32 %v4171_v62, 0.0 }
 0x84a   : > { %v4213_v9 = vmax.f32 %v4173_v46, 0.0 }
 0x84b   : > { %v4214_v37 = vmax.f32 %v4175_v40, 0.0 }
 0x84c   : > { %v4231_v56 = vpack.c.bf16 %v4213_v9, %v4211_v52 }
 0x84d   : > { %v4232_v57 = vpack.c.bf16 %v4214_v37, %v4212_v50 }
 0x84f   : > { %4450 = vmatprep.mubr.bf16.mxu1 %v4232_v57 }
 0x850   : > { %4451 = vmatmul.mubr.bf16.gmra.mrb[120].mxu1 %v4231_v56 }
 0x862   : > { %v4178_v38 = vpop.f32.mrb[124].mxu0 }
 0x863   : > { %v4179_v33 = vadd.f32 %v4178_v38, %v7855_v14  ;;  %v4180_v27 = vpop.f32.mrb[125].mxu0 }
 0x864   : > { %v4181_v24 = vadd.f32 %v4180_v27, %v7858_v36  ;;  %v4182_v59 = vpop.f32.mrb[126].mxu0 }
 0x865   : > { %v4183_v60 = vadd.f32 %v4182_v59, %v7855_v14  ;;  %v4184_v43 = vpop.f32.mrb[127].mxu0  ;;  %v4215_v32 = vmax.f32 %v4179_v33, 0.0 }
 0x866   : > { %v4185_v58 = vadd.f32 %v4184_v43, %v7858_v36  ;;  %v4216_v19 = vmax.f32 %v4181_v24, 0.0 }
 0x867   : > { %v4217_v1 = vmax.f32 %v4183_v60, 0.0 }
 0x868   : > { %v4218_v51 = vmax.f32 %v4185_v58, 0.0 }
 0x869   : > { %v4233_v17 = vpack.c.bf16 %v4217_v1, %v4215_v32 }
 0x86a   : > { %v4234_v39 = vpack.c.bf16 %v4218_v51, %v4216_v19 }
 0x86c   : > { %4458 = vmatprep.mubr.bf16.mxu1 %v4234_v39 }
 0x86d   : > { %4459 = vmatmul.mubr.bf16.gmra.mrb[124].mxu1 %v4233_v17 }
 0x88f   : > { %v5200_v61 = vpop.f32.mrb[96].mxu1 }
 0x890   : > { %v5201_v55 = vpop.f32.mrb[97].mxu1 }
 0x891   : > { %v5202_v35 = vadd.f32 %v5201_v55, %v5200_v61  ;;  %v5203_v45 = vpop.f32.mrb[98].mxu1 }
 0x892   : > { %v5204_v14 = vpop.f32.mrb[99].mxu1 }
 0x893   : > { %v4405_v63 = vadd.f32 %v5202_v35, %v7894_v0  ;;  %v5205_v36 = vadd.f32 %v5204_v14, %v5203_v45 }
 0x895   : > { %4467 = vst [vmem:[%s7899_s13] sm:$0xff] %v4405_v63  ;;  %v4408_v41 = vadd.f32 %v5205_v36, %v7894_v0 }
 0x897   : > { %4468 = vst [vmem:[%s7899_s13 + $0x8] sm:$0xff] %v4408_v41  ;;  %v5206_v3 = vpop.f32.mrb[100].mxu1 }
 0x898   : > { %v5207_v23 = vpop.f32.mrb[101].mxu1 }
 0x899   : > { %v5208_v49 = vadd.f32 %v5207_v23, %v5206_v3  ;;  %v5209_v29 = vpop.f32.mrb[102].mxu1 }
 0x89a   : > { %v5210_v16 = vpop.f32.mrb[103].mxu1 }
 0x89b   : > { %v4413_v5 = vadd.f32 %v5208_v49, %v7894_v0  ;;  %v5211_v10 = vadd.f32 %v5210_v16, %v5209_v29 }
 0x89d   : > { %4469 = vst [vmem:[%s7899_s13 + $0x10] sm:$0xff] %v4413_v5  ;;  %v4416_v25 = vadd.f32 %v5211_v10, %v7894_v0 }
 0x89f   : > { %4470 = vst [vmem:[%s7899_s13 + $0x18] sm:$0xff] %v4416_v25 }
 0x8a2   : > { %v5212_v7 = vpop.f32.mrb[104].mxu1 }
 0x8a3   : > { %v5213_v15 = vpop.f32.mrb[105].mxu1 }
 0x8a4   : > { %v5214_v26 = vadd.f32 %v5213_v15, %v5212_v7  ;;  %v5215_v42 = vpop.f32.mrb[106].mxu1 }
 0x8a5   : > { %v5216_v22 = vpop.f32.mrb[107].mxu1 }
 0x8a6   : > { %v4421_v8 = vadd.f32 %v5214_v26, %v7894_v0  ;;  %v5217_v2 = vadd.f32 %v5216_v22, %v5215_v42 }
 0x8a8   : > { %4471 = vst [vmem:[%s7899_s13 + $0x20] sm:$0xff] %v4421_v8  ;;  %v4424_v12 = vadd.f32 %v5217_v2, %v7894_v0 }
 0x8aa   : > { %4472 = vst [vmem:[%s7899_s13 + $0x28] sm:$0xff] %v4424_v12 }
 0x8c3   : > { %v5218_v28 = vpop.f32.mrb[108].mxu1 }
 0x8c4   : > { %v5219_v13 = vpop.f32.mrb[109].mxu1 }
 0x8c5   : > { %v5220_v53 = vadd.f32 %v5219_v13, %v5218_v28  ;;  %v5221_v18 = vpop.f32.mrb[110].mxu1 }
 0x8c6   : > { %v5222_v4 = vpop.f32.mrb[111].mxu1 }
 0x8c7   : > { %v4429_v34 = vadd.f32 %v5220_v53, %v7894_v0  ;;  %v5223_v44 = vadd.f32 %v5222_v4, %v5221_v18 }
 0x8c9   : > { %4473 = vst [vmem:[%s7899_s13 + $0x30] sm:$0xff] %v4429_v34  ;;  %v4432_v11 = vadd.f32 %v5223_v44, %v7894_v0 }
 0x8cb   : > { %4474 = vst [vmem:[%s7899_s13 + $0x38] sm:$0xff] %v4432_v11 }
 0x8e0   : > { %v5224_v21 = vpop.f32.mrb[112].mxu1 }
 0x8e1   : > { %v5225_v54 = vpop.f32.mrb[113].mxu1 }
 0x8e2   : > { %v5226_v20 = vadd.f32 %v5225_v54, %v5224_v21  ;;  %v5227_v6 = vpop.f32.mrb[114].mxu1 }
 0x8e3   : > { %v5228_v30 = vpop.f32.mrb[115].mxu1 }
 0x8e4   : > { %v4437_v47 = vadd.f32 %v5226_v20, %v7894_v0  ;;  %v5229_v62 = vadd.f32 %v5228_v30, %v5227_v6 }
 0x8e6   : > { %4475 = vst [vmem:[%s7899_s13 + $0x40] sm:$0xff] %v4437_v47  ;;  %v4440_v48 = vadd.f32 %v5229_v62, %v7894_v0 }
 0x8e8   : > { %4476 = vst [vmem:[%s7899_s13 + $0x48] sm:$0xff] %v4440_v48 }
 0x901   : > { %v5230_v46 = vpop.f32.mrb[116].mxu1 }
 0x902   : > { %v5231_v31 = vpop.f32.mrb[117].mxu1 }
 0x903   : > { %v5232_v40 = vadd.f32 %v5231_v31, %v5230_v46  ;;  %v5233_v52 = vpop.f32.mrb[118].mxu1 }
 0x904   : > { %v5234_v9 = vpop.f32.mrb[119].mxu1 }
 0x905   : > { %v4445_v50 = vadd.f32 %v5232_v40, %v7894_v0  ;;  %v5235_v37 = vadd.f32 %v5234_v9, %v5233_v52 }
 0x907   : > { %4477 = vst [vmem:[%s7899_s13 + $0x50] sm:$0xff] %v4445_v50  ;;  %v4448_v56 = vadd.f32 %v5235_v37, %v7894_v0 }
 0x909   : > { %4478 = vst [vmem:[%s7899_s13 + $0x58] sm:$0xff] %v4448_v56 }
 0x923   : > { %v5236_v57 = vpop.f32.mrb[120].mxu1 }
 0x924   : > { %v5237_v38 = vpop.f32.mrb[121].mxu1 }
 0x925   : > { %v5238_v33 = vadd.f32 %v5237_v38, %v5236_v57  ;;  %v5239_v27 = vpop.f32.mrb[122].mxu1 }
 0x926   : > { %v5240_v24 = vpop.f32.mrb[123].mxu1 }
 0x927   : > { %v4453_v59 = vadd.f32 %v5238_v33, %v7894_v0  ;;  %v5241_v60 = vadd.f32 %v5240_v24, %v5239_v27 }
 0x929   : > { %4479 = vst [vmem:[%s7899_s13 + $0x60] sm:$0xff] %v4453_v59  ;;  %v4456_v43 = vadd.f32 %v5241_v60, %v7894_v0 }
 0x92b   : > { %4480 = vst [vmem:[%s7899_s13 + $0x68] sm:$0xff] %v4456_v43 }
 0x940   : > { %v5242_v58 = vpop.f32.mrb[124].mxu1 }
 0x941   : > { %v5243_v32 = vpop.f32.mrb[125].mxu1 }
 0x942   : > { %v5244_v1 = vadd.f32 %v5243_v32, %v5242_v58  ;;  %v5245_v19 = vpop.f32.mrb[126].mxu1 }
 0x943   : > { %v5246_v51 = vpop.f32.mrb[127].mxu1 }
 0x944   : > { %v4461_v17 = vadd.f32 %v5244_v1, %v7894_v0  ;;  %v5247_v39 = vadd.f32 %v5246_v51, %v5245_v19 }
 0x946   : > { %4481 = vst [vmem:[%s7899_s13 + $0x70] sm:$0xff] %v4461_v17  ;;  %v4464_v61 = vadd.f32 %v5247_v39, %v7894_v0 }
 0x948   : > { %4482 = vst [vmem:[%s7899_s13 + $0x78] sm:$0xff] %v4464_v61 }
 0x949   : > { %5942 = shalt.err (!%p5939_p9)
}
 0x94a   : > { %s5943_s30 = scalar_lea.hbm %s7934_s18, 2048  ;;  %s5947_s15 = scalar_lea.hbm %s8171_s9, 6144 }
 0x94b   : > { %p5944_p5 = scmp.ne.s32.totalorder %s7934_s18, %s5943_s30  ;;  %p5948_p2 = scmp.lt.u32.totalorder %s7934_s18, %s8171_s9 }
 0x94c   : > { %p5949_p3 = scmp.lt.u32.totalorder %s5947_s15, %s5943_s30  ;;  %p5951_p6 = scmp.lt.u32.totalorder %s5943_s30, %s7934_s18 }
 0x94d   : > { %p5945_p4 = pnand %p5944_p5, %p8172_p0 }
 0x94e   : > { %p5950_p12 = por %p5949_p3, %p5948_p2 }
 0x94f   : > { %p5946_p11 = pneg %p5945_p4 }
 0x950   : > { %p5952_p1 = por %p5951_p6, %p5950_p12 }
 0x952   : > { %p5953_p7 = pnand %p5952_p1, %p5946_p11 }
 0x954   : > { %5956 = shalt.err (!%p5953_p7)
}
 0x955   : > { %s6041_s23 = smov 128   ;;  %s6042_s26 = smov 8  }
 0x956   : > { %5263 = dma.vmem_to_hbm [thread:$0]  (%p8172_p0), %s7936_s19, 2048, %s7934_s18, %s4484_s27, %s6041_s23, %s6041_s23, %s6042_s26  }
 0x957 PF: > { %s8173_s2 = sld [smem:[#allocation21_spill]]  ;;  %s8174_s13 = sld [smem:[#allocation19_spill]] }
 0x958   : > { %s8175_s11 = sld [smem:[#allocation24_spill]] }
 0x95d   : > { %p5289_p8 = scmp.ge.s32.totalorder %s8173_s2, 2  ;;  %s4514_s7 = sand.u32 1, %s8174_s13  }
 0x95e   : > { %p8176_p10 = scmp.ne.s32.totalorder %s8175_s11, 0  ;;  %s4515_s20 = scalar_lea.sflag [#allocation4], %s4514_s7 }
 0x960   : > { %p5285_p13 = pnand %p5289_p8, %p8176_p10 }
 0x962   : > { %5998 = dma.done.wait (!%p5285_p13), %s4515_s20, 2048  }
 0x963   : > { %6000 = vsyncadd (!%p5285_p13), %s4515_s20, 4294965248  ;;  %s32_s29 = sadd.s32 1, %s8173_s2   ;;  %s8177_s12 = sld [smem:[#allocation20_spill]] }
 0x964   : > { %p29_p9 = scmp.ge.s32.totalorder %s32_s29, 5   ;;  %s8178_s26 = sld [smem:[#allocation23_spill]] }
 0x965   : > { %s8179_s14 = sld [smem:[#allocation22_spill]]  ;;  %s8180_s24 = smov %s6007_s25 }
 0x966   : > { %s8182_s27 = smov %s6019_s28  ;;  %31 = sbr.rel (!%p29_p9) target bundleno = 15 (0xf), region = 170 }
 0x969   : > { %s8181_s25 = smov %s8177_s12 }
 0x96b   : > { %s8183_s28 = smov %s8179_s14 }
 0x96d   :  { %4520 = vsyncpa [#allocation3], 1 }
 0x96e   :  { %4522 = vsyncpa [#allocation3 + $0x1], 1 }
 0x96f   :  { %4523 = vsyncpa [#allocation6], 1 }
 0x970   :  { %4525 = vsyncpa [#allocation6 + $0x1], 1 }
 0x971   :  { %4526 = vsyncpa [#allocation9], 1 }
 0x972   :  { %4528 = vsyncpa [#allocation9 + $0x1], 1 }
 0x973   :  { %4529 = vsyncpa [#allocation12], 1 }
 0x974   :  { %4531 = vsyncpa [#allocation12 + $0x1], 1 }
 0x975   :  { %4532 = vsyncpa [#allocation4], 1 }
 0x976   :  { %4534 = vsyncpa [#allocation4 + $0x1], 1 }

</bundles_post_ra>
